<compile_context>
chip_gen: v7x
topology: tpu7x:2x2x1
jax: 0.10.0
libtpu: 0.0.40
codegen_flags: <defaults>
</compile_context>

<pallas_src>
import functools

import jax
import jax.numpy as jnp
from jax import lax
from jax.experimental import pallas as pl
from jax.experimental.pallas import tpu as pltpu

FEAT_C = 64   # backbone output channels (VisionNavNet contract)
OUT_C = 32    # conv_L_1 output channels
POOL = 64     # backbone downsample rate


def _fused_kernel(C, Hc, Wf, x_ref, pw_ref, l_ref, bp_ref, g_ref, bc_ref,
                  o_ref, xw_ref):
    """One batch element per grid step.  Everything keeps rows x W-lanes.

    x_ref  : (C*Hc, Wc)        f32   image, channel planes stacked along rows
    pw_ref : (Wc, Wf)          bf16  W-block mean matrix (entries 0 / 2^-6)
    l_ref  : (Hf*64, C*Hc)     bf16  H-block mean + 1x1 projection, folded
    bp_ref : (Hf*64, 1)        f32   projection bias (tiled over h)
    g_ref  : (3, Hf*32, Hf*64) bf16  conv_L_1 folded per W-tap (banded over h)
    bc_ref : (Hf*32, 1)        f32   conv bias, rows ordered (c_out, h)
    o_ref  : (Hf*32, Wf)       f32   output, rows c_out*Hf + h  (NCHW-flat)
    xw_ref : (C*Hc, Wf)        bf16  scratch: W-pooled image
    """
    f32 = jnp.float32
    bf16 = jnp.bfloat16

    # ---- stage 1: 64-wide W-block mean, chunked per input channel ----------
    for c in range(C):
        xc = x_ref[c * Hc:(c + 1) * Hc, :].astype(bf16)              # (Hc, Wc)
        xw_ref[c * Hc:(c + 1) * Hc, :] = jnp.dot(
            xc, pw_ref[...], preferred_element_type=f32).astype(bf16)

    # ---- stage 2: H-block mean + 1x1 projection + bias + ReLU (one matmul) --
    f_pre = jnp.dot(l_ref[...], xw_ref[...],
                    preferred_element_type=f32)                      # (Hf*64, Wf)
    feat = jnp.maximum(f_pre + bp_ref[...], 0.0).astype(bf16)        # rows (h, d)

    # ---- conv_L_1 (3x3, pad=1) + bias + ReLU --------------------------------
    # W-taps: lane shifts of `feat`, realised as exact (Wf, Wf) shift-matrix
    # matmuls (zero fill at the borders == SAME padding in W).
    wi = lax.broadcasted_iota(jnp.int32, (Wf, Wf), 0)   # source column w'
    wo = lax.broadcasted_iota(jnp.int32, (Wf, Wf), 1)   # target column w
    s_m1 = (wi == wo - 1).astype(bf16)                  # take column w-1
    s_p1 = (wi == wo + 1).astype(bf16)                  # take column w+1
    f_m1 = jnp.dot(feat, s_m1, preferred_element_type=f32).astype(bf16)
    f_p1 = jnp.dot(feat, s_p1, preferred_element_type=f32).astype(bf16)

    # H-taps + channel contraction are folded into the banded g_ref[kx].
    acc = jnp.dot(g_ref[0], f_m1, preferred_element_type=f32)
    acc = acc + jnp.dot(g_ref[1], feat, preferred_element_type=f32)
    acc = acc + jnp.dot(g_ref[2], f_p1, preferred_element_type=f32)
    o_ref[...] = jnp.maximum(acc + bc_ref[...], 0.0)                 # (Hf*32, Wf)


def image_model_forward(img_nchw, params):
    """ImageModel.forward: backbone stand-in + conv_L_1 + ReLU.  Returns NCHW."""
    B, C, H, W = img_nchw.shape
    Hf, Wf = H // POOL, W // POOL
    Hc, Wc = Hf * POOL, Wf * POOL

    # Channel planes stacked along rows: (B, C*Hc, Wc).  Contiguous (free).
    x2d = img_nchw[:, :, :Hc, :Wc].reshape(B, C * Hc, Wc).astype(jnp.float32)

    # 64-wide W-block mean matrix (entries 0 or 1/64 -> exact in bf16).
    pw = ((jnp.arange(Wc)[:, None] // POOL == jnp.arange(Wf)[None, :])
          .astype(jnp.float32) / POOL).astype(jnp.bfloat16)          # (Wc, Wf)

    # H-block mean folded with the 1x1 projection (backbone stand-in):
    #   L[h*64 + d, c*Hc + r] = w_proj[c, d] / 64   if r // 64 == h   else 0
    # TODO(synk): the pretrained VisionNavNet backbone (self.features) is not
    # defined in the reference; this deterministic stand-in honours its
    # contract (downsample rate 64, 64 output channels).
    wp = params['w_proj'].astype(jnp.float32)                        # (C, 64)
    hsel = ((jnp.arange(Hf)[:, None] == jnp.arange(Hc)[None, :] // POOL)
            .astype(jnp.float32) / POOL)                             # (Hf, Hc)
    L = (jnp.einsum('cd,hr->hdcr', wp, hsel)
         .reshape(Hf * FEAT_C, C * Hc).astype(jnp.bfloat16))
    bp_col = jnp.tile(params['b_proj'].astype(jnp.float32),
                      Hf).reshape(Hf * FEAT_C, 1)

    # conv_L_1 folded per W-tap kx (3x3 HWIO weight):
    #   G[kx, e*Hf + h, h2*64 + d] = w_conv[h2 - h + 1, kx, d, e]  if |h2-h| <= 1
    wc = params['w_conv'].astype(jnp.float32)                        # (3,3,64,32)
    dy = jnp.arange(Hf)[None, :] - jnp.arange(Hf)[:, None] + 1       # (h, h2)
    valid = ((dy >= 0) & (dy <= 2)).astype(jnp.float32)
    T = wc[jnp.clip(dy, 0, 2)] * valid[:, :, None, None, None]       # (Hf,Hf,3,64,32)
    G = (jnp.transpose(T, (2, 4, 0, 1, 3))
         .reshape(3, OUT_C * Hf, Hf * FEAT_C).astype(jnp.bfloat16))
    bc_col = jnp.repeat(params['b_conv'].astype(jnp.float32),
                        Hf).reshape(OUT_C * Hf, 1)

    kernel = functools.partial(_fused_kernel, C, Hc, Wf)

    out2d = pl.pallas_call(
        kernel,
        out_shape=jax.ShapeDtypeStruct((B, OUT_C * Hf, Wf), jnp.float32),
        grid_spec=pltpu.PrefetchScalarGridSpec(
            num_scalar_prefetch=0,
            grid=(B,),
            in_specs=[
                pl.BlockSpec((None, C * Hc, Wc), lambda b: (b, 0, 0)),
                pl.BlockSpec(pw.shape, lambda b: (0, 0)),
                pl.BlockSpec(L.shape, lambda b: (0, 0)),
                pl.BlockSpec(bp_col.shape, lambda b: (0, 0)),
                pl.BlockSpec(G.shape, lambda b: (0, 0, 0)),
                pl.BlockSpec(bc_col.shape, lambda b: (0, 0)),
            ],
            out_specs=pl.BlockSpec((None, OUT_C * Hf, Wf), lambda b: (b, 0, 0)),
            scratch_shapes=[pltpu.VMEM((C * Hc, Wf), jnp.bfloat16)],
        ),
        compiler_params=pltpu.CompilerParams(
            dimension_semantics=("parallel",)),     # v7x: shard batch over 2 TCs
    )(x2d, pw, L, bp_col, G, bc_col)

    # Rows are already c_out*Hf + h -> contiguous reshape straight to NCHW.
    return out2d.reshape(B, OUT_C, Hf, Wf)


def _reference_forward(img_nchw, params):
    """Pure-JAX reference for the stand-in backbone + conv_L_1 + ReLU."""
    B, C, H, W = img_nchw.shape
    Hf, Wf = H // POOL, W // POOL
    x = jnp.transpose(img_nchw[:, :, :Hf * POOL, :Wf * POOL], (0, 2, 3, 1))
    pooled = x.reshape(B, Hf, POOL, Wf, POOL, C).mean(axis=(2, 4))
    feat = jax.nn.relu(jnp.einsum('bhwc,cd->bhwd', pooled, params['w_proj'])
                       + params['b_proj'])
    conv = lax.conv_general_dilated(
        feat.astype(jnp.bfloat16), params['w_conv'].astype(jnp.bfloat16),
        window_strides=(1, 1), padding='SAME',
        dimension_numbers=('NHWC', 'HWIO', 'NHWC'),
        preferred_element_type=jnp.float32)
    out = jax.nn.relu(conv + params['b_conv'])
    return jnp.transpose(out, (0, 3, 1, 2))


if __name__ == "__main__":
    key = jax.random.PRNGKey(0)
    k1, k2, k3, k4, k5 = jax.random.split(key, 5)

    # Image sized so the /64 backbone yields a 4x5 feature map (as per docstring).
    B, Cimg, Himg, Wimg = 2, 3, 256, 320
    img = jax.random.normal(k1, (B, Cimg, Himg, Wimg), jnp.float32)

    params = {
        # stand-in backbone 1x1 projection (3 -> 64)
        'w_proj': jax.random.normal(k2, (Cimg, FEAT_C), jnp.float32),
        'b_proj': jax.random.normal(k3, (FEAT_C,), jnp.float32) * 0.01,
        # conv_L_1: Conv2d(64, 32, kernel_size=3, padding=1), HWIO layout
        'w_conv': jax.random.normal(k4, (3, 3, FEAT_C, OUT_C), jnp.float32)
                  / jnp.sqrt(9.0 * FEAT_C),
        'b_conv': jax.random.normal(k5, (OUT_C,), jnp.float32) * 0.01,
    }

    out = image_model_forward(img, params)
    out = jax.block_until_ready(out)
    assert out.shape == (B, OUT_C, Himg // POOL, Wimg // POOL), out.shape

    ref = _reference_forward(img, params)
    max_err = float(jnp.max(jnp.abs(out - ref)))
    assert jnp.allclose(out, ref, atol=2e-3, rtol=1e-2), max_err

    print("KERNEL_OK")
</pallas_src>

<mosaic_0001>
module attributes {stable_mosaic.version = 11 : i64} {
  func.func @_fused_kernel(%arg0: i32, %arg1: memref<1x768x320xf32, #tpu.memory_space<vmem>>, %arg2: memref<320x5xbf16, #tpu.memory_space<vmem>>, %arg3: memref<256x768xbf16, #tpu.memory_space<vmem>>, %arg4: memref<256x1xf32, #tpu.memory_space<vmem>>, %arg5: memref<3x128x256xbf16, #tpu.memory_space<vmem>>, %arg6: memref<128x1xf32, #tpu.memory_space<vmem>>, %arg7: memref<1x128x5xf32, #tpu.memory_space<vmem>>, %arg8: memref<768x5xbf16, #tpu.memory_space<vmem>>) attributes {dimension_semantics = [#tpu.dimension_semantics<parallel>], iteration_bounds = array<i64: 2>, scalar_prefetch = 0 : i64, scratch_operands = 1 : i64, tpu.core_type = #tpu.core_type<tc>, window_params = [{transform_indices = @transform_0, window_bounds = array<i64: 1, 768, 320>}, {pipeline_mode = #tpu.pipeline_mode<synchronous>, transform_indices = @transform_1, window_bounds = array<i64: 320, 5>}, {pipeline_mode = #tpu.pipeline_mode<synchronous>, transform_indices = @transform_2, window_bounds = array<i64: 256, 768>}, {pipeline_mode = #tpu.pipeline_mode<synchronous>, transform_indices = @transform_3, window_bounds = array<i64: 256, 1>}, {pipeline_mode = #tpu.pipeline_mode<synchronous>, transform_indices = @transform_4, window_bounds = array<i64: 3, 128, 256>}, {pipeline_mode = #tpu.pipeline_mode<synchronous>, transform_indices = @transform_5, window_bounds = array<i64: 128, 1>}, {transform_indices = @transform_6, window_bounds = array<i64: 1, 128, 5>}]} {
    %c0 = arith.constant 0 : index
    %c0_0 = arith.constant 0 : index
    %c0_1 = arith.constant 0 : index
    %0 = vector.load %arg1[%c0, %c0_0, %c0_1] : memref<1x768x320xf32, #tpu.memory_space<vmem>>, vector<1x256x320xf32>
    %1 = vector.shape_cast %0 : vector<1x256x320xf32> to vector<256x320xf32>
    %2 = arith.truncf %1 : vector<256x320xf32> to vector<256x320xbf16>
    %c0_2 = arith.constant 0 : index
    %c0_3 = arith.constant 0 : index
    %3 = vector.load %arg2[%c0_2, %c0_3] : memref<320x5xbf16, #tpu.memory_space<vmem>>, vector<320x5xbf16>
    %cst = arith.constant dense<0.000000e+00> : vector<256x5xf32>
    %4 = tpu.matmul %2, %3, %cst {dimension_numbers = #tpu.dot_dimension_numbers<[1], [0], [0], [1], [0, 0, 1, 1], [], []>} : vector<256x320xbf16>, vector<320x5xbf16>, vector<256x5xf32> -> vector<256x5xf32>
    %5 = arith.truncf %4 : vector<256x5xf32> to vector<256x5xbf16>
    %c0_4 = arith.constant 0 : index
    %c0_5 = arith.constant 0 : index
    %6 = vector.load %arg8[%c0_4, %c0_5] : memref<768x5xbf16, #tpu.memory_space<vmem>>, vector<256x5xbf16>
    tpu.vector_store %arg8[%c0_4, %c0_5], %5 {strides = array<i32>} : memref<768x5xbf16, #tpu.memory_space<vmem>>, vector<256x5xbf16>,
    %c0_6 = arith.constant 0 : index
    %c256 = arith.constant 256 : index
    %c0_7 = arith.constant 0 : index
    %7 = vector.load %arg1[%c0_6, %c256, %c0_7] : memref<1x768x320xf32, #tpu.memory_space<vmem>>, vector<1x256x320xf32>
    %8 = vector.shape_cast %7 : vector<1x256x320xf32> to vector<256x320xf32>
    %9 = arith.truncf %8 : vector<256x320xf32> to vector<256x320xbf16>
    %c0_8 = arith.constant 0 : index
    %c0_9 = arith.constant 0 : index
    %10 = vector.load %arg2[%c0_8, %c0_9] : memref<320x5xbf16, #tpu.memory_space<vmem>>, vector<320x5xbf16>
    %cst_10 = arith.constant dense<0.000000e+00> : vector<256x5xf32>
    %11 = tpu.matmul %9, %10, %cst_10 {dimension_numbers = #tpu.dot_dimension_numbers<[1], [0], [0], [1], [0, 0, 1, 1], [], []>} : vector<256x320xbf16>, vector<320x5xbf16>, vector<256x5xf32> -> vector<256x5xf32>
    %12 = arith.truncf %11 : vector<256x5xf32> to vector<256x5xbf16>
    %c256_11 = arith.constant 256 : index
    %c0_12 = arith.constant 0 : index
    %13 = vector.load %arg8[%c256_11, %c0_12] : memref<768x5xbf16, #tpu.memory_space<vmem>>, vector<256x5xbf16>
    tpu.vector_store %arg8[%c256_11, %c0_12], %12 {strides = array<i32>} : memref<768x5xbf16, #tpu.memory_space<vmem>>, vector<256x5xbf16>,
    %c0_13 = arith.constant 0 : index
    %c512 = arith.constant 512 : index
    %c0_14 = arith.constant 0 : index
    %14 = vector.load %arg1[%c0_13, %c512, %c0_14] : memref<1x768x320xf32, #tpu.memory_space<vmem>>, vector<1x256x320xf32>
    %15 = vector.shape_cast %14 : vector<1x256x320xf32> to vector<256x320xf32>
    %16 = arith.truncf %15 : vector<256x320xf32> to vector<256x320xbf16>
    %c0_15 = arith.constant 0 : index
    %c0_16 = arith.constant 0 : index
    %17 = vector.load %arg2[%c0_15, %c0_16] : memref<320x5xbf16, #tpu.memory_space<vmem>>, vector<320x5xbf16>
    %cst_17 = arith.constant dense<0.000000e+00> : vector<256x5xf32>
    %18 = tpu.matmul %16, %17, %cst_17 {dimension_numbers = #tpu.dot_dimension_numbers<[1], [0], [0], [1], [0, 0, 1, 1], [], []>} : vector<256x320xbf16>, vector<320x5xbf16>, vector<256x5xf32> -> vector<256x5xf32>
    %19 = arith.truncf %18 : vector<256x5xf32> to vector<256x5xbf16>
    %c512_18 = arith.constant 512 : index
    %c0_19 = arith.constant 0 : index
    %20 = vector.load %arg8[%c512_18, %c0_19] : memref<768x5xbf16, #tpu.memory_space<vmem>>, vector<256x5xbf16>
    tpu.vector_store %arg8[%c512_18, %c0_19], %19 {strides = array<i32>} : memref<768x5xbf16, #tpu.memory_space<vmem>>, vector<256x5xbf16>,
    %c0_20 = arith.constant 0 : index
    %c0_21 = arith.constant 0 : index
    %21 = vector.load %arg3[%c0_20, %c0_21] : memref<256x768xbf16, #tpu.memory_space<vmem>>, vector<256x768xbf16>
    %c0_22 = arith.constant 0 : index
    %c0_23 = arith.constant 0 : index
    %22 = vector.load %arg8[%c0_22, %c0_23] : memref<768x5xbf16, #tpu.memory_space<vmem>>, vector<768x5xbf16>
    %cst_24 = arith.constant dense<0.000000e+00> : vector<256x5xf32>
    %23 = tpu.matmul %21, %22, %cst_24 {dimension_numbers = #tpu.dot_dimension_numbers<[1], [0], [0], [1], [0, 0, 1, 1], [], []>} : vector<256x768xbf16>, vector<768x5xbf16>, vector<256x5xf32> -> vector<256x5xf32>
    %c0_25 = arith.constant 0 : index
    %c0_26 = arith.constant 0 : index
    %24 = vector.load %arg4[%c0_25, %c0_26] : memref<256x1xf32, #tpu.memory_space<vmem>>, vector<256x1xf32>
    %25 = vector.broadcast %24 : vector<256x1xf32> to vector<256x5xf32>
    %26 = arith.addf %23, %25 : vector<256x5xf32>
    %cst_27 = arith.constant 0.000000e+00 : f32
    %27 = vector.broadcast %cst_27 : f32 to vector<256x5xf32>
    %28 = arith.maximumf %26, %27 : vector<256x5xf32>
    %29 = arith.truncf %28 : vector<256x5xf32> to vector<256x5xbf16>
    %30 = tpu.iota {dimensions = array<i32: 0>} : vector<5x5xi32>
    %31 = tpu.iota {dimensions = array<i32: 1>} : vector<5x5xi32>
    %c1_i32 = arith.constant 1 : i32
    %32 = vector.broadcast %c1_i32 : i32 to vector<5x5xi32>
    %33 = arith.subi %31, %32 : vector<5x5xi32>
    %34 = arith.cmpi eq, %30, %33 : vector<5x5xi32>
    %35 = arith.extui %34 : vector<5x5xi1> to vector<5x5xi32>
    %36 = arith.sitofp %35 : vector<5x5xi32> to vector<5x5xf32>
    %37 = arith.truncf %36 : vector<5x5xf32> to vector<5x5xbf16>
    %c1_i32_28 = arith.constant 1 : i32
    %38 = vector.broadcast %c1_i32_28 : i32 to vector<5x5xi32>
    %39 = arith.addi %31, %38 : vector<5x5xi32>
    %40 = arith.cmpi eq, %30, %39 : vector<5x5xi32>
    %41 = arith.extui %40 : vector<5x5xi1> to vector<5x5xi32>
    %42 = arith.sitofp %41 : vector<5x5xi32> to vector<5x5xf32>
    %43 = arith.truncf %42 : vector<5x5xf32> to vector<5x5xbf16>
    %cst_29 = arith.constant dense<0.000000e+00> : vector<256x5xf32>
    %44 = tpu.matmul %29, %37, %cst_29 {dimension_numbers = #tpu.dot_dimension_numbers<[1], [0], [0], [1], [0, 0, 1, 1], [], []>} : vector<256x5xbf16>, vector<5x5xbf16>, vector<256x5xf32> -> vector<256x5xf32>
    %45 = arith.truncf %44 : vector<256x5xf32> to vector<256x5xbf16>
    %cst_30 = arith.constant dense<0.000000e+00> : vector<256x5xf32>
    %46 = tpu.matmul %29, %43, %cst_30 {dimension_numbers = #tpu.dot_dimension_numbers<[1], [0], [0], [1], [0, 0, 1, 1], [], []>} : vector<256x5xbf16>, vector<5x5xbf16>, vector<256x5xf32> -> vector<256x5xf32>
    %47 = arith.truncf %46 : vector<256x5xf32> to vector<256x5xbf16>
    %c0_31 = arith.constant 0 : index
    %c0_32 = arith.constant 0 : index
    %c0_33 = arith.constant 0 : index
    %48 = vector.load %arg5[%c0_31, %c0_32, %c0_33] : memref<3x128x256xbf16, #tpu.memory_space<vmem>>, vector<1x128x256xbf16>
    %49 = vector.shape_cast %48 : vector<1x128x256xbf16> to vector<128x256xbf16>
    %cst_34 = arith.constant dense<0.000000e+00> : vector<128x5xf32>
    %50 = tpu.matmul %49, %45, %cst_34 {dimension_numbers = #tpu.dot_dimension_numbers<[1], [0], [0], [1], [0, 0, 1, 1], [], []>} : vector<128x256xbf16>, vector<256x5xbf16>, vector<128x5xf32> -> vector<128x5xf32>
    %c1 = arith.constant 1 : index
    %c0_35 = arith.constant 0 : index
    %c0_36 = arith.constant 0 : index
    %51 = vector.load %arg5[%c1, %c0_35, %c0_36] : memref<3x128x256xbf16, #tpu.memory_space<vmem>>, vector<1x128x256xbf16>
    %52 = vector.shape_cast %51 : vector<1x128x256xbf16> to vector<128x256xbf16>
    %cst_37 = arith.constant dense<0.000000e+00> : vector<128x5xf32>
    %53 = tpu.matmul %52, %29, %cst_37 {dimension_numbers = #tpu.dot_dimension_numbers<[1], [0], [0], [1], [0, 0, 1, 1], [], []>} : vector<128x256xbf16>, vector<256x5xbf16>, vector<128x5xf32> -> vector<128x5xf32>
    %54 = arith.addf %50, %53 : vector<128x5xf32>
    %c2 = arith.constant 2 : index
    %c0_38 = arith.constant 0 : index
    %c0_39 = arith.constant 0 : index
    %55 = vector.load %arg5[%c2, %c0_38, %c0_39] : memref<3x128x256xbf16, #tpu.memory_space<vmem>>, vector<1x128x256xbf16>
    %56 = vector.shape_cast %55 : vector<1x128x256xbf16> to vector<128x256xbf16>
    %cst_40 = arith.constant dense<0.000000e+00> : vector<128x5xf32>
    %57 = tpu.matmul %56, %47, %cst_40 {dimension_numbers = #tpu.dot_dimension_numbers<[1], [0], [0], [1], [0, 0, 1, 1], [], []>} : vector<128x256xbf16>, vector<256x5xbf16>, vector<128x5xf32> -> vector<128x5xf32>
    %58 = arith.addf %54, %57 : vector<128x5xf32>
    %c0_41 = arith.constant 0 : index
    %c0_42 = arith.constant 0 : index
    %59 = vector.load %arg6[%c0_41, %c0_42] : memref<128x1xf32, #tpu.memory_space<vmem>>, vector<128x1xf32>
    %60 = vector.broadcast %59 : vector<128x1xf32> to vector<128x5xf32>
    %61 = arith.addf %58, %60 : vector<128x5xf32>
    %cst_43 = arith.constant 0.000000e+00 : f32
    %62 = vector.broadcast %cst_43 : f32 to vector<128x5xf32>
    %63 = arith.maximumf %61, %62 : vector<128x5xf32>
    %c0_44 = arith.constant 0 : index
    %c0_45 = arith.constant 0 : index
    %c0_46 = arith.constant 0 : index
    %64 = vector.load %arg7[%c0_44, %c0_45, %c0_46] : memref<1x128x5xf32, #tpu.memory_space<vmem>>, vector<1x128x5xf32>
    %65 = vector.shape_cast %64 : vector<1x128x5xf32> to vector<128x5xf32>
    %66 = vector.shape_cast %63 : vector<128x5xf32> to vector<1x128x5xf32>
    tpu.vector_store %arg7[%c0_44, %c0_45, %c0_46], %66 {strides = array<i32>} : memref<1x128x5xf32, #tpu.memory_space<vmem>>, vector<1x128x5xf32>,
    return
  }
  func.func @transform_0(%arg0: i32) -> (i32, i32, i32) {
    %c0_i32 = arith.constant 0 : i32
    %c0_i32_0 = arith.constant 0 : i32
    %c0_i32_1 = arith.constant 0 : i32
    return %arg0, %c0_i32, %c0_i32_0 : i32, i32, i32
  }
  func.func @transform_1(%arg0: i32) -> (i32, i32) {
    %c0_i32 = arith.constant 0 : i32
    %c0_i32_0 = arith.constant 0 : i32
    %c0_i32_1 = arith.constant 0 : i32
    return %c0_i32, %c0_i32_0 : i32, i32
  }
  func.func @transform_2(%arg0: i32) -> (i32, i32) {
    %c0_i32 = arith.constant 0 : i32
    %c0_i32_0 = arith.constant 0 : i32
    %c0_i32_1 = arith.constant 0 : i32
    return %c0_i32, %c0_i32_0 : i32, i32
  }
  func.func @transform_3(%arg0: i32) -> (i32, i32) {
    %c0_i32 = arith.constant 0 : i32
    %c0_i32_0 = arith.constant 0 : i32
    %c0_i32_1 = arith.constant 0 : i32
    return %c0_i32, %c0_i32_0 : i32, i32
  }
  func.func @transform_4(%arg0: i32) -> (i32, i32, i32) {
    %c0_i32 = arith.constant 0 : i32
    %c0_i32_0 = arith.constant 0 : i32
    %c0_i32_1 = arith.constant 0 : i32
    %c0_i32_2 = arith.constant 0 : i32
    return %c0_i32, %c0_i32_0, %c0_i32_1 : i32, i32, i32
  }
  func.func @transform_5(%arg0: i32) -> (i32, i32) {
    %c0_i32 = arith.constant 0 : i32
    %c0_i32_0 = arith.constant 0 : i32
    %c0_i32_1 = arith.constant 0 : i32
    return %c0_i32, %c0_i32_0 : i32, i32
  }
  func.func @transform_6(%arg0: i32) -> (i32, i32, i32) {
    %c0_i32 = arith.constant 0 : i32
    %c0_i32_0 = arith.constant 0 : i32
    %c0_i32_1 = arith.constant 0 : i32
    return %arg0, %c0_i32, %c0_i32_0 : i32, i32, i32
  }
}

</mosaic_0001>

<bundles_post_ra>
// kernel: tpu_custom_call.1
= control target key start
LH: loop header
LB: loop body
LE: loop exit
PB: predicated region body
PF: predicated region fallthrough
CT: control target
= control target key end

     0   :  { %s6764_s21 = smov 0   ;;  %s8605_s0 = inlined_call_operand.vmem [shape: f32[2,768,320], index: 0, kind: input, shape index: {}]   ;;  %s8606_s1 = inlined_call_operand.vmem [shape: bf16[320,5], index: 1, kind: input, shape index: {}]   ;;  %s8607_s2 = inlined_call_operand.vmem [shape: bf16[256,768], index: 2, kind: input, shape index: {}]   ;;  %s8608_s3 = inlined_call_operand.vmem [shape: f32[256,1], index: 3, kind: input, shape index: {}]   ;;  %s8609_s4 = inlined_call_operand.vmem [shape: bf16[3,128,256], index: 4, kind: input, shape index: {}]   ;;  %s8610_s5 = inlined_call_operand.vmem [shape: f32[128,1], index: 5, kind: input, shape index: {}]   ;;  %s8611_s6 = inlined_call_operand.vmem [shape: f32[2,128,5], index: 6, kind: output, shape index: {}]  }
   0x1 LB: > { %s4942_s22 = sadd.s32 4294967295, %s6724_s21   ;;  %p4946_p0 = scmp.ge.s32.totalorder %s6724_s21, 1  ;;  %s6724_s21 = sphi %s6764_s21, %s16_s21  }
   0x2   : > { %p212_p1 = scmp.lt.s32.totalorder %s6724_s21, 3 }
   0x4   : > { %p213_p2 = pnand %p4946_p0, %p212_p1 }
   0x5   : > { %v6448_v0 = vld [vmem:[%s8606_s1 + $0x40] sm:$0xff] (!%p213_p2)   ;;  %p242_p3 = scmp.lt.s32.totalorder (!%p213_p2), %s4942_s22, 1  ;;  %v6451_v3 = vld [vmem:[%s8606_s1 + $0x48] sm:$0xff] (!%p213_p2)   ;;  %v6454_v6 = vld [vmem:[%s8606_s1 + $0x50] sm:$0xff] (!%p213_p2)   ;;  %vm557_vm0 = vcmask (!%p213_p2), 523264   ;;  %vm944_vm1 = vcmask (!%p213_p2), 39936  }
   0x6   : > { %216 = sbr.rel (%p213_p2) target bundleno = 1474 (0x5c2), region = 44  ;;  %v6449_v1 = vld [vmem:[%s8606_s1 + $0x80] sm:$0xff] (!%p213_p2)   ;;  %5272 = vmatprep.subr.bf16.mxu0 (!%p213_p2), %v6448_v0  ;;  %v6452_v4 = vld [vmem:[%s8606_s1 + $0x88] sm:$0xff] (!%p213_p2)   ;;  %v6455_v7 = vld [vmem:[%s8606_s1 + $0x90] sm:$0xff] (!%p213_p2)   ;;  %vm3782_vm3 = vcmask (!%p213_p2), 1041408   ;;  %vm3783_vm4 = vcmask (!%p213_p2), 1042432  }
   0x7   : > { %v6450_v2 = vld [vmem:[%s8606_s1] sm:$0xff] (!%p213_p2)   ;;  %6230 = vmatprep.subr.bf16.mxu1 (!%p213_p2), %v6449_v1  ;;  %v6453_v5 = vld [vmem:[%s8606_s1 + $0x8] sm:$0xff] (!%p213_p2)   ;;  %v6456_v8 = vld [vmem:[%s8606_s1 + $0x10] sm:$0xff] (!%p213_p2)  }
   0x8   : > { %5273 = vmatpush3.bf16.msra.mxu0 (!%p213_p2), %v6450_v2  ;;  %6231 = vmatpush3.bf16.msra.mxu1 (!%p213_p2), %v6449_v1  ;;  %v6457_v9 = vld [vmem:[%s8606_s1 + $0x58] sm:$0xff] (!%p213_p2)   ;;  %v6460_v15 = vld [vmem:[%s8606_s1 + $0x60] sm:$0xff] (!%p213_p2)   ;;  %v6462_v20 = vld [vmem:[%s8606_s1 + $0x68] sm:$0xff] (!%p213_p2)  }
   0x9   : > { %5274 = vmatprep.subr.bf16.mxu0 (!%p213_p2), %v6451_v3  ;;  %6232 = vmatprep.subr.bf16.mxu1 (!%p213_p2), %v6452_v4  ;;  %v6458_v10 = vld [vmem:[%s8606_s1 + $0x98] sm:$0xff] (!%p213_p2)   ;;  %v6461_v19 = vld [vmem:[%s8606_s1 + $0x20] sm:$0xff] (!%p213_p2)   ;;  %v6463_v24 = vld [vmem:[%s8606_s1 + $0x28] sm:$0xff] (!%p213_p2)  }
   0xa   : > { %v6459_v11 = vld [vmem:[%s8606_s1 + $0x18] sm:$0xff] (!%p213_p2)   ;;  %v6464_v27 = vld [vmem:[%s8606_s1 + $0x70] sm:$0xff] (!%p213_p2)   ;;  %v6468_v48 = vld [vmem:[%s8606_s1 + $0x40] sm:$0xff] (!%p213_p2)  }
   0xb   : > { %v6465_v33 = vld [vmem:[%s8606_s1 + $0x30] sm:$0xff] (!%p213_p2)   ;;  %v6466_v36 = vld [vmem:[%s8606_s1 + $0x78] sm:$0xff] (!%p213_p2)   ;;  %v6469_v51 = vld [vmem:[%s8606_s1] sm:$0xff] (!%p213_p2)  }
   0xc   : > { %5275 = vmatpush3.bf16.msra.mxu0 (!%p213_p2), %v6453_v5  ;;  %6233 = vmatpush3.bf16.msra.mxu1 (!%p213_p2), %v6452_v4  ;;  %v6467_v37 = vld [vmem:[%s8606_s1 + $0x38] sm:$0xff] (!%p213_p2)   ;;  %v6470_v52 = vld [vmem:[%s8606_s1 + $0x48] sm:$0xff] (!%p213_p2)   ;;  %v6472_v62 = vld [vmem:[%s8606_s1 + $0x50] sm:$0xff] (!%p213_p2)  }
   0xd   : > { %s8613_s22 = smov (!%p242_p3, %s4942_s22), 1  ;;  %5276 = vmatprep.subr.bf16.mxu0 %v6454_v6  ;;  %6234 = vmatprep.subr.bf16.mxu1 %v6455_v7  ;;  %v6471_v54 = vld [vmem:[%s8606_s1 + $0x8] sm:$0xff]   ;;  %v6473_v1 = vld [vmem:[%s8606_s1 + $0x10] sm:$0xff]   ;;  %v6474_v4 = vld [vmem:[%s8606_s1 + $0x58] sm:$0xff]  }
   0xe   : > { %s6434_s11 = smul.u32 2304, %s8613_s22  ;;  %s5271_s17 = sshll.u32 %s8613_s22, 7 }
   0xf   : > { %s8554_s20 = scalar_lea.vmem %s8611_s6, %s5271_s17 }
  0x10   : > { %s6808_s24 = scalar_lea.vmem %s8605_s0, %s6434_s11  ;;  %5277 = vmatpush3.bf16.msra.mxu0 %v6456_v8  ;;  %6235 = vmatpush3.bf16.msra.mxu1 %v6455_v7 }
  0x11   : > { %v255_v12 = vld [vmem:[%s6808_s24 + $0x10] sm:$0xff]  ;;  %v258_v13 = vld [vmem:[%s6808_s24 + $0x28] sm:$0xff]  ;;  %5278 = vmatprep.subr.bf16.mxu0 %v6457_v9  ;;  %6236 = vmatprep.subr.bf16.mxu1 %v6458_v10  ;;  %v261_v16 = vld [vmem:[%s6808_s24 + $0x40] sm:$0xff] }
  0x12   : > { %v351_v14 = vpack.c.bf16 %v258_v13, %v255_v12  ;;  %v264_v17 = vld [vmem:[%s6808_s24 + $0x58] sm:$0xff]  ;;  %v267_v21 = vld [vmem:[%s6808_s24 + $0x70] sm:$0xff]  ;;  %v270_v22 = vld [vmem:[%s6808_s24 + $0x88] sm:$0xff] }
  0x13   : > { %v354_v18 = vpack.c.bf16 %v264_v17, %v261_v16  ;;  %v357_v23 = vpack.c.bf16 %v270_v22, %v267_v21  ;;  %v273_v25 = vld [vmem:[%s6808_s24 + $0xa0] sm:$0xff]  ;;  %v276_v26 = vld [vmem:[%s6808_s24 + $0xb8] sm:$0xff]  ;;  %v254_v28 = vld [vmem:[%s6808_s24 + $0x8] sm:$0xff] }
  0x14   : > { %6238 = vmatprep.mubr.msk.bf16.mxu1 %vm557_vm0, %v351_v14  ;;  %5279 = vmatpush3.bf16.msra.mxu0 %v6459_v11  ;;  %v360_v29 = vpack.c.bf16 %v276_v26, %v273_v25  ;;  %v257_v30 = vld [vmem:[%s6808_s24 + $0x20] sm:$0xff]  ;;  %v279_v31 = vld [vmem:[%s6808_s24 + $0xd0] sm:$0xff]  ;;  %v282_v32 = vld [vmem:[%s6808_s24 + $0xe8] sm:$0xff] }
  0x15   : > { %6237 = vmatpush3.bf16.msra.mxu1 %v6458_v10  ;;  %5280 = vmatprep.subr.bf16.mxu0 %v6460_v15  ;;  %v350_v34 = vpack.c.bf16 %v257_v30, %v254_v28  ;;  %v363_v35 = vpack.c.bf16 %v282_v32, %v279_v31  ;;  %v253_v38 = vld [vmem:[%s6808_s24] sm:$0xff]  ;;  %v256_v39 = vld [vmem:[%s6808_s24 + $0x18] sm:$0xff]  ;;  %v263_v43 = vld [vmem:[%s6808_s24 + $0x50] sm:$0xff] }
  0x16   : > { %v285_v40 = vld [vmem:[%s6808_s24 + $0x100] sm:$0xff]  ;;  %v288_v41 = vld [vmem:[%s6808_s24 + $0x118] sm:$0xff]  ;;  %v291_v44 = vld [vmem:[%s6808_s24 + $0x130] sm:$0xff]  ;;  %v349_v46 = vpack.c.bf16 %v256_v39, %v253_v38  ;;  %5404 = vmatprep.subr.bf16.mxu1 %v6468_v48 }
  0x17   : > { %638 = vmatprep.mubr.bf16.mxu0 %v350_v34  ;;  %v260_v42 = vld [vmem:[%s6808_s24 + $0x38] sm:$0xff]  ;;  %v294_v45 = vld [vmem:[%s6808_s24 + $0x148] sm:$0xff]  ;;  %v366_v47 = vpack.c.bf16 %v288_v41, %v285_v40  ;;  %v259_v53 = vld [vmem:[%s6808_s24 + $0x30] sm:$0xff] }
  0x18   : > { %6239 = vmatmul.mubr.msk.bf16.vlgmr.msra.gmra.mrb[0].mxu1 %vm557_vm0, %v354_v18  ;;  %5281 = vmatpush3.bf16.msra.mxu0 %v6461_v19  ;;  %v353_v49 = vpack.c.bf16 %v263_v43, %v260_v42  ;;  %v369_v50 = vpack.c.bf16 %v294_v45, %v291_v44  ;;  %v262_v55 = vld [vmem:[%s6808_s24 + $0x48] sm:$0xff]  ;;  %v297_v56 = vld [vmem:[%s6808_s24 + $0x160] sm:$0xff]  ;;  %v300_v57 = vld [vmem:[%s6808_s24 + $0x178] sm:$0xff] }
  0x19   : > { %6242 = vmatprep.mubr.msk.bf16.mxu1 %vm557_vm0, %v357_v23  ;;  %5282 = vmatprep.subr.bf16.mxu0 %v6462_v20  ;;  %v266_v58 = vld [vmem:[%s6808_s24 + $0x68] sm:$0xff]  ;;  %v269_v59 = vld [vmem:[%s6808_s24 + $0x80] sm:$0xff]  ;;  %v303_v60 = vld [vmem:[%s6808_s24 + $0x190] sm:$0xff]  ;;  %v352_v63 = vpack.c.bf16 %v262_v55, %v259_v53  ;;  %v372_v0 = vpack.c.bf16 %v300_v57, %v297_v56 }
  0x1a   : > { %5405 = vmatpush3.bf16.msra.mxu1 %v6469_v51  ;;  %v306_v61 = vld [vmem:[%s6808_s24 + $0x1a8] sm:$0xff]  ;;  %v356_v2 = vpack.c.bf16 %v269_v59, %v266_v58  ;;  %v265_v5 = vld [vmem:[%s6808_s24 + $0x60] sm:$0xff]  ;;  %v268_v6 = vld [vmem:[%s6808_s24 + $0x78] sm:$0xff] }
  0x1b   : > { %5406 = vmatprep.subr.bf16.mxu1 %v6470_v52  ;;  %v375_v3 = vpack.c.bf16 %v306_v61, %v303_v60  ;;  %v309_v7 = vld [vmem:[%s6808_s24 + $0x1c0] sm:$0xff]  ;;  %v312_v8 = vld [vmem:[%s6808_s24 + $0x1d8] sm:$0xff]  ;;  %v275_v11 = vld [vmem:[%s6808_s24 + $0xb0] sm:$0xff]  ;;  %v355_v16 = vpack.c.bf16 %v268_v6, %v265_v5 }
  0x1c   : > { %5283 = vmatpush3.bf16.msra.mxu0 %v6463_v24  ;;  %v6475_v9 = vld [vmem:[%s8606_s1 + $0x18] sm:$0xff]   ;;  %v315_v12 = vld [vmem:[%s6808_s24 + $0x1f0] sm:$0xff]  ;;  %v6476_v13 = vld [vmem:[%s8606_s1 + $0x60] sm:$0xff]   ;;  %v378_v17 = vpack.c.bf16 %v312_v8, %v309_v7 }
  0x1d   : > { %5284 = vmatprep.subr.bf16.mxu0 %v6464_v27  ;;  %v272_v10 = vld [vmem:[%s6808_s24 + $0x98] sm:$0xff]  ;;  %v318_v14 = vld [vmem:[%s6808_s24 + $0x208] sm:$0xff]  ;;  %v6477_v15 = vld [vmem:[%s8606_s1 + $0x20] sm:$0xff]  }
  0x1e   : > { %5407 = vmatpush3.bf16.msra.mxu1 %v6471_v54  ;;  %v359_v18 = vpack.c.bf16 %v275_v11, %v272_v10  ;;  %v381_v19 = vpack.c.bf16 %v318_v14, %v315_v12  ;;  %v6478_v20 = vld [vmem:[%s8606_s1 + $0x68] sm:$0xff]   ;;  %v271_v21 = vld [vmem:[%s6808_s24 + $0x90] sm:$0xff]  ;;  %v321_v23 = vld [vmem:[%s6808_s24 + $0x220] sm:$0xff] }
  0x1f   : > { %5408 = vmatprep.subr.bf16.mxu1 %v6472_v62  ;;  %v274_v22 = vld [vmem:[%s6808_s24 + $0xa8] sm:$0xff]  ;;  %v324_v24 = vld [vmem:[%s6808_s24 + $0x238] sm:$0xff]  ;;  %v281_v27 = vld [vmem:[%s6808_s24 + $0xe0] sm:$0xff] }
  0x20   : > { %6243 = vmatmul.mubr.msk.bf16.gmra.mrb[4].mxu1 %vm557_vm0, %v360_v29  ;;  %5285 = vmatpush3.bf16.msra.mxu0 %v6465_v33  ;;  %v6479_v25 = vld [vmem:[%s8606_s1 + $0x28] sm:$0xff]   ;;  %v6480_v28 = vld [vmem:[%s8606_s1 + $0x70] sm:$0xff]   ;;  %v358_v32 = vpack.c.bf16 %v274_v22, %v271_v21  ;;  %v384_v33 = vpack.c.bf16 %v324_v24, %v321_v23  ;;  %v277_v38 = vld [vmem:[%s6808_s24 + $0xc0] sm:$0xff] }
  0x21   : > { %6246 = vmatprep.mubr.msk.bf16.mxu1 %vm557_vm0, %v363_v35  ;;  %5286 = vmatprep.subr.bf16.mxu0 %v6466_v36  ;;  %v278_v26 = vld [vmem:[%s6808_s24 + $0xc8] sm:$0xff]  ;;  %v327_v29 = vld [vmem:[%s6808_s24 + $0x250] sm:$0xff]  ;;  %v6482_v36 = vld [vmem:[%s8606_s1 + $0x78] sm:$0xff]  }
  0x22   : > { %5409 = vmatpush3.bf16.msra.mxu1 %v6473_v1  ;;  %v330_v30 = vld [vmem:[%s6808_s24 + $0x268] sm:$0xff]  ;;  %v6481_v31 = vld [vmem:[%s8606_s1 + $0x30] sm:$0xff]   ;;  %v362_v34 = vpack.c.bf16 %v281_v27, %v278_v26  ;;  %v280_v39 = vld [vmem:[%s6808_s24 + $0xd8] sm:$0xff] }
  0x23   : > { %5410 = vmatprep.subr.bf16.mxu1 %v6474_v4  ;;  %v387_v35 = vpack.c.bf16 %v330_v30, %v327_v29  ;;  %v333_v40 = vld [vmem:[%s6808_s24 + $0x280] sm:$0xff]  ;;  %v336_v41 = vld [vmem:[%s6808_s24 + $0x298] sm:$0xff]  ;;  %v287_v43 = vld [vmem:[%s6808_s24 + $0x110] sm:$0xff] }
  0x24   : > { %5287 = vmatpush3.bf16.msra.mxu0 %v6467_v37  ;;  %v6483_v37 = vld [vmem:[%s8606_s1 + $0x38] sm:$0xff]   ;;  %v339_v44 = vld [vmem:[%s6808_s24 + $0x2b0] sm:$0xff]  ;;  %v342_v45 = vld [vmem:[%s6808_s24 + $0x2c8] sm:$0xff] }
  0x25   : > { %v284_v42 = vld [vmem:[%s6808_s24 + $0xf8] sm:$0xff]  ;;  %v286_v51 = vld [vmem:[%s6808_s24 + $0x108] sm:$0xff]  ;;  %v345_v52 = vld [vmem:[%s6808_s24 + $0x2e0] sm:$0xff] }
  0x26   : > { %5411 = vmatpush3.bf16.msra.mxu1 %v6475_v9  ;;  %v365_v48 = vpack.c.bf16 %v287_v43, %v284_v42  ;;  %v348_v53 = vld [vmem:[%s6808_s24 + $0x2f8] sm:$0xff]  ;;  %v290_v54 = vld [vmem:[%s6808_s24 + $0x128] sm:$0xff]  ;;  %v293_v55 = vld [vmem:[%s6808_s24 + $0x140] sm:$0xff] }
  0x27   : > { %639 = vmatmul.mubr.bf16.vlgmr.msra.gmra.mrb[0].mxu0 %v349_v46  ;;  %5412 = vmatprep.subr.bf16.mxu1 %v6476_v13  ;;  %v361_v46 = vpack.c.bf16 %v280_v39, %v277_v38  ;;  %v962_v56 = vld [vmem:[%s6808_s24 + $0x308] sm:$0xff]  ;;  %v965_v57 = vld [vmem:[%s6808_s24 + $0x320] sm:$0xff]  ;;  %v396_v59 = vpack.c.bf16 %v348_v53, %v345_v52  ;;  %v368_v60 = vpack.c.bf16 %v293_v55, %v290_v54  ;;  %v964_v1 = vld [vmem:[%s6808_s24 + $0x318] sm:$0xff] }
  0x28   : > { %6247 = vmatmul.mubr.msk.bf16.gmra.mrb[8].mxu1 %vm557_vm0, %v366_v47  ;;  %646 = vmatprep.mubr.bf16.mxu0 %v353_v49  ;;  %v390_v47 = vpack.c.bf16 %v336_v41, %v333_v40  ;;  %v393_v49 = vpack.c.bf16 %v342_v45, %v339_v44  ;;  %v1058_v61 = vpack.c.bf16 %v965_v57, %v962_v56  ;;  %v289_v62 = vld [vmem:[%s6808_s24 + $0x120] sm:$0xff]  ;;  %v968_v4 = vld [vmem:[%s6808_s24 + $0x338] sm:$0xff]  ;;  %v971_v5 = vld [vmem:[%s6808_s24 + $0x350] sm:$0xff] }
  0x29   : > { %6250 = vmatprep.mubr.msk.bf16.mxu1 %vm557_vm0, %v369_v50  ;;  %v283_v50 = vld [vmem:[%s6808_s24 + $0xf0] sm:$0xff]  ;;  %v6484_v8 = vld [vmem:[%s8606_s1 + $0x80] sm:$0xff]   ;;  %v1061_v10 = vpack.c.bf16 %v971_v5, %v968_v4  ;;  %v6485_v11 = vld [vmem:[%s8606_s1 + $0x88] sm:$0xff]  }
  0x2a   : > { %5413 = vmatpush3.bf16.msra.mxu1 %v6477_v15  ;;  %v364_v58 = vpack.c.bf16 %v286_v51, %v283_v50  ;;  %6270 = vmatprep.subr.bf16.mxu0 %v6484_v8  ;;  %v6486_v12 = vld [vmem:[%s8606_s1 + $0x40] sm:$0xff]   ;;  %v295_v13 = vld [vmem:[%s6808_s24 + $0x150] sm:$0xff]  ;;  %v298_v15 = vld [vmem:[%s6808_s24 + $0x168] sm:$0xff] }
  0x2b   : > { %5414 = vmatprep.subr.bf16.mxu1 %v6478_v20  ;;  %6271 = vmatpush3.bf16.msra.mxu0 %v6484_v8  ;;  %v6487_v14 = vld [vmem:[%s8606_s1] sm:$0xff]   ;;  %v974_v20 = vld [vmem:[%s6808_s24 + $0x368] sm:$0xff]  ;;  %v6488_v22 = vld [vmem:[%s8606_s1 + $0x90] sm:$0xff]   ;;  %v370_v23 = vpack.c.bf16 %v298_v15, %v295_v13 }
  0x2c   : > { %v977_v21 = vld [vmem:[%s6808_s24 + $0x380] sm:$0xff]  ;;  %6272 = vmatprep.subr.bf16.mxu0 %v6485_v11  ;;  %v6489_v27 = vld [vmem:[%s8606_s1 + $0x98] sm:$0xff]   ;;  %v6490_v30 = vld [vmem:[%s8606_s1 + $0x48] sm:$0xff]  }
  0x2d   : > { %v1064_v26 = vpack.c.bf16 %v977_v21, %v974_v20  ;;  %v304_v29 = vld [vmem:[%s6808_s24 + $0x198] sm:$0xff]  ;;  %v6492_v42 = vld [vmem:[%s8606_s1 + $0x50] sm:$0xff]   ;;  %v310_v44 = vld [vmem:[%s6808_s24 + $0x1c8] sm:$0xff] }
  0x2e   : > { %5415 = vmatpush3.bf16.msra.mxu1 %v6479_v25  ;;  %v307_v43 = vld [vmem:[%s6808_s24 + $0x1b0] sm:$0xff]  ;;  %v986_v50 = vld [vmem:[%s6808_s24 + $0x3c8] sm:$0xff]  ;;  %v989_v51 = vld [vmem:[%s6808_s24 + $0x3e0] sm:$0xff] }
  0x2f   : > { %647 = vmatmul.mubr.bf16.gmra.mrb[4].mxu0 %v352_v63  ;;  %5416 = vmatprep.subr.bf16.mxu1 %v6480_v28  ;;  %v292_v63 = vld [vmem:[%s6808_s24 + $0x138] sm:$0xff]  ;;  %v301_v28 = vld [vmem:[%s6808_s24 + $0x180] sm:$0xff]  ;;  %v6493_v45 = vld [vmem:[%s8606_s1 + $0x10] sm:$0xff]   ;;  %v376_v53 = vpack.c.bf16 %v310_v44, %v307_v43  ;;  %v1070_v57 = vpack.c.bf16 %v989_v51, %v986_v50 }
  0x30   : > { %6251 = vmatmul.mubr.msk.bf16.gmra.mrb[12].mxu1 %vm557_vm0, %v372_v0  ;;  %654 = vmatprep.mubr.bf16.mxu0 %v356_v2  ;;  %v961_v0 = vld [vmem:[%s6808_s24 + $0x300] sm:$0xff]  ;;  %v296_v2 = vld [vmem:[%s6808_s24 + $0x158] sm:$0xff]  ;;  %v367_v6 = vpack.c.bf16 %v292_v63, %v289_v62  ;;  %v373_v38 = vpack.c.bf16 %v304_v29, %v301_v28  ;;  %v323_v63 = vld [vmem:[%s6808_s24 + $0x230] sm:$0xff] }
  0x31   : > { %6254 = vmatprep.mubr.msk.bf16.mxu1 %vm557_vm0, %v375_v3  ;;  %v299_v3 = vld [vmem:[%s6808_s24 + $0x170] sm:$0xff]  ;;  %v1057_v7 = vpack.c.bf16 %v964_v1, %v961_v0  ;;  %6273 = vmatpush3.bf16.msra.mxu0 %v6485_v11  ;;  %v6494_v52 = vld [vmem:[%s8606_s1 + $0x58] sm:$0xff]   ;;  %v6498_v4 = vld [vmem:[%s8606_s1 + $0x68] sm:$0xff]  }
  0x32   : > { %5417 = vmatpush3.bf16.msra.mxu1 %v6481_v31  ;;  %v371_v9 = vpack.c.bf16 %v299_v3, %v296_v2  ;;  %6274 = vmatprep.subr.bf16.mxu0 %v6488_v22  ;;  %v6491_v31 = vld [vmem:[%s8606_s1 + $0x8] sm:$0xff]   ;;  %v6495_v55 = vld [vmem:[%s8606_s1 + $0x18] sm:$0xff]   ;;  %v995_v1 = vld [vmem:[%s6808_s24 + $0x410] sm:$0xff] }
  0x33   : > { %5418 = vmatprep.subr.bf16.mxu1 %v6482_v36  ;;  %v980_v36 = vld [vmem:[%s6808_s24 + $0x398] sm:$0xff]  ;;  %v6496_v2 = vld [vmem:[%s8606_s1 + $0x60] sm:$0xff]   ;;  %v6499_v5 = vld [vmem:[%s8606_s1 + $0x28] sm:$0xff]  }
  0x34   : > { %v320_v62 = vld [vmem:[%s6808_s24 + $0x218] sm:$0xff]  ;;  %v6497_v3 = vld [vmem:[%s8606_s1 + $0x20] sm:$0xff]   ;;  %v322_v11 = vld [vmem:[%s6808_s24 + $0x228] sm:$0xff] }
  0x35   : > { %6275 = vmatpush3.bf16.msra.mxu0 %v6488_v22  ;;  %v992_v0 = vld [vmem:[%s6808_s24 + $0x3f8] sm:$0xff]  ;;  %v383_v8 = vpack.c.bf16 %v323_v63, %v320_v62  ;;  %v994_v13 = vld [vmem:[%s6808_s24 + $0x408] sm:$0xff]  ;;  %v1001_v20 = vld [vmem:[%s6808_s24 + $0x440] sm:$0xff] }
  0x36   : > { %5419 = vmatpush3.bf16.msra.mxu1 %v6483_v37  ;;  %v983_v37 = vld [vmem:[%s6808_s24 + $0x3b0] sm:$0xff]  ;;  %6276 = vmatprep.subr.bf16.mxu0 %v6489_v27  ;;  %v326_v15 = vld [vmem:[%s6808_s24 + $0x248] sm:$0xff]  ;;  %v6503_v21 = vld [vmem:[%s8606_s1 + $0x38] sm:$0xff]  }
  0x37   : > { %655 = vmatmul.mubr.bf16.gmra.mrb[8].mxu0 %v355_v16  ;;  %v967_v16 = vld [vmem:[%s6808_s24 + $0x330] sm:$0xff]  ;;  %5536 = vmatprep.subr.bf16.mxu1 %v6486_v12  ;;  %v1067_v41 = vpack.c.bf16 %v983_v37, %v980_v36  ;;  %v328_v28 = vld [vmem:[%s6808_s24 + $0x258] sm:$0xff]  ;;  %v997_v29 = vld [vmem:[%s6808_s24 + $0x420] sm:$0xff] }
  0x38   : > { %6255 = vmatmul.mubr.msk.bf16.gmra.mrb[16].mxu1 %vm557_vm0, %v378_v17  ;;  %662 = vmatprep.mubr.bf16.mxu0 %v359_v18  ;;  %v970_v17 = vld [vmem:[%s6808_s24 + $0x348] sm:$0xff]  ;;  %v991_v12 = vld [vmem:[%s6808_s24 + $0x3f0] sm:$0xff]  ;;  %v341_v44 = vld [vmem:[%s6808_s24 + $0x2c0] sm:$0xff] }
  0x39   : > { %6258 = vmatprep.mubr.msk.bf16.mxu1 %vm557_vm0, %v381_v19  ;;  %v302_v18 = vld [vmem:[%s6808_s24 + $0x188] sm:$0xff]  ;;  %v305_v19 = vld [vmem:[%s6808_s24 + $0x1a0] sm:$0xff]  ;;  %v1060_v24 = vpack.c.bf16 %v970_v17, %v967_v16  ;;  %6277 = vmatpush3.bf16.msra.mxu0 %v6489_v27  ;;  %v6501_v16 = vld [vmem:[%s8606_s1 + $0x30] sm:$0xff]  }
  0x3a   : > { %v374_v25 = vpack.c.bf16 %v305_v19, %v302_v18  ;;  %v6502_v17 = vld [vmem:[%s8606_s1 + $0x78] sm:$0xff]   ;;  %v329_v18 = vld [vmem:[%s6808_s24 + $0x260] sm:$0xff]  ;;  %v998_v19 = vld [vmem:[%s6808_s24 + $0x428] sm:$0xff] }
  0x3b   : > { %v325_v27 = vld [vmem:[%s6808_s24 + $0x240] sm:$0xff]  ;;  %v338_v43 = vld [vmem:[%s6808_s24 + $0x2a8] sm:$0xff]  ;;  %v343_v63 = vld [vmem:[%s6808_s24 + $0x2d0] sm:$0xff] }
  0x3c   : > { %v337_v51 = vld [vmem:[%s6808_s24 + $0x2a0] sm:$0xff] }
  0x3f   : > { %663 = vmatmul.mubr.bf16.gmra.mrb[12].mxu0 %v358_v32  ;;  %v973_v32 = vld [vmem:[%s6808_s24 + $0x360] sm:$0xff] }
  0x40   : > { %6259 = vmatmul.mubr.msk.bf16.gmra.mrb[20].mxu1 %vm557_vm0, %v384_v33  ;;  %670 = vmatprep.mubr.bf16.mxu0 %v362_v34  ;;  %v976_v33 = vld [vmem:[%s6808_s24 + $0x378] sm:$0xff] }
  0x41   : > { %6262 = vmatprep.mubr.msk.bf16.mxu1 %vm557_vm0, %v387_v35  ;;  %v308_v34 = vld [vmem:[%s6808_s24 + $0x1b8] sm:$0xff]  ;;  %v311_v35 = vld [vmem:[%s6808_s24 + $0x1d0] sm:$0xff]  ;;  %v1063_v39 = vpack.c.bf16 %v976_v33, %v973_v32 }
  0x42   : > { %v377_v40 = vpack.c.bf16 %v311_v35, %v308_v34  ;;  %v335_v32 = vld [vmem:[%s6808_s24 + $0x290] sm:$0xff]  ;;  %v1004_v33 = vld [vmem:[%s6808_s24 + $0x458] sm:$0xff]  ;;  %v385_v35 = vpack.c.bf16 %v328_v28, %v325_v27  ;;  %v6505_v28 = vld [vmem:[%s8606_s1 + $0x88] sm:$0xff]  }
  0x43   : > { %v1007_v34 = vld [vmem:[%s6808_s24 + $0x470] sm:$0xff]  ;;  %v984_v27 = vld [vmem:[%s6808_s24 + $0x3b8] sm:$0xff] }
  0x47   : > { %671 = vmatmul.mubr.bf16.gmra.mrb[16].mxu0 %v361_v46  ;;  %v979_v46 = vld [vmem:[%s6808_s24 + $0x390] sm:$0xff] }
  0x48   : > { %6263 = vmatmul.mubr.msk.bf16.gmra.mrb[24].mxu1 %vm557_vm0, %v390_v47  ;;  %678 = vmatprep.mubr.bf16.mxu0 %v365_v48  ;;  %v982_v47 = vld [vmem:[%s6808_s24 + $0x3a8] sm:$0xff] }
  0x49   : > { %6266 = vmatprep.mubr.msk.bf16.mxu1 %vm557_vm0, %v393_v49  ;;  %v314_v48 = vld [vmem:[%s6808_s24 + $0x1e8] sm:$0xff]  ;;  %v317_v49 = vld [vmem:[%s6808_s24 + $0x200] sm:$0xff]  ;;  %v1066_v54 = vpack.c.bf16 %v982_v47, %v979_v46 }
  0x4a   : > { %v380_v56 = vpack.c.bf16 %v317_v49, %v314_v48  ;;  %v1013_v46 = vld [vmem:[%s6808_s24 + $0x4a0] sm:$0xff]  ;;  %v392_v49 = vpack.c.bf16 %v341_v44, %v338_v43  ;;  %v1043_v43 = vld [vmem:[%s6808_s24 + $0x590] sm:$0xff] }
  0x4b   : > { %v999_v44 = vld [vmem:[%s6808_s24 + $0x430] sm:$0xff] }
  0x4f   : > { %679 = vmatmul.mubr.bf16.gmra.mrb[20].mxu0 %v364_v58  ;;  %v313_v58 = vld [vmem:[%s6808_s24 + $0x1e0] sm:$0xff] }
  0x50   : > { %6267 = vmatmul.mubr.msk.bf16.gmra.mrb[28].mxu1 %vm557_vm0, %v396_v59  ;;  %686 = vmatprep.mubr.bf16.mxu0 %v368_v60  ;;  %v316_v59 = vld [vmem:[%s6808_s24 + $0x1f8] sm:$0xff]  ;;  %v985_v60 = vld [vmem:[%s6808_s24 + $0x3c0] sm:$0xff] }
  0x51   : > { %1345 = vmatprep.mubr.bf16.mxu1 %v1058_v61  ;;  %v988_v61 = vld [vmem:[%s6808_s24 + $0x3d8] sm:$0xff] }
  0x57   : > { %687 = vmatmul.mubr.bf16.gmra.mrb[24].mxu0 %v367_v6  ;;  %v379_v6 = vpack.c.bf16 %v316_v59, %v313_v58  ;;  %v1019_v58 = vld [vmem:[%s6808_s24 + $0x4d0] sm:$0xff] }
  0x58   : > { %1346 = vmatmul.mubr.bf16.vlgmr.msra.gmra.mrb[32].mxu1 %v1057_v7  ;;  %694 = vmatprep.mubr.bf16.mxu0 %v371_v9  ;;  %v1069_v7 = vpack.c.bf16 %v988_v61, %v985_v60  ;;  %v1073_v9 = vpack.c.bf16 %v995_v1, %v992_v0  ;;  %v346_v0 = vld [vmem:[%s6808_s24 + $0x2e8] sm:$0xff]  ;;  %v1015_v1 = vld [vmem:[%s6808_s24 + $0x4b0] sm:$0xff] }
  0x59   : > { %1353 = vmatprep.mubr.bf16.mxu1 %v1061_v10  ;;  %5537 = vmatpush3.bf16.msra.mxu1 %v6487_v14  ;;  %v319_v10 = vld [vmem:[%s6808_s24 + $0x210] sm:$0xff] }
  0x5a   : > { %5538 = vmatprep.subr.bf16.mxu1 %v6490_v30  ;;  %v6500_v14 = vld [vmem:[%s8606_s1 + $0x70] sm:$0xff]   ;;  %v382_v22 = vpack.c.bf16 %v322_v11, %v319_v10  ;;  %v1000_v30 = vld [vmem:[%s6808_s24 + $0x438] sm:$0xff]  ;;  %v1021_v11 = vld [vmem:[%s6808_s24 + $0x4e0] sm:$0xff] }
  0x5b   : > { %v1075_v36 = vpack.c.bf16 %v1000_v30, %v997_v29  ;;  %v1034_v29 = vld [vmem:[%s6808_s24 + $0x548] sm:$0xff]  ;;  %v1037_v30 = vld [vmem:[%s6808_s24 + $0x560] sm:$0xff] }
  0x5d   : > { %5539 = vmatpush3.bf16.msra.mxu1 %v6491_v31  ;;  %v332_v31 = vld [vmem:[%s6808_s24 + $0x278] sm:$0xff] }
  0x5e   : > { %5540 = vmatprep.subr.bf16.mxu1 %v6492_v42  ;;  %v389_v37 = vpack.c.bf16 %v335_v32, %v332_v31  ;;  %v1006_v42 = vld [vmem:[%s6808_s24 + $0x468] sm:$0xff]  ;;  %v987_v31 = vld [vmem:[%s6808_s24 + $0x3d0] sm:$0xff] }
  0x5f   : > { %695 = vmatmul.mubr.bf16.gmra.mrb[28].mxu0 %v370_v23  ;;  %v1072_v23 = vpack.c.bf16 %v994_v13, %v991_v12  ;;  %v1024_v12 = vld [vmem:[%s6808_s24 + $0x4f8] sm:$0xff]  ;;  %v969_v13 = vld [vmem:[%s6808_s24 + $0x340] sm:$0xff]  ;;  %v990_v32 = vld [vmem:[%s6808_s24 + $0x3e8] sm:$0xff] }
  0x60   : > { %1354 = vmatmul.mubr.bf16.gmra.mrb[36].mxu1 %v1060_v24  ;;  %702 = vmatprep.mubr.bf16.mxu0 %v374_v25  ;;  %v386_v24 = vpack.c.bf16 %v329_v18, %v326_v15  ;;  %v1076_v25 = vpack.c.bf16 %v1001_v20, %v998_v19  ;;  %v1028_v15 = vld [vmem:[%s6808_s24 + $0x518] sm:$0xff]  ;;  %v978_v18 = vld [vmem:[%s6808_s24 + $0x388] sm:$0xff]  ;;  %v1087_v19 = vpack.c.bf16 %v1024_v12, %v1021_v11  ;;  %v1029_v12 = vld [vmem:[%s6808_s24 + $0x520] sm:$0xff] }
  0x61   : > { %1361 = vmatprep.mubr.bf16.mxu1 %v1064_v26  ;;  %5541 = vmatpush3.bf16.msra.mxu1 %v6493_v45  ;;  %v7075_v26 = vld [vmem:[%s8606_s1 + $0x80] sm:$0xff]   ;;  %v1010_v45 = vld [vmem:[%s6808_s24 + $0x488] sm:$0xff] }
  0x62   : > { %5542 = vmatprep.subr.bf16.mxu1 %v6494_v52  ;;  %6310 = vmatprep.subr.bf16.mxu0 %v7075_v26  ;;  %v1082_v50 = vpack.c.bf16 %v1013_v46, %v1010_v45  ;;  %v340_v52 = vld [vmem:[%s6808_s24 + $0x2b8] sm:$0xff]  ;;  %v1002_v45 = vld [vmem:[%s6808_s24 + $0x448] sm:$0xff] }
  0x63   : > { %v391_v59 = vpack.c.bf16 %v340_v52, %v337_v51  ;;  %v1042_v51 = vld [vmem:[%s6808_s24 + $0x588] sm:$0xff]  ;;  %v1005_v52 = vld [vmem:[%s6808_s24 + $0x460] sm:$0xff] }
  0x64   : > { %v1054_v11 = vld [vmem:[%s6808_s24 + $0x5e8] sm:$0xff] }
  0x65   : > { %5543 = vmatpush3.bf16.msra.mxu1 %v6495_v55  ;;  %v344_v55 = vld [vmem:[%s6808_s24 + $0x2d8] sm:$0xff] }
  0x66   : > { %5544 = vmatprep.subr.bf16.mxu1 %v6496_v2  ;;  %v1018_v2 = vld [vmem:[%s6808_s24 + $0x4c8] sm:$0xff] }
  0x67   : > { %703 = vmatmul.mubr.bf16.gmra.mrb[32].mxu0 %v373_v38  ;;  %v1079_v38 = vpack.c.bf16 %v1007_v34, %v1004_v33  ;;  %v6506_v33 = vld [vmem:[%s8606_s1 + $0x90] sm:$0xff]  }
  0x68   : > { %1362 = vmatmul.mubr.bf16.gmra.mrb[40].mxu1 %v1063_v39  ;;  %710 = vmatprep.mubr.bf16.mxu0 %v377_v40  ;;  %v331_v39 = vld [vmem:[%s6808_s24 + $0x270] sm:$0xff]  ;;  %v334_v40 = vld [vmem:[%s6808_s24 + $0x288] sm:$0xff] }
  0x69   : > { %1369 = vmatprep.mubr.bf16.mxu1 %v1067_v41  ;;  %5545 = vmatpush3.bf16.msra.mxu1 %v6497_v3  ;;  %v1003_v41 = vld [vmem:[%s6808_s24 + $0x450] sm:$0xff]  ;;  %v388_v47 = vpack.c.bf16 %v334_v40, %v331_v39  ;;  %v1022_v3 = vld [vmem:[%s6808_s24 + $0x4e8] sm:$0xff]  ;;  %v1033_v39 = vld [vmem:[%s6808_s24 + $0x540] sm:$0xff] }
  0x6a   : > { %5546 = vmatprep.subr.bf16.mxu1 %v6498_v4  ;;  %v1078_v48 = vpack.c.bf16 %v1006_v42, %v1003_v41  ;;  %v1025_v4 = vld [vmem:[%s6808_s24 + $0x500] sm:$0xff]  ;;  %v1036_v40 = vld [vmem:[%s6808_s24 + $0x558] sm:$0xff] }
  0x6b   : > { %v993_v41 = vld [vmem:[%s6808_s24 + $0x400] sm:$0xff]  ;;  %v996_v42 = vld [vmem:[%s6808_s24 + $0x418] sm:$0xff]  ;;  %v1093_v46 = vpack.c.bf16 %v1036_v40, %v1033_v39  ;;  %v1680_v39 = vld [vmem:[%s6808_s24 + $0x668] sm:$0xff] }
  0x6c   : > { %v1683_v40 = vld [vmem:[%s6808_s24 + $0x680] sm:$0xff] }
  0x6d   : > { %5547 = vmatpush3.bf16.msra.mxu1 %v6499_v5  ;;  %v963_v5 = vld [vmem:[%s6808_s24 + $0x310] sm:$0xff] }
  0x6e   : > { %5548 = vmatprep.subr.bf16.mxu1 %v6500_v14  ;;  %v972_v14 = vld [vmem:[%s6808_s24 + $0x358] sm:$0xff] }
  0x6f   : > { %711 = vmatmul.mubr.bf16.gmra.mrb[36].mxu0 %v376_v53  ;;  %v1009_v53 = vld [vmem:[%s6808_s24 + $0x480] sm:$0xff]  ;;  %v1062_v20 = vpack.c.bf16 %v972_v14, %v969_v13  ;;  %v1032_v13 = vld [vmem:[%s6808_s24 + $0x538] sm:$0xff]  ;;  %v1035_v14 = vld [vmem:[%s6808_s24 + $0x550] sm:$0xff] }
  0x70   : > { %1370 = vmatmul.mubr.bf16.gmra.mrb[44].mxu1 %v1066_v54  ;;  %718 = vmatprep.mubr.bf16.mxu0 %v380_v56  ;;  %v1012_v54 = vld [vmem:[%s6808_s24 + $0x498] sm:$0xff]  ;;  %v347_v56 = vld [vmem:[%s6808_s24 + $0x2f0] sm:$0xff] }
  0x71   : > { %1377 = vmatprep.mubr.bf16.mxu1 %v1070_v57  ;;  %5549 = vmatpush3.bf16.msra.mxu1 %v6501_v16  ;;  %v1016_v57 = vld [vmem:[%s6808_s24 + $0x4b8] sm:$0xff]  ;;  %v1081_v60 = vpack.c.bf16 %v1012_v54, %v1009_v53  ;;  %v395_v61 = vpack.c.bf16 %v347_v56, %v344_v55  ;;  %v1031_v16 = vld [vmem:[%s6808_s24 + $0x530] sm:$0xff]  ;;  %v1046_v54 = vld [vmem:[%s6808_s24 + $0x5a8] sm:$0xff] }
  0x72   : > { %5550 = vmatprep.subr.bf16.mxu1 %v6502_v17  ;;  %v1085_v62 = vpack.c.bf16 %v1019_v58, %v1016_v57  ;;  %v975_v17 = vld [vmem:[%s6808_s24 + $0x370] sm:$0xff]  ;;  %v1008_v53 = vld [vmem:[%s6808_s24 + $0x478] sm:$0xff]  ;;  %v1049_v55 = vld [vmem:[%s6808_s24 + $0x5c0] sm:$0xff] }
  0x73   : > { %v1011_v56 = vld [vmem:[%s6808_s24 + $0x490] sm:$0xff]  ;;  %v1014_v57 = vld [vmem:[%s6808_s24 + $0x4a8] sm:$0xff] }
  0x75   : > { %5551 = vmatpush3.bf16.msra.mxu1 %v6503_v21  ;;  %v1091_v21 = vpack.c.bf16 %v1031_v16, %v1028_v15  ;;  %v1038_v15 = vld [vmem:[%s6808_s24 + $0x568] sm:$0xff] }
  0x76   : > { %v1668_v16 = vld [vmem:[%s6808_s24 + $0x608] sm:$0xff] }
  0x77   : > { %719 = vmatmul.mubr.bf16.gmra.mrb[40].mxu0 %v379_v6  ;;  %v966_v6 = vld [vmem:[%s6808_s24 + $0x328] sm:$0xff] }
  0x78   : > { %1378 = vmatmul.mubr.bf16.gmra.mrb[48].mxu1 %v1069_v7  ;;  %726 = vmatprep.mubr.bf16.mxu0 %v383_v8  ;;  %v394_v7 = vpack.c.bf16 %v346_v0, %v343_v63  ;;  %v1084_v8 = vpack.c.bf16 %v1018_v2, %v1015_v1  ;;  %v1059_v10 = vpack.c.bf16 %v966_v6, %v963_v5  ;;  %v1048_v63 = vld [vmem:[%s6808_s24 + $0x5b8] sm:$0xff]  ;;  %v1017_v0 = vld [vmem:[%s6808_s24 + $0x4c0] sm:$0xff]  ;;  %v1026_v5 = vld [vmem:[%s6808_s24 + $0x508] sm:$0xff] }
  0x79   : > { %1385 = vmatprep.mubr.bf16.mxu1 %v1073_v9  ;;  %v1088_v9 = vpack.c.bf16 %v1025_v4, %v1022_v3  ;;  %v1020_v1 = vld [vmem:[%s6808_s24 + $0x4d8] sm:$0xff]  ;;  %v1055_v3 = vld [vmem:[%s6808_s24 + $0x5f0] sm:$0xff] }
  0x7a   : > { %v1052_v2 = vld [vmem:[%s6808_s24 + $0x5d8] sm:$0xff]  ;;  %v1023_v4 = vld [vmem:[%s6808_s24 + $0x4f0] sm:$0xff] }
  0x7f   : > { %727 = vmatmul.mubr.bf16.gmra.mrb[44].mxu0 %v382_v22  ;;  %v1065_v22 = vpack.c.bf16 %v978_v18, %v975_v17  ;;  %v1671_v17 = vld [vmem:[%s6808_s24 + $0x620] sm:$0xff] }
  0x80   : > { %1386 = vmatmul.mubr.bf16.gmra.mrb[52].mxu1 %v1072_v23  ;;  %734 = vmatprep.mubr.bf16.mxu0 %v386_v24  ;;  %v1027_v23 = vld [vmem:[%s6808_s24 + $0x510] sm:$0xff]  ;;  %v1030_v24 = vld [vmem:[%s6808_s24 + $0x528] sm:$0xff] }
  0x81   : > { %1393 = vmatprep.mubr.bf16.mxu1 %v1076_v25  ;;  %v981_v25 = vld [vmem:[%s6808_s24 + $0x3a0] sm:$0xff]  ;;  %v1090_v34 = vpack.c.bf16 %v1030_v24, %v1027_v23  ;;  %v1044_v23 = vld [vmem:[%s6808_s24 + $0x598] sm:$0xff] }
  0x82   : > { %v1667_v24 = vld [vmem:[%s6808_s24 + $0x600] sm:$0xff] }
  0x87   : > { %735 = vmatmul.mubr.bf16.gmra.mrb[48].mxu0 %v385_v35  ;;  %v1068_v35 = vpack.c.bf16 %v984_v27, %v981_v25  ;;  %v1670_v25 = vld [vmem:[%s6808_s24 + $0x618] sm:$0xff]  ;;  %v1047_v27 = vld [vmem:[%s6808_s24 + $0x5b0] sm:$0xff] }
  0x88   : > { %1394 = vmatmul.mubr.bf16.gmra.mrb[56].mxu1 %v1075_v36  ;;  %742 = vmatprep.mubr.bf16.mxu0 %v389_v37  ;;  %v1094_v36 = vpack.c.bf16 %v1037_v30, %v1034_v29  ;;  %v1071_v37 = vpack.c.bf16 %v990_v32, %v987_v31  ;;  %v1674_v29 = vld [vmem:[%s6808_s24 + $0x638] sm:$0xff]  ;;  %v1677_v30 = vld [vmem:[%s6808_s24 + $0x650] sm:$0xff]  ;;  %v1763_v32 = vpack.c.bf16 %v1670_v25, %v1667_v24 }
  0x89   : > { %1401 = vmatprep.mubr.bf16.mxu1 %v1079_v38  ;;  %v6507_v38 = vld [vmem:[%s8606_s1 + $0x98] sm:$0xff]  }
  0x8f   : > { %743 = vmatmul.mubr.bf16.gmra.mrb[52].mxu0 %v388_v47  ;;  %v1074_v47 = vpack.c.bf16 %v996_v42, %v993_v41  ;;  %v1669_v41 = vld [vmem:[%s6808_s24 + $0x610] sm:$0xff]  ;;  %v1672_v42 = vld [vmem:[%s6808_s24 + $0x628] sm:$0xff] }
  0x90   : > { %1402 = vmatmul.mubr.bf16.gmra.mrb[60].mxu1 %v1078_v48  ;;  %750 = vmatprep.mubr.bf16.mxu0 %v392_v49  ;;  %v1077_v49 = vpack.c.bf16 %v1002_v45, %v999_v44  ;;  %v1770_v44 = vpack.c.bf16 %v1683_v40, %v1680_v39  ;;  %v1765_v45 = vpack.c.bf16 %v1672_v42, %v1669_v41 }
  0x91   : > { %1409 = vmatprep.mubr.bf16.mxu1 %v1082_v50  ;;  %v1039_v50 = vld [vmem:[%s6808_s24 + $0x570] sm:$0xff] }
  0x92   : > { %v1096_v58 = vpack.c.bf16 %v1042_v51, %v1039_v50  ;;  %v1686_v50 = vld [vmem:[%s6808_s24 + $0x698] sm:$0xff]  ;;  %v1689_v51 = vld [vmem:[%s6808_s24 + $0x6b0] sm:$0xff] }
  0x97   : > { %751 = vmatmul.mubr.bf16.gmra.mrb[56].mxu0 %v391_v59  ;;  %v1080_v59 = vpack.c.bf16 %v1008_v53, %v1005_v52  ;;  %v1681_v52 = vld [vmem:[%s6808_s24 + $0x670] sm:$0xff]  ;;  %v1684_v53 = vld [vmem:[%s6808_s24 + $0x688] sm:$0xff] }
  0x98   : > { %1410 = vmatmul.mubr.bf16.gmra.mrb[64].mxu1 %v1081_v60  ;;  %758 = vmatprep.mubr.bf16.mxu0 %v395_v61  ;;  %v1100_v60 = vpack.c.bf16 %v1049_v55, %v1046_v54  ;;  %v1083_v61 = vpack.c.bf16 %v1014_v57, %v1011_v56  ;;  %v1773_v56 = vpack.c.bf16 %v1689_v51, %v1686_v50  ;;  %v1706_v50 = vld [vmem:[%s6808_s24 + $0x738] sm:$0xff] }
  0x99   : > { %1417 = vmatprep.mubr.bf16.mxu1 %v1085_v62  ;;  %v1045_v62 = vld [vmem:[%s6808_s24 + $0x5a0] sm:$0xff]  ;;  %v1771_v57 = vpack.c.bf16 %v1684_v53, %v1681_v52  ;;  %v1710_v52 = vld [vmem:[%s6808_s24 + $0x758] sm:$0xff] }
  0x9a   : > { %v1099_v6 = vpack.c.bf16 %v1048_v63, %v1045_v62  ;;  %v1692_v62 = vld [vmem:[%s6808_s24 + $0x6c8] sm:$0xff]  ;;  %v1695_v63 = vld [vmem:[%s6808_s24 + $0x6e0] sm:$0xff] }
  0x9b   : > { %v1723_v53 = vld [vmem:[%s6808_s24 + $0x7c0] sm:$0xff] }
  0x9f   : > { %759 = vmatmul.mubr.bf16.gmra.mrb[60].mxu0 %v394_v7  ;;  %v1086_v7 = vpack.c.bf16 %v1020_v1, %v1017_v0  ;;  %v1693_v0 = vld [vmem:[%s6808_s24 + $0x6d0] sm:$0xff]  ;;  %v1696_v1 = vld [vmem:[%s6808_s24 + $0x6e8] sm:$0xff] }
  0xa0   : > { %1418 = vmatmul.mubr.bf16.gmra.mrb[68].mxu1 %v1084_v8  ;;  %6278 = vmatprep.mubr.msk.bf16.mxu0 %vm557_vm0, %v1059_v10  ;;  %v1103_v8 = vpack.c.bf16 %v1055_v3, %v1052_v2  ;;  %v1051_v10 = vld [vmem:[%s6808_s24 + $0x5d0] sm:$0xff] }
  0xa1   : > { %1425 = vmatprep.mubr.bf16.mxu1 %v1088_v9  ;;  %v1089_v9 = vpack.c.bf16 %v1026_v5, %v1023_v4  ;;  %v1102_v18 = vpack.c.bf16 %v1054_v11, %v1051_v10  ;;  %v1691_v10 = vld [vmem:[%s6808_s24 + $0x6c0] sm:$0xff]  ;;  %v1694_v11 = vld [vmem:[%s6808_s24 + $0x6d8] sm:$0xff] }
  0xa7   : > { %6279 = vmatmul.mubr.msk.bf16.vlgmr.msra.gmra.mrb[64].mxu0 %vm557_vm0, %v1062_v20  ;;  %v1095_v20 = vpack.c.bf16 %v1038_v15, %v1035_v14  ;;  %v1698_v14 = vld [vmem:[%s6808_s24 + $0x6f8] sm:$0xff]  ;;  %v1701_v15 = vld [vmem:[%s6808_s24 + $0x710] sm:$0xff] }
  0xa8   : > { %1426 = vmatmul.mubr.bf16.gmra.mrb[72].mxu1 %v1087_v19  ;;  %6282 = vmatprep.mubr.msk.bf16.mxu0 %vm557_vm0, %v1065_v22  ;;  %v1092_v19 = vpack.c.bf16 %v1032_v13, %v1029_v12  ;;  %v1041_v22 = vld [vmem:[%s6808_s24 + $0x580] sm:$0xff]  ;;  %v1702_v13 = vld [vmem:[%s6808_s24 + $0x718] sm:$0xff] }
  0xa9   : > { %1433 = vmatprep.mubr.bf16.mxu1 %v1091_v21  ;;  %6311 = vmatpush3.bf16.msra.mxu0 %v7075_v26  ;;  %v1040_v26 = vld [vmem:[%s6808_s24 + $0x578] sm:$0xff]  ;;  %v1764_v21 = vpack.c.bf16 %v1671_v17, %v1668_v16  ;;  %v1098_v31 = vpack.c.bf16 %v1044_v23, %v1041_v22  ;;  %v1699_v12 = vld [vmem:[%s6808_s24 + $0x700] sm:$0xff]  ;;  %v1705_v16 = vld [vmem:[%s6808_s24 + $0x730] sm:$0xff]  ;;  %v1779_v23 = vpack.c.bf16 %v1701_v15, %v1698_v14 }
  0xaa   : > { %6312 = vmatprep.subr.bf16.mxu0 %v6505_v28  ;;  %v1097_v48 = vpack.c.bf16 %v1043_v43, %v1040_v26  ;;  %v1708_v17 = vld [vmem:[%s6808_s24 + $0x748] sm:$0xff] }
  0xab   : > { %v1783_v24 = vpack.c.bf16 %v1708_v17, %v1705_v16  ;;  %v1716_v15 = vld [vmem:[%s6808_s24 + $0x788] sm:$0xff]  ;;  %v1735_v16 = vld [vmem:[%s6808_s24 + $0x820] sm:$0xff]  ;;  %v1738_v17 = vld [vmem:[%s6808_s24 + $0x838] sm:$0xff] }
  0xad   : > { %6313 = vmatpush3.bf16.msra.mxu0 %v6505_v28  ;;  %v1050_v28 = vld [vmem:[%s6808_s24 + $0x5c8] sm:$0xff] }
  0xae   : > { %6314 = vmatprep.subr.bf16.mxu0 %v6506_v33 }
  0xaf   : > { %6283 = vmatmul.mubr.msk.bf16.gmra.mrb[68].mxu0 %vm557_vm0, %v1068_v35  ;;  %v1053_v35 = vld [vmem:[%s6808_s24 + $0x5e0] sm:$0xff] }
  0xb0   : > { %1434 = vmatmul.mubr.bf16.gmra.mrb[76].mxu1 %v1090_v34  ;;  %6286 = vmatprep.mubr.msk.bf16.mxu0 %vm557_vm0, %v1071_v37  ;;  %v1767_v34 = vpack.c.bf16 %v1677_v30, %v1674_v29  ;;  %v1673_v37 = vld [vmem:[%s6808_s24 + $0x630] sm:$0xff]  ;;  %v1704_v29 = vld [vmem:[%s6808_s24 + $0x728] sm:$0xff]  ;;  %v1711_v30 = vld [vmem:[%s6808_s24 + $0x760] sm:$0xff] }
  0xb1   : > { %1441 = vmatprep.mubr.bf16.mxu1 %v1094_v36  ;;  %6315 = vmatpush3.bf16.msra.mxu0 %v6506_v33  ;;  %v1101_v33 = vpack.c.bf16 %v1050_v28, %v1047_v27  ;;  %v1056_v36 = vld [vmem:[%s6808_s24 + $0x5f8] sm:$0xff]  ;;  %v1697_v27 = vld [vmem:[%s6808_s24 + $0x6f0] sm:$0xff]  ;;  %v1700_v28 = vld [vmem:[%s6808_s24 + $0x708] sm:$0xff] }
  0xb2   : > { %6316 = vmatprep.subr.bf16.mxu0 %v6507_v38  ;;  %v1104_v26 = vpack.c.bf16 %v1056_v36, %v1053_v35  ;;  %v1778_v39 = vpack.c.bf16 %v1700_v28, %v1697_v27 }
  0xb5   : > { %6317 = vmatpush3.bf16.msra.mxu0 %v6507_v38  ;;  %v1676_v38 = vld [vmem:[%s6808_s24 + $0x648] sm:$0xff] }
  0xb6   : > { %v1766_v43 = vpack.c.bf16 %v1676_v38, %v1673_v37 }
  0xb7   : > { %6287 = vmatmul.mubr.msk.bf16.gmra.mrb[72].mxu0 %vm557_vm0, %v1074_v47  ;;  %v1682_v47 = vld [vmem:[%s6808_s24 + $0x678] sm:$0xff] }
  0xb8   : > { %1442 = vmatmul.mubr.bf16.gmra.mrb[80].mxu1 %v1093_v46  ;;  %6290 = vmatprep.mubr.msk.bf16.mxu0 %vm557_vm0, %v1077_v49  ;;  %v1679_v46 = vld [vmem:[%s6808_s24 + $0x660] sm:$0xff]  ;;  %v1678_v49 = vld [vmem:[%s6808_s24 + $0x658] sm:$0xff] }
  0xb9   : > { %1449 = vmatprep.mubr.bf16.mxu1 %v1097_v48  ;;  %v1675_v48 = vld [vmem:[%s6808_s24 + $0x640] sm:$0xff]  ;;  %v1769_v54 = vpack.c.bf16 %v1682_v47, %v1679_v46 }
  0xba   : > { %v1768_v55 = vpack.c.bf16 %v1678_v49, %v1675_v48  ;;  %v1703_v49 = vld [vmem:[%s6808_s24 + $0x720] sm:$0xff] }
  0xbf   : > { %6291 = vmatmul.mubr.msk.bf16.gmra.mrb[76].mxu0 %vm557_vm0, %v1080_v59  ;;  %v1688_v59 = vld [vmem:[%s6808_s24 + $0x6a8] sm:$0xff] }
  0xc0   : > { %1450 = vmatmul.mubr.bf16.gmra.mrb[84].mxu1 %v1096_v58  ;;  %6294 = vmatprep.mubr.msk.bf16.mxu0 %vm557_vm0, %v1083_v61  ;;  %v1685_v58 = vld [vmem:[%s6808_s24 + $0x690] sm:$0xff]  ;;  %v1690_v61 = vld [vmem:[%s6808_s24 + $0x6b8] sm:$0xff] }
  0xc1   : > { %1457 = vmatprep.mubr.bf16.mxu1 %v1100_v60  ;;  %v1687_v60 = vld [vmem:[%s6808_s24 + $0x6a0] sm:$0xff]  ;;  %v1772_v4 = vpack.c.bf16 %v1688_v59, %v1685_v58 }
  0xc2   : > { %v1774_v5 = vpack.c.bf16 %v1690_v61, %v1687_v60 }
  0xc7   : > { %6295 = vmatmul.mubr.msk.bf16.gmra.mrb[80].mxu0 %vm557_vm0, %v1086_v7  ;;  %v1776_v7 = vpack.c.bf16 %v1695_v63, %v1692_v62  ;;  %v1781_v63 = vpack.c.bf16 %v1706_v50, %v1703_v49  ;;  %v1725_v49 = vld [vmem:[%s6808_s24 + $0x7d0] sm:$0xff] }
  0xc8   : > { %1458 = vmatmul.mubr.bf16.gmra.mrb[88].mxu1 %v1099_v6  ;;  %6298 = vmatprep.mubr.msk.bf16.mxu0 %vm557_vm0, %v1089_v9  ;;  %v1753_v50 = vld [vmem:[%s6808_s24 + $0x8b0] sm:$0xff] }
  0xc9   : > { %1465 = vmatprep.mubr.bf16.mxu1 %v1103_v8  ;;  %v1777_v8 = vpack.c.bf16 %v1696_v1, %v1693_v0 }
  0xcf   : > { %6299 = vmatmul.mubr.msk.bf16.gmra.mrb[84].mxu0 %vm557_vm0, %v1092_v19 }
  0xd0   : > { %1466 = vmatmul.mubr.bf16.gmra.mrb[92].mxu1 %v1102_v18  ;;  %6302 = vmatprep.mubr.msk.bf16.mxu0 %vm557_vm0, %v1095_v20  ;;  %v1775_v20 = vpack.c.bf16 %v1694_v11, %v1691_v10 }
  0xd1   : > { %2051 = vmatprep.mubr.bf16.mxu1 %v1764_v21  ;;  %v1780_v21 = vpack.c.bf16 %v1702_v13, %v1699_v12  ;;  %v1709_v12 = vld [vmem:[%s6808_s24 + $0x750] sm:$0xff]  ;;  %v1712_v13 = vld [vmem:[%s6808_s24 + $0x768] sm:$0xff] }
  0xd7   : > { %6303 = vmatmul.mubr.msk.bf16.gmra.mrb[88].mxu0 %vm557_vm0, %v1098_v31  ;;  %v1714_v31 = vld [vmem:[%s6808_s24 + $0x778] sm:$0xff] }
  0xd8   : > { %2052 = vmatmul.mubr.bf16.vlgmr.msra.gmra.mrb[96].mxu1 %v1763_v32  ;;  %6306 = vmatprep.mubr.msk.bf16.mxu0 %vm557_vm0, %v1101_v33  ;;  %v1707_v32 = vld [vmem:[%s6808_s24 + $0x740] sm:$0xff]  ;;  %v1717_v33 = vld [vmem:[%s6808_s24 + $0x790] sm:$0xff]  ;;  %v1786_v40 = vpack.c.bf16 %v1714_v31, %v1711_v30  ;;  %v1784_v30 = vpack.c.bf16 %v1712_v13, %v1709_v12  ;;  %v1762_v12 = vld [vmem:[%s6808_s24 + $0x8f8] sm:$0xff] }
  0xd9   : > { %2059 = vmatprep.mubr.bf16.mxu1 %v1767_v34  ;;  %v1720_v34 = vld [vmem:[%s6808_s24 + $0x7a8] sm:$0xff] }
  0xda   : > { %v1728_v13 = vld [vmem:[%s6808_s24 + $0x7e8] sm:$0xff] }
  0xdf   : > { %6307 = vmatmul.mubr.msk.bf16.gmra.mrb[92].mxu0 %vm557_vm0, %v1104_v26 }
  0xe0   : > { %2060 = vmatmul.mubr.bf16.gmra.mrb[100].mxu1 %v1766_v43  ;;  %6318 = vmatprep.mubr.msk.bf16.mxu0 %vm557_vm0, %v1765_v45  ;;  %v1782_v43 = vpack.c.bf16 %v1707_v32, %v1704_v29 }
  0xe1   : > { %2067 = vmatprep.mubr.bf16.mxu1 %v1770_v44  ;;  %v1789_v44 = vpack.c.bf16 %v1720_v34, %v1717_v33 }
  0xe7   : > { %6319 = vmatmul.mubr.msk.bf16.vlgmr.msra.gmra.mrb[96].mxu0 %vm557_vm0, %v1768_v55  ;;  %v1713_v55 = vld [vmem:[%s6808_s24 + $0x770] sm:$0xff] }
  0xe8   : > { %2068 = vmatmul.mubr.bf16.gmra.mrb[104].mxu1 %v1769_v54  ;;  %6322 = vmatprep.mubr.msk.bf16.mxu0 %vm557_vm0, %v1771_v57  ;;  %v1726_v54 = vld [vmem:[%s6808_s24 + $0x7d8] sm:$0xff]  ;;  %v1732_v57 = vld [vmem:[%s6808_s24 + $0x808] sm:$0xff] }
  0xe9   : > { %2075 = vmatprep.mubr.bf16.mxu1 %v1773_v56  ;;  %v1729_v56 = vld [vmem:[%s6808_s24 + $0x7f0] sm:$0xff]  ;;  %v1792_v0 = vpack.c.bf16 %v1726_v54, %v1723_v53 }
  0xeb   : > { %v7219_v2 = vpop.f32.mrb[0].mxu1 }
  0xec   : > { %v801_v3 = vpop.f32.mrb[1].mxu1 }
  0xed   : > { %v7221_v6 = vpop.f32.mrb[2].mxu1 }
  0xee   : > { %v804_v9 = vpop.f32.mrb[3].mxu1 }
  0xef   : > { %6323 = vmatmul.mubr.msk.bf16.gmra.mrb[100].mxu0 %vm557_vm0, %v1774_v5  ;;  %v1785_v5 = vpack.c.bf16 %v1713_v55, %v1710_v52 }
  0xf0   : > { %2076 = vmatmul.mubr.bf16.gmra.mrb[108].mxu1 %v1772_v4  ;;  %6326 = vmatprep.mubr.msk.bf16.mxu0 %vm557_vm0, %v1777_v8 }
  0xf1   : > { %2083 = vmatprep.mubr.bf16.mxu1 %v1776_v7  ;;  %v1795_v7 = vpack.c.bf16 %v1732_v57, %v1729_v56 }
  0xf3   : > { %v7233_v18 = vpop.f32.mrb[4].mxu1 }
  0xf4   : > { %v7235_v19 = vpop.f32.mrb[5].mxu1 }
  0xf5   : > { %v7237_v22 = vpop.f32.mrb[6].mxu1 }
  0xf6   : > { %v7239_v25 = vpop.f32.mrb[7].mxu1 }
  0xf7   : > { %6327 = vmatmul.mubr.msk.bf16.gmra.mrb[104].mxu0 %vm557_vm0, %v1780_v21  ;;  %v1741_v21 = vld [vmem:[%s6808_s24 + $0x850] sm:$0xff] }
  0xf8   : > { %2084 = vmatmul.mubr.bf16.gmra.mrb[112].mxu1 %v1775_v20  ;;  %6330 = vmatprep.mubr.msk.bf16.mxu0 %vm557_vm0, %v1783_v24  ;;  %v1719_v20 = vld [vmem:[%s6808_s24 + $0x7a0] sm:$0xff] }
  0xf9   : > { %2091 = vmatprep.mubr.bf16.mxu1 %v1779_v23  ;;  %v1744_v23 = vld [vmem:[%s6808_s24 + $0x868] sm:$0xff]  ;;  %v1788_v34 = vpack.c.bf16 %v1719_v20, %v1716_v15 }
  0xfa   : > { %v5288_v35 = vpop.f32.mrb[0].mxu0 }
  0xfb   : > { %v7251_v36 = vpop.f32.mrb[8].mxu1  ;;  %v5289_v37 = vpop.f32.mrb[1].mxu0 }
  0xfc   : > { %v7253_v38 = vpop.f32.mrb[9].mxu1  ;;  %v5290_v41 = vadd.f32 %v5289_v37, %v5288_v35  ;;  %v5291_v42 = vpop.f32.mrb[2].mxu0  ;;  %v1801_v35 = vpack.c.bf16 %v1744_v23, %v1741_v21 }
  0xfd   : > { %v7255_v26 = vpop.f32.mrb[10].mxu1  ;;  %v5292_v45 = vpop.f32.mrb[3].mxu0 }
  0xfe   : > { %v7257_v46 = vpop.f32.mrb[11].mxu1  ;;  %v802_v47 = vadd.f32 %v5290_v41, %v801_v3  ;;  %v5293_v48 = vadd.f32 %v5292_v45, %v5291_v42  ;;  %v1715_v42 = vld [vmem:[%s6808_s24 + $0x780] sm:$0xff]  ;;  %v1722_v45 = vld [vmem:[%s6808_s24 + $0x7b8] sm:$0xff] }
  0xff   : > { %6331 = vmatmul.mubr.msk.bf16.gmra.mrb[108].mxu0 %vm557_vm0, %v1786_v40 }
 0x100   : > { %2092 = vmatmul.mubr.bf16.gmra.mrb[116].mxu1 %v1778_v39  ;;  %v805_v51 = vadd.f32 %v5293_v48, %v804_v9  ;;  %6334 = vmatprep.mubr.msk.bf16.mxu0 %vm557_vm0, %v1789_v44  ;;  %v1750_v48 = vld [vmem:[%s6808_s24 + $0x898] sm:$0xff] }
 0x101   : > { %2099 = vmatprep.mubr.bf16.mxu1 %v1782_v43  ;;  %v1718_v43 = vld [vmem:[%s6808_s24 + $0x798] sm:$0xff] }
 0x102   : > { %v928_v58 = vpack.c.bf16 %v805_v51, %v802_v47  ;;  %v5294_v59 = vpop.f32.mrb[4].mxu0  ;;  %v1747_v47 = vld [vmem:[%s6808_s24 + $0x880] sm:$0xff]  ;;  %v1756_v51 = vld [vmem:[%s6808_s24 + $0x8c8] sm:$0xff]  ;;  %v1787_v56 = vpack.c.bf16 %v1718_v43, %v1715_v42 }
 0x103   : > { %v7269_v60 = vpop.f32.mrb[12].mxu1  ;;  %v5295_v61 = vpop.f32.mrb[5].mxu0  ;;  %v1804_v57 = vpack.c.bf16 %v1750_v48, %v1747_v47 }
 0x104   : > { %v7271_v62 = vpop.f32.mrb[13].mxu1  ;;  %945 = vst.msk [vmem:[#allocation2] sm:$0xff] %vm944_vm1, %v928_v58  ;;  %v5296_v1 = vadd.f32 %v5295_v61, %v5294_v59  ;;  %v5297_v3 = vpop.f32.mrb[6].mxu0  ;;  %v1791_v61 = vpack.c.bf16 %v1725_v49, %v1722_v45 }
 0x105   : > { %v7274_v4 = vpop.f32.mrb[14].mxu1  ;;  %v5298_v8 = vpop.f32.mrb[7].mxu0 }
 0x106   : > { %v7276_v9 = vpop.f32.mrb[15].mxu1  ;;  %v810_v10 = vadd.f32 %v7219_v2, %v5296_v1  ;;  %v5299_v11 = vadd.f32 %v5298_v8, %v5297_v3 }
 0x107   : > { %6335 = vmatmul.mubr.msk.bf16.gmra.mrb[112].mxu0 %vm557_vm0, %v1792_v0 }
 0x108   : > { %2100 = vmatmul.mubr.bf16.gmra.mrb[120].mxu1 %v1781_v63  ;;  %v813_v14 = vadd.f32 %v7221_v6, %v5299_v11  ;;  %6338 = vmatprep.mubr.msk.bf16.mxu0 %vm557_vm0, %v1795_v7  ;;  %v1798_v6 = vpack.c.bf16 %v1738_v17, %v1735_v16  ;;  %v1807_v63 = vpack.c.bf16 %v1756_v51, %v1753_v50  ;;  %v1721_v7 = vld [vmem:[%s6808_s24 + $0x7b0] sm:$0xff]  ;;  %v1759_v11 = vld [vmem:[%s6808_s24 + $0x8e0] sm:$0xff] }
 0x109   : > { %2107 = vmatprep.mubr.bf16.mxu1 %v1785_v5  ;;  %v1810_v23 = vpack.c.bf16 %v1762_v12, %v1759_v11 }
 0x10a   : > { %v929_v24 = vpack.c.bf16 %v813_v14, %v810_v10  ;;  %v5300_v27 = vpop.f32.mrb[8].mxu0  ;;  %v1724_v10 = vld [vmem:[%s6808_s24 + $0x7c8] sm:$0xff]  ;;  %v1731_v14 = vld [vmem:[%s6808_s24 + $0x800] sm:$0xff] }
 0x10b   : > { %v7290_v2 = vpop.f32.mrb[16].mxu1  ;;  %v5301_v28 = vpop.f32.mrb[9].mxu0  ;;  %v1790_v21 = vpack.c.bf16 %v1724_v10, %v1721_v7 }
 0x10c   : > { %v7292_v29 = vpop.f32.mrb[17].mxu1  ;;  %946 = vst.msk [vmem:[#allocation2 + $0x8] sm:$0xff] %vm944_vm1, %v929_v24  ;;  %v5302_v31 = vadd.f32 %v5301_v28, %v5300_v27  ;;  %v5303_v32 = vpop.f32.mrb[10].mxu0  ;;  %v1794_v28 = vpack.c.bf16 %v1731_v14, %v1728_v13 }
 0x10d   : > { %v7295_v33 = vpop.f32.mrb[18].mxu1  ;;  %v5304_v37 = vpop.f32.mrb[11].mxu0 }
 0x10e   : > { %v7297_v39 = vpop.f32.mrb[19].mxu1  ;;  %v818_v40 = vadd.f32 %v5302_v31, %v7235_v19  ;;  %v5305_v41 = vadd.f32 %v5304_v37, %v5303_v32  ;;  %v1730_v37 = vld [vmem:[%s6808_s24 + $0x7f8] sm:$0xff] }
 0x10f   : > { %6339 = vmatmul.mubr.msk.bf16.gmra.mrb[116].mxu0 %vm557_vm0, %v1798_v6 }
 0x110   : > { %2108 = vmatmul.mubr.bf16.gmra.mrb[124].mxu1 %v1784_v30  ;;  %v821_v44 = vadd.f32 %v5305_v41, %v7239_v25  ;;  %6342 = vmatprep.mubr.msk.bf16.mxu0 %vm557_vm0, %v1801_v35  ;;  %v1727_v35 = vld [vmem:[%s6808_s24 + $0x7e0] sm:$0xff]  ;;  %v1737_v41 = vld [vmem:[%s6808_s24 + $0x830] sm:$0xff] }
 0x111   : > { %2115 = vmatprep.mubr.bf16.mxu1 %v1788_v34 }
 0x112   : > { %v930_v52 = vpack.c.bf16 %v821_v44, %v818_v40  ;;  %v5306_v53 = vpop.f32.mrb[12].mxu0  ;;  %v1734_v40 = vld [vmem:[%s6808_s24 + $0x818] sm:$0xff] }
 0x113   : > { %v7311_v19 = vpop.f32.mrb[20].mxu1  ;;  %v5307_v54 = vpop.f32.mrb[13].mxu0  ;;  %v1797_v50 = vpack.c.bf16 %v1737_v41, %v1734_v40 }
 0x114   : > { %v7313_v55 = vpop.f32.mrb[21].mxu1  ;;  %947 = vst.msk [vmem:[#allocation2 + $0x10] sm:$0xff] %vm944_vm1, %v930_v52  ;;  %v5308_v25 = vadd.f32 %v5307_v54, %v5306_v53  ;;  %v5309_v58 = vpop.f32.mrb[14].mxu0 }
 0x115   : > { %v7316_v59 = vpop.f32.mrb[22].mxu1  ;;  %v5310_v0 = vpop.f32.mrb[15].mxu0 }
 0x116   : > { %v7318_v1 = vpop.f32.mrb[23].mxu1  ;;  %v826_v3 = vadd.f32 %v7233_v18, %v5308_v25  ;;  %v5311_v5 = vadd.f32 %v5310_v0, %v5309_v58  ;;  %v1736_v25 = vld [vmem:[%s6808_s24 + $0x828] sm:$0xff] }
 0x117   : > { %6343 = vmatmul.mubr.msk.bf16.gmra.mrb[120].mxu0 %vm557_vm0, %v1804_v57  ;;  %v1733_v57 = vld [vmem:[%s6808_s24 + $0x810] sm:$0xff]  ;;  %v1740_v58 = vld [vmem:[%s6808_s24 + $0x848] sm:$0xff] }
 0x118   : > { %2116 = vmatmul.mubr.bf16.gmra.mrb[128].mxu1 %v1787_v56  ;;  %v829_v8 = vadd.f32 %v7237_v22, %v5311_v5  ;;  %6346 = vmatprep.mubr.msk.bf16.mxu0 %vm557_vm0, %v1807_v63 }
 0x119   : > { %2123 = vmatprep.mubr.bf16.mxu1 %v1791_v61  ;;  %v1743_v61 = vld [vmem:[%s6808_s24 + $0x860] sm:$0xff] }
 0x11a   : > { %v931_v15 = vpack.c.bf16 %v829_v8, %v826_v3  ;;  %v5312_v16 = vpop.f32.mrb[16].mxu0  ;;  %v1796_v8 = vpack.c.bf16 %v1736_v25, %v1733_v57  ;;  %v1800_v11 = vpack.c.bf16 %v1743_v61, %v1740_v58  ;;  %v1755_v57 = vld [vmem:[%s6808_s24 + $0x8c0] sm:$0xff] }
 0x11b   : > { %v7330_v17 = vpop.f32.mrb[24].mxu1  ;;  %v5313_v18 = vpop.f32.mrb[17].mxu0 }
 0x11c   : > { %v7332_v20 = vpop.f32.mrb[25].mxu1  ;;  %948 = vst.msk [vmem:[#allocation2 + $0x18] sm:$0xff] %vm944_vm1, %v931_v15  ;;  %v5314_v22 = vadd.f32 %v5313_v18, %v5312_v16  ;;  %v5315_v24 = vpop.f32.mrb[18].mxu0 }
 0x11d   : > { %v7335_v27 = vpop.f32.mrb[26].mxu1  ;;  %v5316_v30 = vpop.f32.mrb[19].mxu0 }
 0x11e   : > { %v7337_v6 = vpop.f32.mrb[27].mxu1  ;;  %v834_v31 = vadd.f32 %v5314_v22, %v7253_v38  ;;  %v5317_v32 = vadd.f32 %v5316_v30, %v5315_v24  ;;  %v1793_v38 = vpack.c.bf16 %v1730_v37, %v1727_v35  ;;  %v1742_v22 = vld [vmem:[%s6808_s24 + $0x858] sm:$0xff] }
 0x11f   : > { %6347 = vmatmul.mubr.msk.bf16.gmra.mrb[124].mxu0 %vm557_vm0, %v1810_v23  ;;  %v1739_v23 = vld [vmem:[%s6808_s24 + $0x840] sm:$0xff]  ;;  %v1746_v24 = vld [vmem:[%s6808_s24 + $0x878] sm:$0xff] }
 0x120   : > { %2124 = vmatmul.mubr.bf16.gmra.mrb[132].mxu1 %v1790_v21  ;;  %v837_v34 = vadd.f32 %v5317_v32, %v7257_v46  ;;  %v1799_v37 = vpack.c.bf16 %v1742_v22, %v1739_v23  ;;  %v1761_v23 = vld [vmem:[%s6808_s24 + $0x8f0] sm:$0xff] }
 0x121   : > { %2131 = vmatprep.mubr.bf16.mxu1 %v1794_v28  ;;  %v1749_v28 = vld [vmem:[%s6808_s24 + $0x890] sm:$0xff] }
 0x122   : > { %v932_v42 = vpack.c.bf16 %v837_v34, %v834_v31  ;;  %v5318_v43 = vpop.f32.mrb[20].mxu0  ;;  %v6510_v34 = vld [vmem:[%s8607_s2 + $0x4] ss:$24 sps:$4 sm:$0xff]  }
 0x123   : > { %v7346_v44 = vpop.f32.mrb[28].mxu1  ;;  %v5319_v45 = vpop.f32.mrb[21].mxu0  ;;  %3221 = vmatprep.mubr.bf16.mxu0 %v6510_v34 }
 0x124   : > { %v7348_v47 = vpop.f32.mrb[29].mxu1  ;;  %949 = vst.msk [vmem:[#allocation2 + $0x20] sm:$0xff] %vm944_vm1, %v932_v42  ;;  %v5320_v46 = vadd.f32 %v5319_v45, %v5318_v43  ;;  %v5321_v48 = vpop.f32.mrb[22].mxu0  ;;  %v1803_v42 = vpack.c.bf16 %v1749_v28, %v1746_v24 }
 0x125   : > { %v7351_v49 = vpop.f32.mrb[30].mxu1  ;;  %v5322_v51 = vpop.f32.mrb[23].mxu0 }
 0x126   : > { %v7353_v52 = vpop.f32.mrb[31].mxu1  ;;  %v842_v53 = vadd.f32 %v7251_v36, %v5320_v46  ;;  %v5323_v54 = vadd.f32 %v5322_v51, %v5321_v48 }
 0x128   : > { %2132 = vmatmul.mubr.bf16.gmra.mrb[136].mxu1 %v1793_v38  ;;  %v845_v56 = vadd.f32 %v7255_v26, %v5323_v54  ;;  %v1748_v54 = vld [vmem:[%s6808_s24 + $0x888] sm:$0xff] }
 0x129   : > { %2139 = vmatprep.mubr.bf16.mxu1 %v1797_v50 }
 0x12a   : > { %v933_v63 = vpack.c.bf16 %v845_v56, %v842_v53  ;;  %v5324_v0 = vpop.f32.mrb[24].mxu0  ;;  %v1745_v53 = vld [vmem:[%s6808_s24 + $0x870] sm:$0xff]  ;;  %v1752_v56 = vld [vmem:[%s6808_s24 + $0x8a8] sm:$0xff] }
 0x12b   : > { %v5420_v3 = vpop.f32.mrb[32].mxu1  ;;  %v5325_v5 = vpop.f32.mrb[25].mxu0 }
 0x12c   : > { %v5421_v7 = vpop.f32.mrb[33].mxu1  ;;  %950 = vst.msk [vmem:[#allocation2 + $0x28] sm:$0xff] %vm944_vm1, %v933_v63  ;;  %v5326_v36 = vadd.f32 %v5325_v5, %v5324_v0  ;;  %v5327_v10 = vpop.f32.mrb[26].mxu0 }
 0x12d   : > { %v5423_v26 = vpop.f32.mrb[34].mxu1  ;;  %v7362_v12 = vadd.f32 %v5421_v7, %v5420_v3  ;;  %v5328_v13 = vpop.f32.mrb[27].mxu0  ;;  %v1802_v3 = vpack.c.bf16 %v1748_v54, %v1745_v53  ;;  %v1806_v7 = vpack.c.bf16 %v1755_v57, %v1752_v56 }
 0x12e   : > { %v5424_v14 = vpop.f32.mrb[35].mxu1  ;;  %v850_v15 = vadd.f32 %v5326_v36, %v7271_v62  ;;  %v5329_v16 = vadd.f32 %v5328_v13, %v5327_v10 }
 0x12f   : > { %v7365_v18 = vadd.f32 %v5424_v14, %v5423_v26 }
 0x130   : > { %2140 = vmatmul.mubr.bf16.gmra.mrb[140].mxu1 %v1796_v8  ;;  %v853_v21 = vadd.f32 %v5329_v16, %v7276_v9  ;;  %v1754_v16 = vld [vmem:[%s6808_s24 + $0x8b8] sm:$0xff] }
 0x131   : > { %2147 = vmatprep.mubr.bf16.mxu1 %v1800_v11 }
 0x132   : > { %v934_v30 = vpack.c.bf16 %v853_v21, %v850_v15  ;;  %v5330_v31 = vpop.f32.mrb[28].mxu0  ;;  %v1751_v15 = vld [vmem:[%s6808_s24 + $0x8a0] sm:$0xff]  ;;  %v1758_v21 = vld [vmem:[%s6808_s24 + $0x8d8] sm:$0xff] }
 0x133   : > { %v5426_v32 = vpop.f32.mrb[36].mxu1  ;;  %v5331_v35 = vpop.f32.mrb[29].mxu0 }
 0x134   : > { %v5427_v62 = vpop.f32.mrb[37].mxu1  ;;  %951 = vst.msk [vmem:[#allocation2 + $0x30] sm:$0xff] %vm944_vm1, %v934_v30  ;;  %v5332_v9 = vadd.f32 %v5331_v35, %v5330_v31  ;;  %v5333_v40 = vpop.f32.mrb[30].mxu0 }
 0x135   : > { %v5429_v41 = vpop.f32.mrb[38].mxu1  ;;  %v7376_v43 = vadd.f32 %v5427_v62, %v5426_v32  ;;  %v5334_v45 = vpop.f32.mrb[31].mxu0  ;;  %v1805_v32 = vpack.c.bf16 %v1754_v16, %v1751_v15  ;;  %v1809_v62 = vpack.c.bf16 %v1761_v23, %v1758_v21 }
 0x136   : > { %v5430_v38 = vpop.f32.mrb[39].mxu1  ;;  %v858_v46 = vadd.f32 %v7269_v60, %v5332_v9  ;;  %v5335_v48 = vadd.f32 %v5334_v45, %v5333_v40 }
 0x137   : > { %v7379_v50 = vadd.f32 %v5430_v38, %v5429_v41  ;;  %v1757_v38 = vld [vmem:[%s6808_s24 + $0x8d0] sm:$0xff] }
 0x138   : > { %2148 = vmatmul.mubr.bf16.gmra.mrb[144].mxu1 %v1799_v37  ;;  %v861_v51 = vadd.f32 %v7274_v4, %v5335_v48 }
 0x139   : > { %2155 = vmatprep.mubr.bf16.mxu1 %v1803_v42 }
 0x13a   : > { %v935_v25 = vpack.c.bf16 %v861_v51, %v858_v46  ;;  %v5336_v58 = vpop.f32.mrb[32].mxu0  ;;  %v1760_v46 = vld [vmem:[%s6808_s24 + $0x8e8] sm:$0xff] }
 0x13b   : > { %v5432_v61 = vpop.f32.mrb[40].mxu1  ;;  %v5337_v63 = vpop.f32.mrb[33].mxu0 }
 0x13c   : > { %v5433_v0 = vpop.f32.mrb[41].mxu1  ;;  %952 = vst.msk [vmem:[#allocation2 + $0x38] sm:$0xff] %vm944_vm1, %v935_v25  ;;  %v5338_v60 = vadd.f32 %v5337_v63, %v5336_v58  ;;  %v5339_v5 = vpop.f32.mrb[34].mxu0  ;;  %v1808_v25 = vpack.c.bf16 %v1760_v46, %v1757_v38  ;;  %v2469_v63 = vld [vmem:[#allocation2] sm:$0xff]  ;;  %v2471_v46 = vld [vmem:[#allocation2 + $0x10] sm:$0xff] }
 0x13d   : > { %v5435_v4 = vpop.f32.mrb[42].mxu1  ;;  %v7387_v8 = vadd.f32 %v5433_v0, %v5432_v61  ;;  %v5340_v36 = vpop.f32.mrb[35].mxu0 }
 0x13e   : > { %v5436_v10 = vpop.f32.mrb[43].mxu1  ;;  %v866_v26 = vadd.f32 %v5338_v60, %v7292_v29  ;;  %v5341_v11 = vadd.f32 %v5340_v36, %v5339_v5 }
 0x13f   : > { %v7390_v13 = vadd.f32 %v5436_v10, %v5435_v4 }
 0x140   : > { %2156 = vmatmul.mubr.bf16.gmra.mrb[148].mxu1 %v1802_v3  ;;  %v869_v14 = vadd.f32 %v5341_v11, %v7297_v39 }
 0x141   : > { %2163 = vmatprep.mubr.bf16.mxu1 %v1806_v7 }
 0x142   : > { %v936_v22 = vpack.c.bf16 %v869_v14, %v866_v26  ;;  %v5342_v24 = vpop.f32.mrb[36].mxu0 }
 0x143   : > { %v5438_v28 = vpop.f32.mrb[44].mxu1  ;;  %v5343_v30 = vpop.f32.mrb[37].mxu0 }
 0x144   : > { %v5439_v31 = vpop.f32.mrb[45].mxu1  ;;  %953 = vst.msk [vmem:[#allocation2 + $0x40] sm:$0xff] %vm944_vm1, %v936_v22  ;;  %v5344_v29 = vadd.f32 %v5343_v30, %v5342_v24  ;;  %v5345_v34 = vpop.f32.mrb[38].mxu0 }
 0x145   : > { %v5441_v35 = vpop.f32.mrb[46].mxu1  ;;  %v7398_v39 = vadd.f32 %v5439_v31, %v5438_v28  ;;  %v5346_v37 = vpop.f32.mrb[39].mxu0 }
 0x146   : > { %v5442_v9 = vpop.f32.mrb[47].mxu1  ;;  %v874_v40 = vadd.f32 %v7290_v2, %v5344_v29  ;;  %v5347_v41 = vadd.f32 %v5346_v37, %v5345_v34 }
 0x147   : > { %v7401_v42 = vadd.f32 %v5442_v9, %v5441_v35 }
 0x148   : > { %2164 = vmatmul.mubr.bf16.gmra.mrb[152].mxu1 %v1805_v32  ;;  %v877_v45 = vadd.f32 %v7295_v33, %v5347_v41  ;;  %v6522_v33 = vld [vmem:[%s8607_s2 + $0xc] ss:$24 sps:$4 sm:$0xff]  }
 0x149   : > { %2171 = vmatprep.mubr.bf16.mxu1 %v1809_v62 }
 0x14a   : > { %v937_v48 = vpack.c.bf16 %v877_v45, %v874_v40  ;;  %v5348_v51 = vpop.f32.mrb[40].mxu0 }
 0x14b   : > { %v5444_v53 = vpop.f32.mrb[48].mxu1  ;;  %v5349_v54 = vpop.f32.mrb[41].mxu0  ;;  %v2477_v57 = vld [vmem:[#allocation2 + $0x40] sm:$0xff] }
 0x14c   : > { %v5445_v56 = vpop.f32.mrb[49].mxu1  ;;  %954 = vst.msk [vmem:[#allocation2 + $0x48] sm:$0xff] %vm944_vm1, %v937_v48  ;;  %v5350_v58 = vadd.f32 %v5349_v54, %v5348_v51  ;;  %v5351_v2 = vpop.f32.mrb[42].mxu0  ;;  %5668 = vmatprep.subr.bf16.mxu0 %v2477_v57 }
 0x14d   : > { %v5447_v61 = vpop.f32.mrb[50].mxu1  ;;  %v7407_v0 = vadd.f32 %v5445_v56, %v5444_v53  ;;  %v5352_v3 = vpop.f32.mrb[43].mxu0  ;;  %5669 = vmatpush3.bf16.msra.mxu0 %v2469_v63 }
 0x14e   : > { %v5448_v60 = vpop.f32.mrb[51].mxu1  ;;  %v882_v5 = vadd.f32 %v5350_v58, %v7313_v55  ;;  %v5353_v4 = vadd.f32 %v5352_v3, %v5351_v2  ;;  %v2470_v55 = vld [vmem:[#allocation2 + $0x8] sm:$0xff] }
 0x14f   : > { %v7413_v7 = vadd.f32 %v5448_v60, %v5447_v61 }
 0x150   : > { %2172 = vmatmul.mubr.bf16.gmra.mrb[156].mxu1 %v1808_v25  ;;  %v885_v36 = vadd.f32 %v5353_v4, %v7318_v1 }
 0x151   : > { %3382 = vmatprep.mubr.bf16.mxu1 %v6522_v33 }
 0x152   : > { %v938_v10 = vpack.c.bf16 %v885_v36, %v882_v5  ;;  %v5354_v26 = vpop.f32.mrb[44].mxu0  ;;  %v2472_v5 = vld [vmem:[#allocation2 + $0x18] sm:$0xff] }
 0x153   : > { %v5450_v11 = vpop.f32.mrb[52].mxu1  ;;  %v5355_v14 = vpop.f32.mrb[45].mxu0  ;;  %v2478_v16 = vld [vmem:[#allocation2 + $0x48] sm:$0xff] }
 0x154   : > { %v5451_v15 = vpop.f32.mrb[53].mxu1  ;;  %955 = vst.msk [vmem:[#allocation2 + $0x50] sm:$0xff] %vm944_vm1, %v938_v10  ;;  %v5356_v21 = vadd.f32 %v5355_v14, %v5354_v26  ;;  %v5357_v23 = vpop.f32.mrb[46].mxu0  ;;  %5670 = vmatprep.subr.bf16.mxu0 %v2478_v16 }
 0x155   : > { %v5453_v22 = vpop.f32.mrb[54].mxu1  ;;  %v7417_v24 = vadd.f32 %v5451_v15, %v5450_v11  ;;  %v5358_v28 = vpop.f32.mrb[47].mxu0  ;;  %5671 = vmatpush3.bf16.msra.mxu0 %v2470_v55 }
 0x156   : > { %v5454_v30 = vpop.f32.mrb[55].mxu1  ;;  %v890_v1 = vadd.f32 %v7311_v19, %v5356_v21  ;;  %v5359_v31 = vadd.f32 %v5358_v28, %v5357_v23 }
 0x157   : > { %v7420_v32 = vadd.f32 %v5454_v30, %v5453_v22 }
 0x158   : > { %v893_v29 = vadd.f32 %v7316_v59, %v5359_v31 }
 0x15a   : > { %v939_v34 = vpack.c.bf16 %v893_v29, %v890_v1  ;;  %v5360_v35 = vpop.f32.mrb[48].mxu0  ;;  %v2473_v1 = vld [vmem:[#allocation2 + $0x20] sm:$0xff] }
 0x15b   : > { %v5456_v62 = vpop.f32.mrb[56].mxu1  ;;  %v5361_v37 = vpop.f32.mrb[49].mxu0  ;;  %v2479_v40 = vld [vmem:[#allocation2 + $0x50] sm:$0xff] }
 0x15c   : > { %v5457_v9 = vpop.f32.mrb[57].mxu1  ;;  %956 = vst.msk [vmem:[#allocation2 + $0x58] sm:$0xff] %vm944_vm1, %v939_v34  ;;  %v5362_v41 = vadd.f32 %v5361_v37, %v5360_v35  ;;  %v5363_v45 = vpop.f32.mrb[50].mxu0  ;;  %5672 = vmatprep.subr.bf16.mxu0 %v2479_v40 }
 0x15d   : > { %v5459_v38 = vpop.f32.mrb[58].mxu1  ;;  %v7424_v48 = vadd.f32 %v5457_v9, %v5456_v62  ;;  %v5364_v19 = vpop.f32.mrb[51].mxu0  ;;  %5673 = vmatpush3.bf16.msra.mxu0 %v2471_v46 }
 0x15e   : > { %v5460_v51 = vpop.f32.mrb[59].mxu1  ;;  %v898_v59 = vadd.f32 %v5362_v41, %v7332_v20  ;;  %v5365_v53 = vadd.f32 %v5364_v19, %v5363_v45 }
 0x15f   : > { %v7427_v54 = vadd.f32 %v5460_v51, %v5459_v38 }
 0x160   : > { %v901_v56 = vadd.f32 %v5365_v53, %v7337_v6 }
 0x162   : > { %v940_v57 = vpack.c.bf16 %v901_v56, %v898_v59  ;;  %v5366_v25 = vpop.f32.mrb[52].mxu0 }
 0x163   : > { %v5462_v58 = vpop.f32.mrb[60].mxu1  ;;  %v5367_v2 = vpop.f32.mrb[53].mxu0  ;;  %v2480_v63 = vld [vmem:[#allocation2 + $0x58] sm:$0xff] }
 0x164   : > { %v5463_v61 = vpop.f32.mrb[61].mxu1  ;;  %957 = vst.msk [vmem:[#allocation2 + $0x60] sm:$0xff] %vm944_vm1, %v940_v57  ;;  %v5368_v33 = vadd.f32 %v5367_v2, %v5366_v25  ;;  %v5369_v3 = vpop.f32.mrb[54].mxu0  ;;  %5674 = vmatprep.subr.bf16.mxu0 %v2480_v63 }
 0x165   : > { %v5465_v60 = vpop.f32.mrb[62].mxu1  ;;  %v7431_v4 = vadd.f32 %v5463_v61, %v5462_v58  ;;  %v5370_v20 = vpop.f32.mrb[55].mxu0  ;;  %5675 = vmatpush3.bf16.msra.mxu0 %v2472_v5 }
 0x166   : > { %v5466_v36 = vpop.f32.mrb[63].mxu1  ;;  %v906_v6 = vadd.f32 %v7330_v17, %v5368_v33  ;;  %v5371_v10 = vadd.f32 %v5370_v20, %v5369_v3 }
 0x167   : > { %v7434_v26 = vadd.f32 %v5466_v36, %v5465_v60 }
 0x168   : > { %v909_v11 = vadd.f32 %v7335_v27, %v5371_v10  ;;  %v2475_v10 = vld [vmem:[#allocation2 + $0x30] sm:$0xff] }
 0x16a   : > { %v941_v14 = vpack.c.bf16 %v909_v11, %v906_v6  ;;  %v5372_v15 = vpop.f32.mrb[56].mxu0 }
 0x16b   : > { %v5468_v16 = vpop.f32.mrb[64].mxu1  ;;  %v5373_v21 = vpop.f32.mrb[57].mxu0  ;;  %v2481_v22 = vld [vmem:[#allocation2 + $0x60] sm:$0xff] }
 0x16c   : > { %v5469_v23 = vpop.f32.mrb[65].mxu1  ;;  %958 = vst.msk [vmem:[#allocation2 + $0x68] sm:$0xff] %vm944_vm1, %v941_v14  ;;  %v5374_v55 = vadd.f32 %v5373_v21, %v5372_v15  ;;  %v5375_v28 = vpop.f32.mrb[58].mxu0  ;;  %5676 = vmatprep.subr.bf16.mxu0 %v2481_v22 }
 0x16d   : > { %v5471_v30 = vpop.f32.mrb[66].mxu1  ;;  %v7438_v31 = vadd.f32 %v5469_v23, %v5468_v16  ;;  %v5376_v17 = vpop.f32.mrb[59].mxu0  ;;  %5677 = vmatpush3.bf16.msra.mxu0 %v2473_v1 }
 0x16e   : > { %v5472_v29 = vpop.f32.mrb[67].mxu1  ;;  %v914_v27 = vadd.f32 %v5374_v55, %v7348_v47  ;;  %v5377_v34 = vadd.f32 %v5376_v17, %v5375_v28  ;;  %v2474_v47 = vld [vmem:[#allocation2 + $0x28] sm:$0xff] }
 0x16f   : > { %v7441_v35 = vadd.f32 %v5472_v29, %v5471_v30 }
 0x170   : > { %v917_v62 = vadd.f32 %v5377_v34, %v7353_v52 }
 0x172   : > { %v942_v37 = vpack.c.bf16 %v917_v62, %v914_v27  ;;  %v5378_v9 = vpop.f32.mrb[60].mxu0  ;;  %v6508_v27 = vld [vmem:[%s8607_s2] ss:$24 sps:$4 sm:$0xff]  }
 0x173   : > { %v5474_v40 = vpop.f32.mrb[68].mxu1  ;;  %v5379_v41 = vpop.f32.mrb[61].mxu0  ;;  %v2482_v38 = vld [vmem:[#allocation2 + $0x68] sm:$0xff] }
 0x174   : > { %v5475_v45 = vpop.f32.mrb[69].mxu1  ;;  %959 = vst.msk [vmem:[#allocation2 + $0x70] sm:$0xff] %vm944_vm1, %v942_v37  ;;  %v5380_v46 = vadd.f32 %v5379_v41, %v5378_v9  ;;  %v5381_v51 = vpop.f32.mrb[62].mxu0  ;;  %5678 = vmatprep.subr.bf16.mxu0 %v2482_v38 }
 0x175   : > { %v7445_v19 = vadd.f32 %v5475_v45, %v5474_v40  ;;  %v5477_v59 = vpop.f32.mrb[70].mxu1  ;;  %v5382_v53 = vpop.f32.mrb[63].mxu0  ;;  %5679 = vmatpush3.bf16.msra.mxu0 %v2474_v47  ;;  %v6726_v45 = vmov 0  }
 0x176   : > { %v5478_v56 = vpop.f32.mrb[71].mxu1  ;;  %v922_v52 = vadd.f32 %v7346_v44, %v5380_v46  ;;  %v5383_v57 = vadd.f32 %v5382_v53, %v5381_v51  ;;  %6446 = vset.pattern.permute.xlu0 %v6726_v45  ;;  %6447 = vset.pattern.permute.xlu1 %v6726_v45 }
 0x177   : > { %v7448_v25 = vadd.f32 %v5478_v56, %v5477_v59 }
 0x178   : > { %v925_v58 = vadd.f32 %v7351_v49, %v5383_v57  ;;  %v6513_v57 = vld [vmem:[%s8607_s2 + $0x30] ss:$24 sps:$4 sm:$0xff]  }
 0x17a   : > { %v943_v2 = vpack.c.bf16 %v925_v58, %v922_v52  ;;  %v6280_v63 = vpop.f32.mrb[64].mxu0 }
 0x17b   : > { %v5480_v61 = vpop.f32.mrb[72].mxu1  ;;  %v1517_v33 = vadd.f32 %v6280_v63, %v7376_v43  ;;  %v1508_v60 = vpop.f32.mrb[65].mxu0  ;;  %v2483_v5 = vld [vmem:[#allocation2 + $0x70] sm:$0xff]  ;;  %v2518_v63 = vld [vmem:[%s8608_s3 + $0x8] sm:$0xff] }
 0x17c   : > { %v5481_v3 = vpop.f32.mrb[73].mxu1  ;;  %960 = vst.msk [vmem:[#allocation2 + $0x78] sm:$0xff] %vm944_vm1, %v943_v2  ;;  %v1509_v36 = vadd.f32 %v7362_v12, %v1508_v60  ;;  %v6281_v6 = vpop.f32.mrb[66].mxu0  ;;  %5680 = vmatprep.subr.bf16.mxu0 %v2483_v5 }
 0x17d   : > { %v7453_v20 = vadd.f32 %v5481_v3, %v5480_v61  ;;  %v5483_v44 = vpop.f32.mrb[74].mxu1  ;;  %v1520_v49 = vadd.f32 %v6281_v6, %v7379_v50  ;;  %v1511_v14 = vpop.f32.mrb[67].mxu0  ;;  %5681 = vmatpush3.bf16.msra.mxu0 %v2475_v10 }
 0x17e   : > { %v5484_v11 = vpop.f32.mrb[75].mxu1  ;;  %v1512_v43 = vadd.f32 %v7365_v18, %v1511_v14  ;;  %v2476_v18 = vld [vmem:[#allocation2 + $0x38] sm:$0xff] }
 0x17f   : > { %v7457_v15 = vadd.f32 %v5484_v11, %v5483_v44  ;;  %v1636_v16 = vpack.c.bf16 %v1520_v49, %v1517_v33 }
 0x180   : > { %v1635_v21 = vpack.c.bf16 %v1512_v43, %v1509_v36  ;;  %v6516_v43 = vld [vmem:[%s8607_s2 + $0x60] ss:$24 sps:$4 sm:$0xff]  }
 0x181   : > { %1652 = vst.msk [vmem:[#allocation2 + $0x88] sm:$0xff] %vm944_vm1, %v1636_v16 }
 0x182   : > { %1651 = vst.msk [vmem:[#allocation2 + $0x80] sm:$0xff] %vm944_vm1, %v1635_v21  ;;  %v6284_v23 = vpop.f32.mrb[68].mxu0 }
 0x183   : > { %v5486_v12 = vpop.f32.mrb[76].mxu1  ;;  %v1533_v22 = vadd.f32 %v6284_v23, %v7398_v39  ;;  %v1524_v28 = vpop.f32.mrb[69].mxu0  ;;  %v2484_v50 = vld [vmem:[#allocation2 + $0x78] sm:$0xff]  ;;  %v6511_v39 = vld [vmem:[%s8607_s2 + $0x34] ss:$24 sps:$4 sm:$0xff]  }
 0x184   : > { %v5487_v55 = vpop.f32.mrb[77].mxu1  ;;  %v1525_v1 = vadd.f32 %v7387_v8, %v1524_v28  ;;  %v6285_v29 = vpop.f32.mrb[70].mxu0  ;;  %5682 = vmatprep.subr.bf16.mxu0 %v2484_v50  ;;  %v2520_v23 = vld [vmem:[%s8608_s3 + $0x18] sm:$0xff] }
 0x185   : > { %v7463_v30 = vadd.f32 %v5487_v55, %v5486_v12  ;;  %v5489_v17 = vpop.f32.mrb[78].mxu1  ;;  %v1536_v34 = vadd.f32 %v6285_v29, %v7401_v42  ;;  %v1527_v37 = vpop.f32.mrb[71].mxu0  ;;  %5683 = vmatpush3.bf16.msra.mxu0 %v2476_v18  ;;  %v2517_v42 = vld [vmem:[%s8608_s3] sm:$0xff] }
 0x186   : > { %v5490_v62 = vpop.f32.mrb[79].mxu1  ;;  %v1528_v8 = vadd.f32 %v7390_v13, %v1527_v37  ;;  %2551 = vperm.xlu0 %6446, %v2517_v42  }
 0x187   : > { %v7473_v9 = vadd.f32 %v5490_v62, %v5489_v17  ;;  %v1638_v40 = vpack.c.bf16 %v1536_v34, %v1533_v22  ;;  %v6519_v62 = vld [vmem:[%s8607_s2 + $0x90] ss:$24 sps:$4 sm:$0xff]  }
 0x188   : > { %v1637_v41 = vpack.c.bf16 %v1528_v8, %v1525_v1  ;;  %3222 = vmatmul.mubr.bf16.vlgmr.msra.gmra.mrb[128].mxu0 %v6508_v27 }
 0x189   : > { %1654 = vst.msk [vmem:[#allocation2 + $0x98] sm:$0xff] %vm944_vm1, %v1638_v40  ;;  %3229 = vmatprep.mubr.bf16.mxu0 %v6511_v39  ;;  %v2522_v40 = vld [vmem:[%s8608_s3 + $0x28] sm:$0xff] }
 0x18a   : > { %1653 = vst.msk [vmem:[#allocation2 + $0x90] sm:$0xff] %vm944_vm1, %v1637_v41  ;;  %v6288_v46 = vpop.f32.mrb[72].mxu0  ;;  %2556 = vperm.xlu0 %6446, %v2518_v63  }
 0x18b   : > { %v5492_v38 = vpop.f32.mrb[80].mxu1  ;;  %v1549_v13 = vadd.f32 %v6288_v46, %v7417_v24  ;;  %v1540_v59 = vpop.f32.mrb[73].mxu0  ;;  %v6514_v24 = vld [vmem:[%s8607_s2 + $0x64] ss:$24 sps:$4 sm:$0xff]  }
 0x18c   : > { %v5493_v51 = vpop.f32.mrb[81].mxu1  ;;  %v1541_v53 = vadd.f32 %v7407_v0, %v1540_v59  ;;  %v6289_v52 = vpop.f32.mrb[74].mxu0 }
 0x18d   : > { %v7482_v47 = vadd.f32 %v5493_v51, %v5492_v38  ;;  %v5495_v56 = vpop.f32.mrb[82].mxu1  ;;  %v1552_v58 = vadd.f32 %v6289_v52, %v7420_v32  ;;  %v1543_v61 = vpop.f32.mrb[75].mxu0  ;;  %v2519_v32 = vld [vmem:[%s8608_s3 + $0x10] sm:$0xff] }
 0x18e   : > { %v5496_v2 = vpop.f32.mrb[83].mxu1  ;;  %v1544_v0 = vadd.f32 %v7413_v7, %v1543_v61  ;;  %2561 = vperm.xlu1 %6447, %v2519_v32  }
 0x18f   : > { %v7495_v33 = vadd.f32 %v5496_v2, %v5495_v56  ;;  %v1640_v3 = vpack.c.bf16 %v1552_v58, %v1549_v13 }
 0x190   : > { %v1639_v60 = vpack.c.bf16 %v1544_v0, %v1541_v53  ;;  %3230 = vmatmul.mubr.bf16.gmra.mrb[132].mxu0 %v6513_v57  ;;  %v6525_v57 = vld [vmem:[%s8607_s2 + $0xc0] ss:$24 sps:$4 sm:$0xff]  }
 0x191   : > { %1656 = vst.msk [vmem:[#allocation2 + $0xa8] sm:$0xff] %vm944_vm1, %v1640_v3  ;;  %3237 = vmatprep.mubr.bf16.mxu0 %v6514_v24  ;;  %v6529_v24 = vld [vmem:[%s8607_s2 + $0xf4] ss:$24 sps:$4 sm:$0xff]  }
 0x192   : > { %1655 = vst.msk [vmem:[#allocation2 + $0xa0] sm:$0xff] %vm944_vm1, %v1639_v60  ;;  %v6292_v36 = vpop.f32.mrb[76].mxu0  ;;  %2566 = vperm.xlu1 %6447, %v2520_v23   ;;  %v2525_v23 = vld [vmem:[%s8608_s3 + $0x40] sm:$0xff] }
 0x193   : > { %v5498_v5 = vpop.f32.mrb[84].mxu1  ;;  %v1565_v44 = vadd.f32 %v6292_v36, %v7431_v4  ;;  %v1556_v7 = vpop.f32.mrb[77].mxu0  ;;  %v6517_v4 = vld [vmem:[%s8607_s2 + $0x94] ss:$24 sps:$4 sm:$0xff]   ;;  %v2485_v36 = vld [vmem:[#allocation2 + $0x80] sm:$0xff] }
 0x194   : > { %v5499_v6 = vpop.f32.mrb[85].mxu1  ;;  %v1557_v49 = vadd.f32 %v7424_v48, %v1556_v7  ;;  %v6293_v14 = vpop.f32.mrb[78].mxu0 }
 0x195   : > { %v7504_v10 = vadd.f32 %v5499_v6, %v5498_v5  ;;  %v5501_v11 = vpop.f32.mrb[86].mxu1  ;;  %v1568_v16 = vadd.f32 %v6293_v14, %v7434_v26  ;;  %v1559_v12 = vpop.f32.mrb[79].mxu0 }
 0x196   : > { %v5502_v21 = vpop.f32.mrb[87].mxu1  ;;  %v1560_v48 = vadd.f32 %v7427_v54, %v1559_v12  ;;  %2576 = vperm.xlu1 %6447, %v2522_v40  }
 0x197   : > { %v7517_v22 = vadd.f32 %v5502_v21, %v5501_v11  ;;  %v1642_v55 = vpack.c.bf16 %v1568_v16, %v1565_v44  ;;  %v6531_v16 = vld [vmem:[%s8607_s2 + $0xf0] ss:$24 sps:$4 sm:$0xff]  }
 0x198   : > { %v1641_v28 = vpack.c.bf16 %v1560_v48, %v1557_v49  ;;  %3238 = vmatmul.mubr.bf16.gmra.mrb[136].mxu0 %v6516_v43 }
 0x199   : > { %1658 = vst.msk [vmem:[#allocation2 + $0xb8] sm:$0xff] %vm944_vm1, %v1642_v55  ;;  %3245 = vmatprep.mubr.bf16.mxu0 %v6517_v4 }
 0x19a   : > { %1657 = vst.msk [vmem:[#allocation2 + $0xb0] sm:$0xff] %vm944_vm1, %v1641_v28  ;;  %v6296_v50 = vpop.f32.mrb[80].mxu0  ;;  %v2486_v28 = vld [vmem:[#allocation2 + $0x88] sm:$0xff] }
 0x19b   : > { %v5504_v26 = vpop.f32.mrb[88].mxu1  ;;  %v1581_v1 = vadd.f32 %v6296_v50, %v7445_v19  ;;  %v1572_v29 = vpop.f32.mrb[81].mxu0  ;;  %v6523_v19 = vld [vmem:[%s8607_s2 + $0xc4] ss:$24 sps:$4 sm:$0xff]  }
 0x19c   : > { %v5505_v17 = vpop.f32.mrb[89].mxu1  ;;  %v1573_v27 = vadd.f32 %v7438_v31, %v1572_v29  ;;  %v6297_v34 = vpop.f32.mrb[82].mxu0  ;;  %v2521_v31 = vld [vmem:[%s8608_s3 + $0x20] sm:$0xff]  ;;  %v2487_v29 = vld [vmem:[#allocation2 + $0x90] sm:$0xff] }
 0x19d   : > { %v7523_v18 = vadd.f32 %v5505_v17, %v5504_v26  ;;  %v5507_v54 = vpop.f32.mrb[90].mxu1  ;;  %v1584_v37 = vadd.f32 %v6297_v34, %v7448_v25  ;;  %v1575_v8 = vpop.f32.mrb[83].mxu0  ;;  %2571 = vperm.xlu0 %6446, %v2521_v31  }
 0x19e   : > { %v5508_v39 = vpop.f32.mrb[91].mxu1  ;;  %v1576_v45 = vadd.f32 %v7441_v35, %v1575_v8 }
 0x19f   : > { %v7539_v41 = vadd.f32 %v5508_v39, %v5507_v54  ;;  %v1644_v25 = vpack.c.bf16 %v1584_v37, %v1581_v1 }
 0x1a0   : > { %v1643_v42 = vpack.c.bf16 %v1576_v45, %v1573_v27  ;;  %3246 = vmatmul.mubr.bf16.gmra.mrb[140].mxu0 %v6519_v62 }
 0x1a1   : > { %1660 = vst.msk [vmem:[#allocation2 + $0xc8] sm:$0xff] %vm944_vm1, %v1644_v25  ;;  %3253 = vmatprep.mubr.bf16.mxu0 %v6523_v19  ;;  %v6536_v19 = vld [vmem:[%s8607_s2 + $0x120] ss:$24 sps:$4 sm:$0xff]   ;;  %v6539_v25 = vld [vmem:[%s8607_s2 + $0x154] ss:$24 sps:$4 sm:$0xff]  }
 0x1a2   : > { %1659 = vst.msk [vmem:[#allocation2 + $0xc0] sm:$0xff] %vm944_vm1, %v1643_v42  ;;  %v6300_v46 = vpop.f32.mrb[84].mxu0 }
 0x1a3   : > { %v5510_v38 = vpop.f32.mrb[92].mxu1  ;;  %v1597_v13 = vadd.f32 %v6300_v46, %v7463_v30  ;;  %v1588_v59 = vpop.f32.mrb[85].mxu0  ;;  %v2524_v30 = vld [vmem:[%s8608_s3 + $0x38] sm:$0xff] }
 0x1a4   : > { %v5511_v51 = vpop.f32.mrb[93].mxu1  ;;  %v1589_v56 = vadd.f32 %v7453_v20, %v1588_v59  ;;  %v6301_v52 = vpop.f32.mrb[86].mxu0  ;;  %v2523_v20 = vld [vmem:[%s8608_s3 + $0x30] sm:$0xff]  ;;  %2586 = vperm.xlu1 %6447, %v2524_v30   ;;  %v2488_v46 = vld [vmem:[#allocation2 + $0x98] sm:$0xff] }
 0x1a5   : > { %v5512_v53 = vadd.f32 %v5511_v51, %v5510_v38  ;;  %v5513_v35 = vpop.f32.mrb[94].mxu1  ;;  %v1600_v58 = vadd.f32 %v6301_v52, %v7473_v9  ;;  %v1591_v61 = vpop.f32.mrb[87].mxu0  ;;  %2581 = vperm.xlu0 %6446, %v2523_v20  }
 0x1a6   : > { %v5514_v2 = vpop.f32.mrb[95].mxu1  ;;  %v1592_v0 = vadd.f32 %v7457_v15, %v1591_v61 }
 0x1a7   : > { %v5515_v63 = vadd.f32 %v5514_v2, %v5513_v35  ;;  %v1646_v9 = vpack.c.bf16 %v1600_v58, %v1597_v13  ;;  %v2527_v13 = vld [vmem:[%s8608_s3 + $0x50] sm:$0xff]  ;;  %v2489_v35 = vld [vmem:[#allocation2 + $0xa0] sm:$0xff] }
 0x1a8   : > { %v1645_v3 = vpack.c.bf16 %v1592_v0, %v1589_v56  ;;  %3254 = vmatmul.mubr.bf16.gmra.mrb[144].mxu0 %v6525_v57  ;;  %v2494_v15 = vld [vmem:[#allocation2 + $0xc8] sm:$0xff] }
 0x1a9   : > { %1662 = vst.msk [vmem:[#allocation2 + $0xd8] sm:$0xff] %vm944_vm1, %v1646_v9  ;;  %v2493_v60 = vld [vmem:[#allocation2 + $0xc0] sm:$0xff]  ;;  %3261 = vmatprep.mubr.bf16.mxu0 %v6529_v24  ;;  %2591 = vperm.xlu0 %6446, %v2525_v23  }
 0x1aa   : > { %1661 = vst.msk [vmem:[#allocation2 + $0xd0] sm:$0xff] %vm944_vm1, %v1645_v3  ;;  %v6304_v32 = vpop.f32.mrb[88].mxu0  ;;  %5780 = vmatprep.subr.bf16.mxu1 %v2493_v60  ;;  %v6544_v60 = vld [vmem:[%s8607_s2 + $0x184] ss:$24 sps:$4 sm:$0xff]  }
 0x1ab   : > { %v5552_v5 = vpop.f32.mrb[96].mxu1  ;;  %v1613_v44 = vadd.f32 %v6304_v32, %v7504_v10  ;;  %v1604_v6 = vpop.f32.mrb[89].mxu0  ;;  %5781 = vmatpush3.bf16.msra.mxu1 %v2485_v36  ;;  %v6534_v10 = vld [vmem:[%s8607_s2 + $0x124] ss:$24 sps:$4 sm:$0xff]   ;;  %v2530_v32 = vld [vmem:[%s8608_s3 + $0x68] sm:$0xff] }
 0x1ac   : > { %v5553_v7 = vpop.f32.mrb[97].mxu1  ;;  %v1605_v49 = vadd.f32 %v7482_v47, %v1604_v6  ;;  %v6305_v14 = vpop.f32.mrb[90].mxu0  ;;  %5782 = vmatprep.subr.bf16.mxu1 %v2494_v15  ;;  %v2526_v47 = vld [vmem:[%s8608_s3 + $0x48] sm:$0xff] }
 0x1ad   : > { %v7564_v11 = vadd.f32 %v5553_v7, %v5552_v5  ;;  %v5555_v43 = vpop.f32.mrb[98].mxu1  ;;  %v1616_v21 = vadd.f32 %v6305_v14, %v7517_v22  ;;  %v1607_v12 = vpop.f32.mrb[91].mxu0  ;;  %2596 = vperm.xlu1 %6447, %v2526_v47   ;;  %2601 = vperm.xlu0 %6446, %v2527_v13   ;;  %v2529_v5 = vld [vmem:[%s8608_s3 + $0x60] sm:$0xff]  ;;  %v2490_v6 = vld [vmem:[#allocation2 + $0xa8] sm:$0xff] }
 0x1ae   : > { %v5556_v4 = vpop.f32.mrb[99].mxu1  ;;  %v1608_v48 = vadd.f32 %v7495_v33, %v1607_v12  ;;  %v2534_v13 = vld [vmem:[%s8608_s3 + $0x88] sm:$0xff] }
 0x1af   : > { %v7580_v55 = vadd.f32 %v5556_v4, %v5555_v43  ;;  %v1648_v22 = vpack.c.bf16 %v1616_v21, %v1613_v44  ;;  %5783 = vmatpush3.bf16.msra.mxu1 %v2486_v28  ;;  %v2491_v43 = vld [vmem:[#allocation2 + $0xb0] sm:$0xff] }
 0x1b0   : > { %v1647_v26 = vpack.c.bf16 %v1608_v48, %v1605_v49  ;;  %3262 = vmatmul.mubr.bf16.gmra.mrb[148].mxu0 %v6531_v16  ;;  %v2496_v34 = vld [vmem:[#allocation2 + $0xd8] sm:$0xff] }
 0x1b1   : > { %1664 = vst.msk [vmem:[#allocation2 + $0xe8] sm:$0xff] %vm944_vm1, %v1648_v22  ;;  %v2495_v50 = vld [vmem:[#allocation2 + $0xd0] sm:$0xff]  ;;  %3269 = vmatprep.mubr.bf16.mxu0 %v6534_v10  ;;  %2611 = vperm.xlu0 %6446, %v2529_v5   ;;  %v6546_v48 = vld [vmem:[%s8607_s2 + $0x180] ss:$24 sps:$4 sm:$0xff]  }
 0x1b2   : > { %1663 = vst.msk [vmem:[#allocation2 + $0xe0] sm:$0xff] %vm944_vm1, %v1647_v26  ;;  %v6308_v1 = vpop.f32.mrb[92].mxu0  ;;  %5784 = vmatprep.subr.bf16.mxu1 %v2495_v50  ;;  %v6550_v22 = vld [vmem:[%s8607_s2 + $0x1b4] ss:$24 sps:$4 sm:$0xff]   ;;  %v2532_v26 = vld [vmem:[%s8608_s3 + $0x78] sm:$0xff] }
 0x1b3   : > { %v5558_v17 = vpop.f32.mrb[100].mxu1  ;;  %v1629_v33 = vadd.f32 %v6308_v1, %v5512_v53  ;;  %v1620_v27 = vpop.f32.mrb[93].mxu0  ;;  %5785 = vmatpush3.bf16.msra.mxu1 %v2487_v29  ;;  %v2531_v50 = vld [vmem:[%s8608_s3 + $0x70] sm:$0xff]  ;;  %v2536_v5 = vld [vmem:[%s8608_s3 + $0x98] sm:$0xff] }
 0x1b4   : > { %v5559_v54 = vpop.f32.mrb[101].mxu1  ;;  %v1621_v62 = vadd.f32 %v7523_v18, %v1620_v27  ;;  %v6309_v39 = vpop.f32.mrb[94].mxu0  ;;  %5786 = vmatprep.subr.bf16.mxu1 %v2496_v34  ;;  %v2528_v18 = vld [vmem:[%s8608_s3 + $0x58] sm:$0xff]  ;;  %v6520_v27 = vld [vmem:[%s8607_s2 + $0x8] ss:$24 sps:$4 sm:$0xff]  }
 0x1b5   : > { %v5560_v37 = vadd.f32 %v5559_v54, %v5558_v17  ;;  %v5561_v8 = vpop.f32.mrb[102].mxu1  ;;  %v1632_v40 = vadd.f32 %v6309_v39, %v5515_v63  ;;  %v1623_v31 = vpop.f32.mrb[95].mxu0  ;;  %2606 = vperm.xlu1 %6447, %v2528_v18   ;;  %v6541_v63 = vld [vmem:[%s8607_s2 + $0x150] ss:$24 sps:$4 sm:$0xff]   ;;  %2621 = vperm.xlu0 %6446, %v2531_v50   ;;  %v6526_v54 = vld [vmem:[%s8607_s2 + $0x3c] ss:$24 sps:$4 sm:$0xff]  }
 0x1b6   : > { %v5562_v45 = vpop.f32.mrb[103].mxu1  ;;  %v1624_v42 = vadd.f32 %v7539_v41, %v1623_v31  ;;  %v6555_v18 = vld [vmem:[%s8607_s2 + $0x1e4] ss:$24 sps:$4 sm:$0xff]  }
 0x1b7   : > { %v5563_v38 = vadd.f32 %v5562_v45, %v5561_v8  ;;  %v1650_v51 = vpack.c.bf16 %v1632_v40, %v1629_v33  ;;  %5787 = vmatpush3.bf16.msra.mxu1 %v2488_v46  ;;  %v2492_v33 = vld [vmem:[#allocation2 + $0xb8] sm:$0xff]  ;;  %v2537_v50 = vld [vmem:[%s8608_s3 + $0xa0] sm:$0xff] }
 0x1b8   : > { %v1649_v59 = vpack.c.bf16 %v1624_v42, %v1621_v62  ;;  %3270 = vmatmul.mubr.bf16.gmra.mrb[152].mxu0 %v6536_v19  ;;  %v2498_v2 = vld [vmem:[#allocation2 + $0xe8] sm:$0xff] }
 0x1b9   : > { %1666 = vst.msk [vmem:[#allocation2 + $0xf8] sm:$0xff] %vm944_vm1, %v1650_v51  ;;  %v2497_v53 = vld [vmem:[#allocation2 + $0xe0] sm:$0xff]  ;;  %3277 = vmatprep.mubr.bf16.mxu0 %v6539_v25  ;;  %2616 = vperm.xlu1 %6447, %v2530_v32   ;;  %v6552_v42 = vld [vmem:[%s8607_s2 + $0x1b0] ss:$24 sps:$4 sm:$0xff]   ;;  %v6561_v32 = vld [vmem:[%s8607_s2 + $0x214] ss:$24 sps:$4 sm:$0xff]  }
 0x1ba   : > { %1665 = vst.msk [vmem:[#allocation2 + $0xf0] sm:$0xff] %vm944_vm1, %v1649_v59  ;;  %v6320_v56 = vpop.f32.mrb[96].mxu0  ;;  %5788 = vmatprep.subr.bf16.mxu1 %v2497_v53  ;;  %v2533_v51 = vld [vmem:[%s8608_s3 + $0x80] sm:$0xff] }
 0x1bb   : > { %v5564_v41 = vpop.f32.mrb[104].mxu1  ;;  %v2223_v52 = vadd.f32 %v6320_v56, %v5560_v37  ;;  %v2214_v58 = vpop.f32.mrb[97].mxu0  ;;  %5789 = vmatpush3.bf16.msra.mxu1 %v2489_v35  ;;  %2631 = vperm.xlu0 %6446, %v2533_v51   ;;  %v6532_v56 = vld [vmem:[%s8607_s2 + $0x6c] ss:$24 sps:$4 sm:$0xff]  }
 0x1bc   : > { %v5565_v57 = vpop.f32.mrb[105].mxu1  ;;  %v2215_v24 = vadd.f32 %v7564_v11, %v2214_v58  ;;  %v6321_v20 = vpop.f32.mrb[98].mxu0  ;;  %5790 = vmatprep.subr.bf16.mxu1 %v2498_v2 }
 0x1bd   : > { %v5566_v61 = vadd.f32 %v5565_v57, %v5564_v41  ;;  %v5567_v30 = vpop.f32.mrb[106].mxu1  ;;  %v2226_v0 = vadd.f32 %v6321_v20, %v5563_v38  ;;  %v2217_v3 = vpop.f32.mrb[99].mxu0  ;;  %2626 = vperm.xlu1 %6447, %v2532_v26   ;;  %v6528_v41 = vld [vmem:[%s8607_s2 + $0x38] ss:$24 sps:$4 sm:$0xff]   ;;  %v2538_v26 = vld [vmem:[%s8608_s3 + $0xa8] sm:$0xff] }
 0x1be   : > { %v5568_v9 = vpop.f32.mrb[107].mxu1  ;;  %v2218_v44 = vadd.f32 %v7580_v55, %v2217_v3 }
 0x1bf   : > { %v5569_v36 = vadd.f32 %v5568_v9, %v5567_v30  ;;  %v2342_v7 = vpack.c.bf16 %v2226_v0, %v2223_v52  ;;  %5791 = vmatpush3.bf16.msra.mxu1 %v2490_v6  ;;  %v2389_v30 = vld [vmem:[%s8607_s2 + $0x80] sm:$0xff] }
 0x1c0   : > { %v2341_v15 = vpack.c.bf16 %v2218_v44, %v2215_v24  ;;  %3278 = vmatmul.mubr.bf16.gmra.mrb[156].mxu0 %v6541_v63  ;;  %v2500_v12 = vld [vmem:[#allocation2 + $0xf8] sm:$0xff]  ;;  %v2386_v24 = vld [vmem:[%s8607_s2 + $0x68] sm:$0xff] }
 0x1c1   : > { %2358 = vst.msk [vmem:[#allocation2 + $0x108] sm:$0xff] %vm944_vm1, %v2342_v7  ;;  %v2499_v49 = vld [vmem:[#allocation2 + $0xf0] sm:$0xff]  ;;  %3285 = vmatprep.mubr.bf16.mxu0 %v6544_v60  ;;  %2636 = vperm.xlu1 %6447, %v2534_v13   ;;  %v6557_v9 = vld [vmem:[%s8607_s2 + $0x1e0] ss:$24 sps:$4 sm:$0xff]   ;;  %v5072_v7 = vcombine.low %v2386_v24, %v2389_v30 }
 0x1c2   : > { %2357 = vst.msk [vmem:[#allocation2 + $0x100] sm:$0xff] %vm944_vm1, %v2341_v15  ;;  %v6324_v14 = vpop.f32.mrb[100].mxu0  ;;  %5792 = vmatprep.subr.bf16.mxu1 %v2499_v49  ;;  %v6537_v15 = vld [vmem:[%s8607_s2 + $0x9c] ss:$24 sps:$4 sm:$0xff]  }
 0x1c3   : > { %v5570_v11 = vpop.f32.mrb[108].mxu1  ;;  %v2230_v21 = vpop.f32.mrb[101].mxu0  ;;  %5793 = vmatpush3.bf16.msra.mxu1 %v2491_v43  ;;  %v2539_v13 = vld [vmem:[%s8608_s3 + $0xb0] sm:$0xff] }
 0x1c4   : > { %v5571_v16 = vpop.f32.mrb[109].mxu1  ;;  %v2231_v10 = vadd.f32 %v5566_v61, %v2230_v21  ;;  %v6325_v23 = vpop.f32.mrb[102].mxu0  ;;  %5794 = vmatprep.subr.bf16.mxu1 %v2500_v12  ;;  %v2392_v12 = vld [vmem:[%s8607_s2 + $0x98] sm:$0xff] }
 0x1c5   : > { %v5572_v4 = vadd.f32 %v5571_v16, %v5570_v11  ;;  %v5573_v47 = vpop.f32.mrb[110].mxu1  ;;  %v2233_v28 = vpop.f32.mrb[103].mxu0  ;;  %2646 = vperm.xlu1 %6447, %v2536_v5  }
 0x1c6   : > { %v5574_v55 = vpop.f32.mrb[111].mxu1  ;;  %v2234_v29 = vadd.f32 %v5569_v36, %v2233_v28  ;;  %v2535_v36 = vld [vmem:[%s8608_s3 + $0x90] sm:$0xff] }
 0x1c7   : > { %v2239_v1 = vadd.f32 %v6324_v14, %v5572_v4  ;;  %v5575_v17 = vadd.f32 %v5574_v55, %v5573_v47  ;;  %5795 = vmatpush3.bf16.msra.mxu1 %v2492_v33  ;;  %2641 = vperm.xlu0 %6446, %v2535_v36   ;;  %v2395_v4 = vld [vmem:[%s8607_s2 + $0xb0] sm:$0xff]  ;;  %v6542_v33 = vld [vmem:[%s8607_s2 + $0xcc] ss:$24 sps:$4 sm:$0xff]  }
 0x1c8   : > { %v2343_v62 = vpack.c.bf16 %v2234_v29, %v2231_v10  ;;  %3286 = vmatmul.mubr.bf16.gmra.mrb[160].mxu0 %v6546_v48  ;;  %v6563_v48 = vld [vmem:[%s8607_s2 + $0x210] ss:$24 sps:$4 sm:$0xff]   ;;  %v5078_v29 = vcombine.low %v2392_v12, %v2395_v4 }
 0x1c9   : > { %v2242_v34 = vadd.f32 %v6325_v23, %v5575_v17  ;;  %3293 = vmatprep.mubr.bf16.mxu0 %v6550_v22  ;;  %v6566_v22 = vld [vmem:[%s8607_s2 + $0x244] ss:$24 sps:$4 sm:$0xff]   ;;  %2656 = vperm.xlu1 %6447, %v2538_v26   ;;  %v6549_v36 = vld [vmem:[%s8607_s2 + $0xf8] ss:$24 sps:$4 sm:$0xff]  }
 0x1ca   : > { %2359 = vst.msk [vmem:[#allocation2 + $0x110] sm:$0xff] %vm944_vm1, %v2343_v62  ;;  %v6328_v8 = vpop.f32.mrb[104].mxu0  ;;  %3383 = vmatmul.mubr.bf16.vlgmr.msra.gmra.mrb[160].mxu1 %v6520_v27  ;;  %v2543_v26 = vld [vmem:[%s8608_s3 + $0xd0] sm:$0xff] }
 0x1cb   : > { %v2344_v37 = vpack.c.bf16 %v2242_v34, %v2239_v1  ;;  %v5576_v39 = vpop.f32.mrb[112].mxu1  ;;  %v2246_v40 = vpop.f32.mrb[105].mxu0  ;;  %3390 = vmatprep.mubr.bf16.mxu1 %v6526_v54  ;;  %2651 = vperm.xlu0 %6446, %v2537_v50  }
 0x1cc   : > { %v5577_v19 = vpop.f32.mrb[113].mxu1  ;;  %v6329_v25 = vpop.f32.mrb[106].mxu0 }
 0x1cd   : > { %2360 = vst.msk [vmem:[#allocation2 + $0x118] sm:$0xff] %vm944_vm1, %v2344_v37  ;;  %v5578_v31 = vadd.f32 %v5577_v19, %v5576_v39  ;;  %v5579_v45 = vpop.f32.mrb[114].mxu1  ;;  %v2249_v46 = vpop.f32.mrb[107].mxu0  ;;  %v2398_v39 = vld [vmem:[%s8607_s2 + $0xc8] sm:$0xff] }
 0x1ce   : > { %v5580_v38 = vpop.f32.mrb[115].mxu1 }
 0x1cf   : > { %v5581_v59 = vadd.f32 %v5580_v38, %v5579_v45  ;;  %v2247_v53 = vadd.f32 %v5578_v31, %v2246_v40  ;;  %2661 = vperm.xlu0 %6446, %v2539_v13   ;;  %v6560_v13 = vld [vmem:[%s8607_s2 + $0x158] ss:$24 sps:$4 sm:$0xff]  }
 0x1d0   : > { %3294 = vmatmul.mubr.bf16.gmra.mrb[164].mxu0 %v6552_v42 }
 0x1d1   : > { %v2250_v35 = vadd.f32 %v5581_v59, %v2249_v46  ;;  %3301 = vmatprep.mubr.bf16.mxu0 %v6555_v18  ;;  %v6572_v46 = vld [vmem:[%s8607_s2 + $0x274] ss:$24 sps:$4 sm:$0xff]   ;;  %v2540_v18 = vld [vmem:[%s8608_s3 + $0xb8] sm:$0xff] }
 0x1d2   : > { %v7654_v58 = vpop.f32.mrb[108].mxu0  ;;  %3391 = vmatmul.mubr.bf16.gmra.mrb[164].mxu1 %v6528_v41  ;;  %2666 = vperm.xlu1 %6447, %v2540_v18   ;;  %v6547_v41 = vld [vmem:[%s8607_s2 + $0xfc] ss:$24 sps:$4 sm:$0xff]  }
 0x1d3   : > { %v2345_v52 = vpack.c.bf16 %v2250_v35, %v2247_v53  ;;  %v5582_v57 = vpop.f32.mrb[116].mxu1  ;;  %v2262_v61 = vpop.f32.mrb[109].mxu0  ;;  %3398 = vmatprep.mubr.bf16.mxu1 %v6532_v56 }
 0x1d4   : > { %v5583_v2 = vpop.f32.mrb[117].mxu1  ;;  %v7663_v0 = vpop.f32.mrb[110].mxu0 }
 0x1d5   : > { %2361 = vst.msk [vmem:[#allocation2 + $0x120] sm:$0xff] %vm944_vm1, %v2345_v52  ;;  %v5584_v20 = vadd.f32 %v5583_v2, %v5582_v57  ;;  %v5585_v63 = vpop.f32.mrb[118].mxu1  ;;  %v2265_v60 = vpop.f32.mrb[111].mxu0 }
 0x1d6   : > { %v5586_v3 = vpop.f32.mrb[119].mxu1 }
 0x1d7   : > { %v2255_v44 = vadd.f32 %v6328_v8, %v5584_v20  ;;  %v5587_v6 = vadd.f32 %v5586_v3, %v5585_v63  ;;  %v2401_v8 = vld [vmem:[%s8607_s2 + $0xe0] sm:$0xff]  ;;  %v6574_v20 = vld [vmem:[%s8607_s2 + $0x270] ss:$24 sps:$4 sm:$0xff]  }
 0x1d8   : > { %3302 = vmatmul.mubr.bf16.gmra.mrb[168].mxu0 %v6557_v9  ;;  %v5084_v53 = vcombine.low %v2398_v39, %v2401_v8  ;;  %v6577_v9 = vld [vmem:[%s8607_s2 + $0x2a4] ss:$24 sps:$4 sm:$0xff]   ;;  %v2542_v3 = vld [vmem:[%s8608_s3 + $0xc8] sm:$0xff] }
 0x1d9   : > { %v2258_v49 = vadd.f32 %v6329_v25, %v5587_v6  ;;  %3309 = vmatprep.mubr.bf16.mxu0 %v6561_v32  ;;  %v6568_v25 = vld [vmem:[%s8607_s2 + $0x240] ss:$24 sps:$4 sm:$0xff]   ;;  %2676 = vperm.xlu1 %6447, %v2542_v3  }
 0x1da   : > { %3399 = vmatmul.mubr.bf16.gmra.mrb[168].mxu1 %v5072_v7  ;;  %v7680_v43 = vpop.f32.mrb[112].mxu0  ;;  %v2501_v8 = vld [vmem:[#allocation2 + $0x100] sm:$0xff] }
 0x1db   : > { %v2346_v11 = vpack.c.bf16 %v2258_v49, %v2255_v44  ;;  %v5588_v14 = vpop.f32.mrb[120].mxu1  ;;  %v7682_v21 = vpop.f32.mrb[113].mxu0  ;;  %3406 = vmatprep.mubr.bf16.mxu1 %v6537_v15  ;;  %v6553_v44 = vld [vmem:[%s8607_s2 + $0x12c] ss:$24 sps:$4 sm:$0xff]  }
 0x1dc   : > { %v5589_v16 = vpop.f32.mrb[121].mxu1  ;;  %v7691_v23 = vpop.f32.mrb[114].mxu0 }
 0x1dd   : > { %2362 = vst.msk [vmem:[#allocation2 + $0x128] sm:$0xff] %vm944_vm1, %v2346_v11  ;;  %v5590_v10 = vadd.f32 %v5589_v16, %v5588_v14  ;;  %v5591_v47 = vpop.f32.mrb[122].mxu1  ;;  %v7696_v28 = vpop.f32.mrb[115].mxu0  ;;  %v2410_v14 = vld [vmem:[%s8607_s2 + $0x128] sm:$0xff]  ;;  %v2413_v16 = vld [vmem:[%s8607_s2 + $0x140] sm:$0xff] }
 0x1de   : > { %v5592_v55 = vpop.f32.mrb[123].mxu1 }
 0x1df   : > { %v5593_v1 = vadd.f32 %v5592_v55, %v5591_v47  ;;  %v2263_v17 = vadd.f32 %v5590_v10, %v2262_v61  ;;  %v6579_v47 = vld [vmem:[%s8607_s2 + $0x2a0] ss:$24 sps:$4 sm:$0xff]  }
 0x1e0   : > { %3310 = vmatmul.mubr.bf16.gmra.mrb[172].mxu0 %v6563_v48 }
 0x1e1   : > { %v2266_v27 = vadd.f32 %v5593_v1, %v2265_v60  ;;  %3317 = vmatprep.mubr.bf16.mxu0 %v6566_v22  ;;  %v2541_v60 = vld [vmem:[%s8608_s3 + $0xc0] sm:$0xff]  ;;  %v2544_v22 = vld [vmem:[%s8608_s3 + $0xd8] sm:$0xff] }
 0x1e2   : > { %3407 = vmatmul.mubr.bf16.gmra.mrb[172].mxu1 %v5078_v29  ;;  %v7710_v62 = vpop.f32.mrb[116].mxu0  ;;  %2671 = vperm.xlu0 %6446, %v2541_v60   ;;  %v6558_v29 = vld [vmem:[%s8607_s2 + $0x15c] ss:$24 sps:$4 sm:$0xff]  }
 0x1e3   : > { %v2347_v54 = vpack.c.bf16 %v2266_v27, %v2263_v17  ;;  %v5594_v34 = vpop.f32.mrb[124].mxu1  ;;  %3414 = vmatprep.mubr.bf16.mxu1 %v6542_v33  ;;  %v7718_v19 = vpop.f32.mrb[117].mxu0  ;;  %v5096_v17 = vcombine.low %v2410_v14, %v2413_v16  ;;  %2686 = vperm.xlu1 %6447, %v2544_v22  }
 0x1e4   : > { %v5595_v37 = vpop.f32.mrb[125].mxu1  ;;  %v7721_v45 = vpop.f32.mrb[118].mxu0 }
 0x1e5   : > { %2363 = vst.msk [vmem:[#allocation2 + $0x130] sm:$0xff] %vm944_vm1, %v2347_v54  ;;  %v5596_v40 = vadd.f32 %v5595_v37, %v5594_v34  ;;  %v5597_v31 = vpop.f32.mrb[126].mxu1  ;;  %v7726_v38 = vpop.f32.mrb[119].mxu0 }
 0x1e6   : > { %v5598_v42 = vpop.f32.mrb[127].mxu1  ;;  %2681 = vperm.xlu0 %6446, %v2543_v26  }
 0x1e7   : > { %v2271_v51 = vadd.f32 %v7654_v58, %v5596_v40  ;;  %v5599_v59 = vadd.f32 %v5598_v42, %v5597_v31  ;;  %v6585_v40 = vld [vmem:[%s8607_s2 + $0x2d0] ss:$24 sps:$4 sm:$0xff]   ;;  %v6591_v31 = vld [vmem:[%s8607_s2 + $0x14] ss:$24 sps:$4 sm:$0xff]   ;;  %v2545_v42 = vld [vmem:[%s8608_s3 + $0xe0] sm:$0xff] }
 0x1e8   : > { %3318 = vmatmul.mubr.bf16.gmra.mrb[176].mxu0 %v6568_v25  ;;  %v2546_v25 = vld [vmem:[%s8608_s3 + $0xe8] sm:$0xff] }
 0x1e9   : > { %v2274_v56 = vadd.f32 %v7663_v0, %v5599_v59  ;;  %3325 = vmatprep.mubr.bf16.mxu0 %v6572_v46  ;;  %2696 = vperm.xlu1 %6447, %v2546_v25  }
 0x1ea   : > { %3415 = vmatmul.mubr.bf16.gmra.mrb[176].mxu1 %v5084_v53  ;;  %v7742_v57 = vpop.f32.mrb[120].mxu0  ;;  %2691 = vperm.xlu0 %6446, %v2545_v42  }
 0x1eb   : > { %v2348_v35 = vpack.c.bf16 %v2274_v56, %v2271_v51  ;;  %v5600_v52 = vpop.f32.mrb[128].mxu1  ;;  %3422 = vmatprep.mubr.bf16.mxu1 %v6547_v41  ;;  %v7744_v58 = vpop.f32.mrb[121].mxu0  ;;  %v6564_v51 = vld [vmem:[%s8607_s2 + $0x18c] ss:$24 sps:$4 sm:$0xff]  }
 0x1ec   : > { %v5601_v2 = vpop.f32.mrb[129].mxu1  ;;  %v7747_v30 = vpop.f32.mrb[122].mxu0 }
 0x1ed   : > { %2364 = vst.msk [vmem:[#allocation2 + $0x138] sm:$0xff] %vm944_vm1, %v2348_v35  ;;  %v5602_v61 = vadd.f32 %v5601_v2, %v5600_v52  ;;  %v5603_v24 = vpop.f32.mrb[130].mxu1  ;;  %v7752_v0 = vpop.f32.mrb[123].mxu0  ;;  %v2425_v52 = vld [vmem:[%s8607_s2 + $0x1a0] sm:$0xff] }
 0x1ee   : > { %v5604_v63 = vpop.f32.mrb[131].mxu1 }
 0x1ef   : > { %v2279_v32 = vadd.f32 %v5602_v61, %v7682_v21  ;;  %v5605_v5 = vadd.f32 %v5604_v63, %v5603_v24  ;;  %v2502_v61 = vld [vmem:[#allocation2 + $0x108] sm:$0xff]  ;;  %v2547_v63 = vld [vmem:[%s8608_s3 + $0xf0] sm:$0xff] }
 0x1f0   : > { %3326 = vmatmul.mubr.bf16.gmra.mrb[180].mxu0 %v6574_v20  ;;  %v2548_v20 = vld [vmem:[%s8608_s3 + $0xf8] sm:$0xff]  ;;  %2701 = vperm.xlu0 %6446, %v2547_v63   ;;  %v4745_v63 = vld [vmem:[%s8610_s5 + $0x10] sm:$0xff] }
 0x1f1   : > { %v2282_v6 = vadd.f32 %v5605_v5, %v7696_v28  ;;  %3333 = vmatprep.mubr.bf16.mxu0 %v6577_v9  ;;  %v6583_v28 = vld [vmem:[%s8607_s2 + $0x2d4] ss:$24 sps:$4 sm:$0xff]   ;;  %2706 = vperm.xlu1 %6447, %v2548_v20  }
 0x1f2   : > { %3423 = vmatmul.mubr.bf16.gmra.mrb[180].mxu1 %v6549_v36  ;;  %v7771_v49 = vpop.f32.mrb[124].mxu0 }
 0x1f3   : > { %v2349_v7 = vpack.c.bf16 %v2282_v6, %v2279_v32  ;;  %v5606_v15 = vpop.f32.mrb[132].mxu1  ;;  %3430 = vmatprep.mubr.bf16.mxu1 %v6553_v44  ;;  %v7779_v21 = vpop.f32.mrb[125].mxu0  ;;  %v6569_v32 = vld [vmem:[%s8607_s2 + $0x1bc] ss:$24 sps:$4 sm:$0xff]  }
 0x1f4   : > { %v5607_v11 = vpop.f32.mrb[133].mxu1  ;;  %v7782_v10 = vpop.f32.mrb[126].mxu0 }
 0x1f5   : > { %2365 = vst.msk [vmem:[#allocation2 + $0x140] sm:$0xff] %vm944_vm1, %v2349_v7  ;;  %v5608_v12 = vadd.f32 %v5607_v11, %v5606_v15  ;;  %v5609_v4 = vpop.f32.mrb[134].mxu1  ;;  %v7787_v55 = vpop.f32.mrb[127].mxu0  ;;  %v2503_v11 = vld [vmem:[#allocation2 + $0x110] sm:$0xff] }
 0x1f6   : > { %v5610_v48 = vpop.f32.mrb[135].mxu1 }
 0x1f7   : > { %v2287_v50 = vadd.f32 %v7680_v43, %v5608_v12  ;;  %v5611_v1 = vadd.f32 %v5610_v48, %v5609_v4  ;;  %v6575_v4 = vld [vmem:[%s8607_s2 + $0x1ec] ss:$24 sps:$4 sm:$0xff]  }
 0x1f8   : > { %3334 = vmatmul.mubr.bf16.gmra.mrb[184].mxu0 %v6579_v47 }
 0x1f9   : > { %v2290_v33 = vadd.f32 %v7691_v23, %v5611_v1  ;;  %3341 = vmatprep.mubr.bf16.mxu0 %v6583_v28 }
 0x1fa   : > { %3431 = vmatmul.mubr.bf16.gmra.mrb[184].mxu1 %v5096_v17 }
 0x1fb   : > { %v2350_v27 = vpack.c.bf16 %v2290_v33, %v2287_v50  ;;  %v5612_v54 = vpop.f32.mrb[136].mxu1  ;;  %3438 = vmatprep.mubr.bf16.mxu1 %v6558_v29  ;;  %v2434_v50 = vld [vmem:[%s8607_s2 + $0x1e8] sm:$0xff] }
 0x1fc   : > { %v5613_v34 = vpop.f32.mrb[137].mxu1  ;;  %v2509_v37 = vld [vmem:[#allocation2 + $0x140] sm:$0xff] }
 0x1fd   : > { %2366 = vst.msk [vmem:[#allocation2 + $0x148] sm:$0xff] %vm944_vm1, %v2350_v27  ;;  %v5614_v43 = vadd.f32 %v5613_v34, %v5612_v54  ;;  %v5615_v39 = vpop.f32.mrb[138].mxu1  ;;  %5892 = vmatprep.subr.bf16.mxu0 %v2509_v37  ;;  %6418 = vmatprep.subr.bf16.mxu1 %v2509_v37  ;;  %v6580_v34 = vld [vmem:[%s8607_s2 + $0x21c] ss:$24 sps:$4 sm:$0xff]  }
 0x1fe   : > { %v5616_v23 = vpop.f32.mrb[139].mxu1  ;;  %5893 = vmatpush3.bf16.msra.mxu0 %v2501_v8  ;;  %6426 = vmatpush3.bf16.msra.mxu1 %v2501_v8 }
 0x1ff   : > { %v5617_v46 = vadd.f32 %v5616_v23, %v5615_v39  ;;  %v2295_v18 = vadd.f32 %v5614_v43, %v7718_v19  ;;  %v2422_v19 = vld [vmem:[%s8607_s2 + $0x188] sm:$0xff] }
 0x200   : > { %3342 = vmatmul.mubr.bf16.gmra.mrb[188].mxu0 %v6585_v40  ;;  %v5108_v60 = vcombine.low %v2422_v19, %v2425_v52  ;;  %v4743_v19 = vld [vmem:[%s8610_s5] sm:$0xff] }
 0x201   : > { %v2298_v59 = vadd.f32 %v5617_v46, %v7726_v38  ;;  %3543 = vmatprep.mubr.bf16.mxu0 %v6591_v31  ;;  %4761 = vperm.xlu0 %6446, %v4743_v19  }
 0x202   : > { %3439 = vmatmul.mubr.bf16.gmra.mrb[188].mxu1 %v6560_v13 }
 0x203   : > { %v2351_v53 = vpack.c.bf16 %v2298_v59, %v2295_v18  ;;  %v5618_v41 = vpop.f32.mrb[140].mxu1  ;;  %3446 = vmatprep.mubr.bf16.mxu1 %v6564_v51  ;;  %v6586_v18 = vld [vmem:[%s8607_s2 + $0x24c] ss:$24 sps:$4 sm:$0xff]  }
 0x204   : > { %v5619_v56 = vpop.f32.mrb[141].mxu1  ;;  %v2510_v35 = vld [vmem:[#allocation2 + $0x148] sm:$0xff] }
 0x205   : > { %2367 = vst.msk [vmem:[#allocation2 + $0x150] sm:$0xff] %vm944_vm1, %v2351_v53  ;;  %v5620_v2 = vadd.f32 %v5619_v56, %v5618_v41  ;;  %v5621_v38 = vpop.f32.mrb[142].mxu1  ;;  %5894 = vmatprep.subr.bf16.mxu0 %v2510_v35  ;;  %6419 = vmatprep.subr.bf16.mxu1 %v2510_v35  ;;  %v2506_v35 = vld [vmem:[#allocation2 + $0x128] sm:$0xff] }
 0x206   : > { %v5622_v24 = vpop.f32.mrb[143].mxu1  ;;  %5895 = vmatpush3.bf16.msra.mxu0 %v2502_v61  ;;  %6427 = vmatpush3.bf16.msra.mxu1 %v2502_v61  ;;  %v6588_v61 = vld [vmem:[%s8607_s2 + $0x248] ss:$24 sps:$4 sm:$0xff]  }
 0x207   : > { %v2303_v9 = vadd.f32 %v7710_v62, %v5620_v2  ;;  %v5623_v3 = vadd.f32 %v5622_v24, %v5621_v38  ;;  %v6592_v24 = vld [vmem:[%s8607_s2 + $0x27c] ss:$24 sps:$4 sm:$0xff]   ;;  %4771 = vperm.xlu0 %6446, %v4745_v63  }
 0x209   : > { %v2306_v5 = vadd.f32 %v7721_v45, %v5623_v3  ;;  %v6571_v45 = vld [vmem:[%s8607_s2 + $0x1b8] ss:$24 sps:$4 sm:$0xff]  }
 0x20a   : > { %3447 = vmatmul.mubr.bf16.gmra.mrb[192].mxu1 %v5108_v60  ;;  %v2507_v60 = vld [vmem:[#allocation2 + $0x130] sm:$0xff] }
 0x20b   : > { %v2352_v36 = vpack.c.bf16 %v2306_v5, %v2303_v9  ;;  %v5624_v44 = vpop.f32.mrb[144].mxu1  ;;  %3454 = vmatprep.mubr.bf16.mxu1 %v6569_v32  ;;  %v4748_v32 = vld [vmem:[%s8610_s5 + $0x28] sm:$0xff]  ;;  %v6594_v5 = vld [vmem:[%s8607_s2 + $0x278] ss:$24 sps:$4 sm:$0xff]  }
 0x20c   : > { %v5625_v6 = vpop.f32.mrb[145].mxu1  ;;  %v2511_v7 = vld [vmem:[#allocation2 + $0x150] sm:$0xff] }
 0x20d   : > { %2368 = vst.msk [vmem:[#allocation2 + $0x158] sm:$0xff] %vm944_vm1, %v2352_v36  ;;  %v5626_v15 = vadd.f32 %v5625_v6, %v5624_v44  ;;  %v5627_v62 = vpop.f32.mrb[146].mxu1  ;;  %5896 = vmatprep.subr.bf16.mxu0 %v2511_v7  ;;  %6420 = vmatprep.subr.bf16.mxu1 %v2511_v7  ;;  %v6598_v36 = vld [vmem:[%s8607_s2 + $0x2ac] ss:$24 sps:$4 sm:$0xff]   ;;  %v4749_v44 = vld [vmem:[%s8610_s5 + $0x30] sm:$0xff]  ;;  %v4750_v6 = vld [vmem:[%s8610_s5 + $0x38] sm:$0xff] }
 0x20e   : > { %v5628_v14 = vpop.f32.mrb[147].mxu1  ;;  %5897 = vmatpush3.bf16.msra.mxu0 %v2503_v11  ;;  %6428 = vmatpush3.bf16.msra.mxu1 %v2503_v11  ;;  %v4751_v11 = vld [vmem:[%s8610_s5 + $0x40] sm:$0xff] }
 0x20f   : > { %v5629_v16 = vadd.f32 %v5628_v14, %v5627_v62  ;;  %v2311_v12 = vadd.f32 %v5626_v15, %v7744_v58  ;;  %v2437_v58 = vld [vmem:[%s8607_s2 + $0x200] sm:$0xff]  ;;  %v2508_v15 = vld [vmem:[#allocation2 + $0x138] sm:$0xff]  ;;  %v6589_v62 = vld [vmem:[%s8607_s2 + $0x10] ss:$24 sps:$4 sm:$0xff]  }
 0x210   : > { %v5120_v54 = vcombine.low %v2434_v50, %v2437_v58  ;;  %v6595_v14 = vld [vmem:[%s8607_s2 + $0x44] ss:$24 sps:$4 sm:$0xff]   ;;  %v6606_v50 = vld [vmem:[%s8607_s2 + $0x2d8] ss:$24 sps:$4 sm:$0xff]  }
 0x211   : > { %v2314_v47 = vadd.f32 %v5629_v16, %v7752_v0  ;;  %v2504_v0 = vld [vmem:[#allocation2 + $0x118] sm:$0xff]  ;;  %v4752_v16 = vld [vmem:[%s8610_s5 + $0x48] sm:$0xff] }
 0x212   : > { %3455 = vmatmul.mubr.bf16.gmra.mrb[196].mxu1 %v6571_v45  ;;  %v6604_v45 = vld [vmem:[%s8607_s2 + $0x2dc] ss:$24 sps:$4 sm:$0xff]  }
 0x213   : > { %v2353_v48 = vpack.c.bf16 %v2314_v47, %v2311_v12  ;;  %v5630_v28 = vpop.f32.mrb[148].mxu1  ;;  %3462 = vmatprep.mubr.bf16.mxu1 %v6575_v4  ;;  %v6600_v12 = vld [vmem:[%s8607_s2 + $0x2a8] ss:$24 sps:$4 sm:$0xff]   ;;  %v4753_v4 = vld [vmem:[%s8610_s5 + $0x50] sm:$0xff]  ;;  %v4754_v47 = vld [vmem:[%s8610_s5 + $0x58] sm:$0xff] }
 0x214   : > { %v5631_v22 = vpop.f32.mrb[149].mxu1  ;;  %v2512_v26 = vld [vmem:[#allocation2 + $0x158] sm:$0xff] }
 0x215   : > { %2369 = vst.msk [vmem:[#allocation2 + $0x160] sm:$0xff] %vm944_vm1, %v2353_v48  ;;  %v5632_v1 = vadd.f32 %v5631_v22, %v5630_v28  ;;  %v5633_v17 = vpop.f32.mrb[150].mxu1  ;;  %5898 = vmatprep.subr.bf16.mxu0 %v2512_v26  ;;  %6421 = vmatprep.subr.bf16.mxu1 %v2512_v26  ;;  %v6597_v48 = vld [vmem:[%s8607_s2 + $0x40] ss:$24 sps:$4 sm:$0xff]   ;;  %v6601_v22 = vld [vmem:[%s8607_s2 + $0x74] ss:$24 sps:$4 sm:$0xff]  }
 0x216   : > { %v5634_v29 = vpop.f32.mrb[151].mxu1  ;;  %5899 = vmatpush3.bf16.msra.mxu0 %v2504_v0  ;;  %6429 = vmatpush3.bf16.msra.mxu1 %v2504_v0  ;;  %v4755_v28 = vld [vmem:[%s8610_s5 + $0x60] sm:$0xff]  ;;  %v4756_v26 = vld [vmem:[%s8610_s5 + $0x68] sm:$0xff] }
 0x217   : > { %v2319_v33 = vadd.f32 %v7742_v57, %v5632_v1  ;;  %v5635_v27 = vadd.f32 %v5634_v29, %v5633_v17  ;;  %v2505_v57 = vld [vmem:[#allocation2 + $0x120] sm:$0xff]  ;;  %v4757_v1 = vld [vmem:[%s8610_s5 + $0x70] sm:$0xff]  ;;  %v4758_v17 = vld [vmem:[%s8610_s5 + $0x78] sm:$0xff] }
 0x218   : > { %v6612_v58 = vld [vmem:[%s8607_s2 + $0x2e4] ss:$24 sps:$4 sm:$0xff]   ;;  %v6603_v0 = vld [vmem:[%s8607_s2 + $0x70] ss:$24 sps:$4 sm:$0xff]  }
 0x219   : > { %v2322_v37 = vadd.f32 %v7747_v30, %v5635_v27  ;;  %v6582_v30 = vld [vmem:[%s8607_s2 + $0x218] ss:$24 sps:$4 sm:$0xff]   ;;  %v6607_v29 = vld [vmem:[%s8607_s2 + $0xa4] ss:$24 sps:$4 sm:$0xff]  }
 0x21a   : > { %3463 = vmatmul.mubr.bf16.gmra.mrb[200].mxu1 %v5120_v54  ;;  %v6609_v27 = vld [vmem:[%s8607_s2 + $0xa0] ss:$24 sps:$4 sm:$0xff]   ;;  %v6613_v54 = vld [vmem:[%s8607_s2 + $0xd4] ss:$24 sps:$4 sm:$0xff]  }
 0x21b   : > { %v2354_v43 = vpack.c.bf16 %v2322_v37, %v2319_v33  ;;  %v5636_v39 = vpop.f32.mrb[152].mxu1  ;;  %3470 = vmatprep.mubr.bf16.mxu1 %v6580_v34  ;;  %v6610_v33 = vld [vmem:[%s8607_s2 + $0x2e0] ss:$24 sps:$4 sm:$0xff]   ;;  %v6615_v34 = vld [vmem:[%s8607_s2 + $0xd0] ss:$24 sps:$4 sm:$0xff]  }
 0x21c   : > { %v5637_v8 = vpop.f32.mrb[153].mxu1  ;;  %v2513_v40 = vld [vmem:[#allocation2 + $0x160] sm:$0xff] }
 0x21d   : > { %2370 = vst.msk [vmem:[#allocation2 + $0x168] sm:$0xff] %vm944_vm1, %v2354_v43  ;;  %v5638_v23 = vadd.f32 %v5637_v8, %v5636_v39  ;;  %v5639_v31 = vpop.f32.mrb[154].mxu1  ;;  %5900 = vmatprep.subr.bf16.mxu0 %v2513_v40  ;;  %6422 = vmatprep.subr.bf16.mxu1 %v2513_v40  ;;  %v6616_v37 = vld [vmem:[%s8607_s2 + $0x104] ss:$24 sps:$4 sm:$0xff]   ;;  %v6618_v39 = vld [vmem:[%s8607_s2 + $0x100] ss:$24 sps:$4 sm:$0xff]  }
 0x21e   : > { %v5640_v25 = vpop.f32.mrb[155].mxu1  ;;  %5901 = vmatpush3.bf16.msra.mxu0 %v2505_v57  ;;  %6430 = vmatpush3.bf16.msra.mxu1 %v2505_v57  ;;  %v6619_v40 = vld [vmem:[%s8607_s2 + $0x134] ss:$24 sps:$4 sm:$0xff]  }
 0x21f   : > { %v5641_v42 = vadd.f32 %v5640_v25, %v5639_v31  ;;  %v2327_v46 = vadd.f32 %v5638_v23, %v7779_v21 }
 0x221   : > { %v2330_v13 = vadd.f32 %v5641_v42, %v7787_v55  ;;  %v4744_v55 = vld [vmem:[%s8610_s5 + $0x8] sm:$0xff] }
 0x222   : > { %3471 = vmatmul.mubr.bf16.gmra.mrb[204].mxu1 %v6582_v30  ;;  %4766 = vperm.xlu1 %6447, %v4744_v55  }
 0x223   : > { %v2355_v51 = vpack.c.bf16 %v2330_v13, %v2327_v46  ;;  %v5642_v59 = vpop.f32.mrb[156].mxu1  ;;  %3478 = vmatprep.mubr.bf16.mxu1 %v6586_v18  ;;  %v6621_v46 = vld [vmem:[%s8607_s2 + $0x130] ss:$24 sps:$4 sm:$0xff]   ;;  %v6622_v18 = vld [vmem:[%s8607_s2 + $0x164] ss:$24 sps:$4 sm:$0xff]  }
 0x224   : > { %v5643_v53 = vpop.f32.mrb[157].mxu1  ;;  %v2514_v41 = vld [vmem:[#allocation2 + $0x168] sm:$0xff] }
 0x225   : > { %2371 = vst.msk [vmem:[#allocation2 + $0x170] sm:$0xff] %vm944_vm1, %v2355_v51  ;;  %v5644_v56 = vadd.f32 %v5643_v53, %v5642_v59  ;;  %v5645_v21 = vpop.f32.mrb[158].mxu1  ;;  %5902 = vmatprep.subr.bf16.mxu0 %v2514_v41  ;;  %6423 = vmatprep.subr.bf16.mxu1 %v2514_v41 }
 0x226   : > { %v5646_v52 = vpop.f32.mrb[159].mxu1  ;;  %5903 = vmatpush3.bf16.msra.mxu0 %v2506_v35  ;;  %6431 = vmatpush3.bf16.msra.mxu1 %v2506_v35  ;;  %v6625_v35 = vld [vmem:[%s8607_s2 + $0x194] ss:$24 sps:$4 sm:$0xff]  }
 0x227   : > { %v2335_v2 = vadd.f32 %v7771_v49, %v5644_v56  ;;  %v5647_v38 = vadd.f32 %v5646_v52, %v5645_v21  ;;  %v4746_v49 = vld [vmem:[%s8610_s5 + $0x18] sm:$0xff] }
 0x228   : > { %4776 = vperm.xlu1 %6447, %v4746_v49   ;;  %v6624_v56 = vld [vmem:[%s8607_s2 + $0x160] ss:$24 sps:$4 sm:$0xff]  }
 0x229   : > { %v2338_v20 = vadd.f32 %v7782_v10, %v5647_v38  ;;  %v4747_v10 = vld [vmem:[%s8610_s5 + $0x20] sm:$0xff] }
 0x22a   : > { %3479 = vmatmul.mubr.bf16.gmra.mrb[208].mxu1 %v6588_v61  ;;  %4781 = vperm.xlu0 %6446, %v4747_v10   ;;  %v6627_v61 = vld [vmem:[%s8607_s2 + $0x190] ss:$24 sps:$4 sm:$0xff]   ;;  %v6630_v10 = vld [vmem:[%s8607_s2 + $0x1c0] ss:$24 sps:$4 sm:$0xff]  }
 0x22b   : > { %v2356_v9 = vpack.c.bf16 %v2338_v20, %v2335_v2  ;;  %3486 = vmatprep.mubr.bf16.mxu1 %v6592_v24  ;;  %v6628_v20 = vld [vmem:[%s8607_s2 + $0x1c4] ss:$24 sps:$4 sm:$0xff]  }
 0x22c   : > { %v2515_v3 = vld [vmem:[#allocation2 + $0x170] sm:$0xff]  ;;  %4786 = vperm.xlu1 %6447, %v4748_v32  }
 0x22d   : > { %2372 = vst.msk [vmem:[#allocation2 + $0x178] sm:$0xff] %vm944_vm1, %v2356_v9  ;;  %5904 = vmatprep.subr.bf16.mxu0 %v2515_v3  ;;  %6424 = vmatprep.subr.bf16.mxu1 %v2515_v3 }
 0x22e   : > { %5905 = vmatpush3.bf16.msra.mxu0 %v2507_v60  ;;  %6432 = vmatpush3.bf16.msra.mxu1 %v2507_v60 }
 0x22f   : > { %4791 = vperm.xlu0 %6446, %v4749_v44  }
 0x230   : > { %4796 = vperm.xlu1 %6447, %v4750_v6  }
 0x232   : > { %3487 = vmatmul.mubr.bf16.gmra.mrb[212].mxu1 %v6594_v5  ;;  %v6631_v5 = vld [vmem:[%s8607_s2 + $0x1f4] ss:$24 sps:$4 sm:$0xff]  }
 0x233   : > { %3494 = vmatprep.mubr.bf16.mxu1 %v6598_v36  ;;  %4801 = vperm.xlu0 %6446, %v4751_v11  }
 0x234   : > { %v2516_v7 = vld [vmem:[#allocation2 + $0x178] sm:$0xff]  ;;  %4806 = vperm.xlu1 %6447, %v4752_v16  }
 0x235   : > { %5906 = vmatprep.subr.bf16.mxu0 %v2516_v7  ;;  %6425 = vmatprep.subr.bf16.mxu1 %v2516_v7 }
 0x236   : > { %5907 = vmatpush3.bf16.msra.mxu0 %v2508_v15  ;;  %6433 = vmatpush3.bf16.msra.mxu1 %v2508_v15 }
 0x237   : > { %4811 = vperm.xlu0 %6446, %v4753_v4  }
 0x238   : > { %4816 = vperm.xlu1 %6447, %v4754_v47  }
 0x239   : > { %3544 = vmatmul.mubr.bf16.vlgmr.msra.gmra.mrb[192].mxu0 %v6589_v62  ;;  %v6633_v62 = vld [vmem:[%s8607_s2 + $0x1f0] ss:$24 sps:$4 sm:$0xff]  }
 0x23a   : > { %3551 = vmatprep.mubr.bf16.mxu0 %v6595_v14  ;;  %3495 = vmatmul.mubr.bf16.gmra.mrb[216].mxu1 %v6600_v12  ;;  %v6634_v14 = vld [vmem:[%s8607_s2 + $0x224] ss:$24 sps:$4 sm:$0xff]  }
 0x23b   : > { %3502 = vmatprep.mubr.bf16.mxu1 %v6604_v45  ;;  %4821 = vperm.xlu0 %6446, %v4755_v28  }
 0x23c   : > { %4826 = vperm.xlu1 %6447, %v4756_v26  }
 0x23f   : > { %4831 = vperm.xlu0 %6446, %v4757_v1  }
 0x240   : > { %4836 = vperm.xlu1 %6447, %v4758_v17   ;;  %v3720_v17 = vlaneseq }
 0x241   : > { %3552 = vmatmul.mubr.bf16.gmra.mrb[196].mxu0 %v6597_v48  ;;  %v6636_v48 = vld [vmem:[%s8607_s2 + $0x220] ss:$24 sps:$4 sm:$0xff]  }
 0x242   : > { %3559 = vmatprep.mubr.bf16.mxu0 %v6601_v22  ;;  %3503 = vmatmul.mubr.bf16.gmra.mrb[220].mxu1 %v6606_v50  ;;  %v6637_v22 = vld [vmem:[%s8607_s2 + $0x254] ss:$24 sps:$4 sm:$0xff]  }
 0x243   : > { %3663 = vmatprep.mubr.bf16.mxu1 %v6612_v58 }
 0x249   : > { %3560 = vmatmul.mubr.bf16.gmra.mrb[200].mxu0 %v6603_v0  ;;  %v8051_v0 = vand.u32 127, %v3720_v17 }
 0x24a   : > { %3567 = vmatprep.mubr.bf16.mxu0 %v6607_v29  ;;  %3664 = vmatmul.mubr.bf16.vlgmr.msra.gmra.mrb[224].mxu1 %v6610_v33  ;;  %v8053_v33 = vshrl.u32 %v3720_v17, 7 }
 0x251   : > { %3568 = vmatmul.mubr.bf16.gmra.mrb[204].mxu0 %v6609_v27  ;;  %v5154_v27 = vadd.s32 4294967295, %v8051_v0 }
 0x252   : > { %3575 = vmatprep.mubr.bf16.mxu0 %v6613_v54  ;;  %v6639_v54 = vld [vmem:[%s8607_s2 + $0x250] ss:$24 sps:$4 sm:$0xff]  }
 0x253   : > { %vm3725_vm2 = vcmp.eq.s32.totalorder %v8053_v33, %v5154_v27 }
 0x259   : > { %3576 = vmatmul.mubr.bf16.gmra.mrb[208].mxu0 %v6615_v34 }
 0x25a   : > { %3583 = vmatprep.mubr.bf16.mxu0 %v6616_v37  ;;  %v6640_v37 = vld [vmem:[%s8607_s2 + $0x284] ss:$24 sps:$4 sm:$0xff]  }
 0x25b   : > { %v5684_v43 = vpop.f32.mrb[128].mxu0 }
 0x25c   : > { %v5685_v8 = vpop.f32.mrb[129].mxu0 }
 0x25d   : > { %v7987_v23 = vadd.f32 %v5685_v8, %v5684_v43  ;;  %v5687_v31 = vpop.f32.mrb[130].mxu0  ;;  %v2552_v43 = vpop.permute.xlu0 %2551 }
 0x25e   : > { %v5688_v57 = vpop.f32.mrb[131].mxu0 }
 0x25f   : > { %v7989_v25 = vadd.f32 %v5688_v57, %v5687_v31  ;;  %v6727_v31 = vmov 0.0  }
 0x260   : > { %v5155_v57 = vsel %vm3725_vm2, 1.0, %v6727_v31 }
 0x261   : > { %3584 = vmatmul.mubr.bf16.gmra.mrb[212].mxu0 %v6618_v39 }
 0x262   : > { %3591 = vmatprep.mubr.bf16.mxu0 %v6619_v40 }
 0x263   : > { %v5690_v42 = vpop.f32.mrb[132].mxu0 }
 0x264   : > { %v5691_v30 = vpop.f32.mrb[133].mxu0 }
 0x265   : > { %v7997_v13 = vadd.f32 %v5691_v30, %v5690_v42  ;;  %v5693_v51 = vpop.f32.mrb[134].mxu0  ;;  %v6728_v30 = vmov 65535  }
 0x266   : > { %v5694_v59 = vpop.f32.mrb[135].mxu0 }
 0x267   : > { %v7999_v53 = vadd.f32 %v5694_v59, %v5693_v51 }
 0x269   : > { %3592 = vmatmul.mubr.bf16.gmra.mrb[216].mxu0 %v6621_v46  ;;  %v3728_v46 = vpack.c.bf16 %v5155_v57, %v5155_v57 }
 0x26a   : > { %3599 = vmatprep.mubr.bf16.mxu0 %v6622_v18  ;;  %v3784_v18 = vsel %vm3782_vm3, 4294967295, %v6728_v30 }
 0x26b   : > { %v5696_v41 = vpop.f32.mrb[136].mxu0  ;;  %v8068_v51 = vsel %vm3783_vm4, %v3784_v18, 0 }
 0x26c   : > { %v5697_v21 = vpop.f32.mrb[137].mxu0  ;;  %v3787_v59 = vand.u32 %v8068_v51, %v3728_v46 }
 0x26d   : > { %v8007_v19 = vadd.f32 %v5697_v21, %v5696_v41  ;;  %v5699_v52 = vpop.f32.mrb[138].mxu0  ;;  %v2557_v41 = vpop.permute.xlu0 %2556  ;;  %v6642_v21 = vld [vmem:[%s8607_s2 + $0x280] ss:$24 sps:$4 sm:$0xff]  }
 0x26e   : > { %v5700_v55 = vpop.f32.mrb[139].mxu0  ;;  %6350 = vmatprep.subr.bf16.mxu1 %v3787_v59 }
 0x26f   : > { %v8009_v2 = vadd.f32 %v5700_v55, %v5699_v52  ;;  %v6643_v55 = vld [vmem:[%s8607_s2 + $0x2b4] ss:$24 sps:$4 sm:$0xff]   ;;  %6351 = vmatpush3.bf16.msra.mxu1 %v3787_v59 }
 0x271   : > { %3600 = vmatmul.mubr.bf16.gmra.mrb[220].mxu0 %v6624_v56 }
 0x272   : > { %3607 = vmatprep.mubr.bf16.mxu0 %v6625_v35  ;;  %v2562_v35 = vpop.permute.xlu1 %2561 }
 0x273   : > { %v5702_v38 = vpop.f32.mrb[140].mxu0 }
 0x274   : > { %v5703_v24 = vpop.f32.mrb[141].mxu0 }
 0x275   : > { %v8017_v63 = vadd.f32 %v5703_v24, %v5702_v38  ;;  %v5705_v49 = vpop.f32.mrb[142].mxu0 }
 0x276   : > { %v5706_v9 = vpop.f32.mrb[143].mxu0 }
 0x277   : > { %v8019_v3 = vadd.f32 %v5706_v9, %v5705_v49  ;;  %v3224_v9 = vadd.f32 %v7987_v23, %v2552_v43  ;;  %v2567_v23 = vpop.permute.xlu1 %2566 }
 0x279   : > { %3608 = vmatmul.mubr.bf16.gmra.mrb[224].mxu0 %v6627_v61 }
 0x27a   : > { %3615 = vmatprep.mubr.bf16.mxu0 %v6628_v20 }
 0x27b   : > { %v5708_v60 = vpop.f32.mrb[144].mxu0  ;;  %v2577_v43 = vpop.permute.xlu1 %2576 }
 0x27c   : > { %v5709_v32 = vpop.f32.mrb[145].mxu0 }
 0x27d   : > { %v8027_v36 = vadd.f32 %v5709_v32, %v5708_v60  ;;  %v5711_v44 = vpop.f32.mrb[146].mxu0 }
 0x27e   : > { %v5712_v6 = vpop.f32.mrb[147].mxu0 }
 0x27f   : > { %v8029_v7 = vadd.f32 %v5712_v6, %v5711_v44  ;;  %v3227_v6 = vadd.f32 %v7989_v25, %v2557_v41 }
 0x281   : > { %3616 = vmatmul.mubr.bf16.gmra.mrb[228].mxu0 %v6630_v10 }
 0x282   : > { %3623 = vmatprep.mubr.bf16.mxu0 %v6631_v5 }
 0x283   : > { %v5714_v15 = vpop.f32.mrb[148].mxu0 }
 0x284   : > { %v5715_v11 = vpop.f32.mrb[149].mxu0 }
 0x285   : > { %v8037_v16 = vadd.f32 %v5715_v11, %v5714_v15  ;;  %v5717_v12 = vpop.f32.mrb[150].mxu0 }
 0x286   : > { %v5718_v45 = vpop.f32.mrb[151].mxu0 }
 0x287   : > { %v8039_v4 = vadd.f32 %v5718_v45, %v5717_v12 }
 0x289   : > { %3624 = vmatmul.mubr.bf16.gmra.mrb[232].mxu0 %v6633_v62 }
 0x28a   : > { %3631 = vmatprep.mubr.bf16.mxu0 %v6634_v14  ;;  %v6645_v14 = vld [vmem:[%s8607_s2 + $0x2b0] ss:$24 sps:$4 sm:$0xff]  }
 0x28b   : > { %v5720_v47 = vpop.f32.mrb[152].mxu0 }
 0x28c   : > { %v5721_v28 = vpop.f32.mrb[153].mxu0 }
 0x28d   : > { %v8047_v26 = vadd.f32 %v5721_v28, %v5720_v47  ;;  %v5723_v50 = vpop.f32.mrb[154].mxu0 }
 0x28e   : > { %v5724_v58 = vpop.f32.mrb[155].mxu0 }
 0x28f   : > { %v8049_v1 = vadd.f32 %v5724_v58, %v5723_v50  ;;  %v3232_v50 = vadd.f32 %v7997_v13, %v2562_v35 }
 0x291   : > { %3632 = vmatmul.mubr.bf16.gmra.mrb[236].mxu0 %v6636_v48 }
 0x292   : > { %3639 = vmatprep.mubr.bf16.mxu0 %v6637_v22 }
 0x293   : > { %v5726_v29 = vpop.f32.mrb[156].mxu0 }
 0x294   : > { %v5727_v34 = vpop.f32.mrb[157].mxu0 }
 0x295   : > { %v8062_v39 = vadd.f32 %v5727_v34, %v5726_v29  ;;  %v5729_v8 = vpop.f32.mrb[158].mxu0 }
 0x296   : > { %v5730_v40 = vpop.f32.mrb[159].mxu0 }
 0x297   : > { %v8066_v42 = vadd.f32 %v5730_v40, %v5729_v8  ;;  %v2572_v40 = vpop.permute.xlu0 %2571 }
 0x299   : > { %3640 = vmatmul.mubr.bf16.gmra.mrb[240].mxu0 %v6639_v54  ;;  %v3235_v54 = vadd.f32 %v7999_v53, %v2567_v23 }
 0x29a   : > { %3647 = vmatprep.mubr.bf16.mxu0 %v6640_v37 }
 0x29b   : > { %v5732_v56 = vpop.f32.mrb[160].mxu0 }
 0x29c   : > { %v5733_v52 = vpop.f32.mrb[161].mxu0 }
 0x29d   : > { %v5796_v38 = vpop.f32.mrb[160].mxu1  ;;  %v8077_v61 = vadd.f32 %v5733_v52, %v5732_v56  ;;  %v5735_v24 = vpop.f32.mrb[162].mxu0  ;;  %v3243_v52 = vadd.f32 %v8009_v2, %v2577_v43 }
 0x29e   : > { %v5797_v20 = vpop.f32.mrb[161].mxu1  ;;  %v5736_v49 = vpop.f32.mrb[163].mxu0 }
 0x29f   : > { %v5798_v60 = vadd.f32 %v5797_v20, %v5796_v38  ;;  %v5799_v10 = vpop.f32.mrb[162].mxu1  ;;  %v8080_v32 = vadd.f32 %v5736_v49, %v5735_v24  ;;  %v2587_v20 = vpop.permute.xlu1 %2586 }
 0x2a0   : > { %v5800_v5 = vpop.f32.mrb[163].mxu1 }
 0x2a1   : > { %3648 = vmatmul.mubr.bf16.gmra.mrb[244].mxu0 %v6642_v21  ;;  %v8082_v44 = vadd.f32 %v5798_v60, %v3224_v9  ;;  %v5801_v15 = vadd.f32 %v5800_v5, %v5799_v10  ;;  %v3240_v21 = vadd.f32 %v8007_v19, %v2572_v40  ;;  %v2582_v9 = vpop.permute.xlu0 %2581 }
 0x2a2   : > { %3655 = vmatprep.mubr.bf16.mxu0 %v6643_v55  ;;  %v3248_v23 = vadd.f32 %v8017_v63, %v2582_v9 }
 0x2a3   : > { %v8085_v62 = vadd.f32 %v5801_v15, %v3227_v6  ;;  %v5738_v11 = vpop.f32.mrb[164].mxu0 }
 0x2a4   : > { %v5739_v12 = vpop.f32.mrb[165].mxu0 }
 0x2a5   : > { %v5802_v45 = vpop.f32.mrb[164].mxu1  ;;  %v8090_v47 = vadd.f32 %v5739_v12, %v5738_v11  ;;  %v5741_v48 = vpop.f32.mrb[166].mxu0 }
 0x2a6   : > { %v5803_v28 = vpop.f32.mrb[165].mxu1  ;;  %v5742_v22 = vpop.f32.mrb[167].mxu0 }
 0x2a7   : > { %v5804_v58 = vadd.f32 %v5803_v28, %v5802_v45  ;;  %v5805_v25 = vpop.f32.mrb[166].mxu1  ;;  %v8093_v17 = vadd.f32 %v5742_v22, %v5741_v48  ;;  %v3251_v45 = vadd.f32 %v8019_v3, %v2587_v20 }
 0x2a8   : > { %v5806_v29 = vpop.f32.mrb[167].mxu1 }
 0x2a9   : > { %3656 = vmatmul.mubr.bf16.gmra.mrb[248].mxu0 %v6645_v14  ;;  %v8095_v27 = vadd.f32 %v5804_v58, %v3232_v50  ;;  %v5807_v34 = vadd.f32 %v5806_v29, %v5805_v25  ;;  %v2597_v50 = vpop.permute.xlu1 %2596  ;;  %v2592_v25 = vpop.permute.xlu0 %2591 }
 0x2ab   : > { %v8098_v37 = vadd.f32 %v5807_v34, %v3235_v54  ;;  %v5744_v8 = vpop.f32.mrb[168].mxu0 }
 0x2ac   : > { %v5745_v57 = vpop.f32.mrb[169].mxu0 }
 0x2ad   : > { %v5808_v46 = vpop.f32.mrb[168].mxu1  ;;  %v8100_v30 = vadd.f32 %v5745_v57, %v5744_v8  ;;  %v5747_v13 = vpop.f32.mrb[170].mxu0 }
 0x2ae   : > { %v5809_v18 = vpop.f32.mrb[169].mxu1  ;;  %v5748_v59 = vpop.f32.mrb[171].mxu0 }
 0x2af   : > { %v5810_v41 = vadd.f32 %v5809_v18, %v5808_v46  ;;  %v5811_v56 = vpop.f32.mrb[170].mxu1  ;;  %v8103_v35 = vadd.f32 %v5748_v59, %v5747_v13  ;;  %v3256_v46 = vadd.f32 %v8027_v36, %v2592_v25  ;;  %v3259_v18 = vadd.f32 %v8029_v7, %v2597_v50 }
 0x2b0   : > { %v5812_v53 = vpop.f32.mrb[171].mxu1 }
 0x2b1   : > { %v8106_v55 = vadd.f32 %v5810_v41, %v3240_v21  ;;  %v5813_v38 = vadd.f32 %v5812_v53, %v5811_v56  ;;  %v2607_v21 = vpop.permute.xlu1 %2606 }
 0x2b3   : > { %v8108_v24 = vadd.f32 %v5813_v38, %v3243_v52  ;;  %v5750_v49 = vpop.f32.mrb[172].mxu0  ;;  %v2602_v52 = vpop.permute.xlu0 %2601 }
 0x2b4   : > { %v5751_v60 = vpop.f32.mrb[173].mxu0 }
 0x2b5   : > { %v5814_v10 = vpop.f32.mrb[172].mxu1  ;;  %v8110_v5 = vadd.f32 %v5751_v60, %v5750_v49  ;;  %v5753_v6 = vpop.f32.mrb[174].mxu0 }
 0x2b6   : > { %v5815_v15 = vpop.f32.mrb[173].mxu1  ;;  %v5754_v19 = vpop.f32.mrb[175].mxu0 }
 0x2b7   : > { %v5816_v11 = vadd.f32 %v5815_v15, %v5814_v10  ;;  %v5817_v14 = vpop.f32.mrb[174].mxu1  ;;  %v8113_v2 = vadd.f32 %v5754_v19, %v5753_v6  ;;  %v3264_v15 = vadd.f32 %v8037_v16, %v2602_v52  ;;  %v2612_v50 = vpop.permute.xlu0 %2611 }
 0x2b8   : > { %v5818_v12 = vpop.f32.mrb[175].mxu1 }
 0x2b9   : > { %v8116_v48 = vadd.f32 %v5816_v11, %v3248_v23  ;;  %v5819_v28 = vadd.f32 %v5818_v12, %v5817_v14  ;;  %v3267_v11 = vadd.f32 %v8039_v4, %v2607_v21 }
 0x2bb   : > { %v8118_v22 = vadd.f32 %v5819_v28, %v3251_v45  ;;  %v5756_v58 = vpop.f32.mrb[176].mxu0  ;;  %v2617_v45 = vpop.permute.xlu1 %2616 }
 0x2bc   : > { %v5757_v29 = vpop.f32.mrb[177].mxu0  ;;  %v2622_v52 = vpop.permute.xlu0 %2621 }
 0x2bd   : > { %v5820_v54 = vpop.f32.mrb[176].mxu1  ;;  %v8120_v34 = vadd.f32 %v5757_v29, %v5756_v58  ;;  %v5759_v43 = vpop.f32.mrb[178].mxu0 }
 0x2be   : > { %v5821_v8 = vpop.f32.mrb[177].mxu1  ;;  %v5760_v63 = vpop.f32.mrb[179].mxu0 }
 0x2bf   : > { %v5822_v40 = vadd.f32 %v5821_v8, %v5820_v54  ;;  %v5823_v57 = vpop.f32.mrb[178].mxu1  ;;  %v8123_v3 = vadd.f32 %v5760_v63, %v5759_v43  ;;  %v2627_v21 = vpop.permute.xlu1 %2626 }
 0x2c0   : > { %v5824_v13 = vpop.f32.mrb[179].mxu1 }
 0x2c1   : > { %v8126_v59 = vadd.f32 %v5822_v40, %v3256_v46  ;;  %v5825_v41 = vadd.f32 %v5824_v13, %v5823_v57  ;;  %v3272_v40 = vadd.f32 %v8047_v26, %v2612_v50  ;;  %v3275_v46 = vadd.f32 %v8049_v1, %v2617_v45  ;;  %v2632_v50 = vpop.permute.xlu0 %2631 }
 0x2c3   : > { %v8128_v56 = vadd.f32 %v5825_v41, %v3259_v18  ;;  %v5762_v53 = vpop.f32.mrb[180].mxu0 }
 0x2c4   : > { %v5763_v38 = vpop.f32.mrb[181].mxu0 }
 0x2c5   : > { %v5826_v20 = vpop.f32.mrb[180].mxu1  ;;  %v8130_v49 = vadd.f32 %v5763_v38, %v5762_v53  ;;  %v5765_v9 = vpop.f32.mrb[182].mxu0 }
 0x2c6   : > { %v5827_v60 = vpop.f32.mrb[181].mxu1  ;;  %v5766_v36 = vpop.f32.mrb[183].mxu0 }
 0x2c7   : > { %v5828_v10 = vadd.f32 %v5827_v60, %v5826_v20  ;;  %v5829_v6 = vpop.f32.mrb[182].mxu1  ;;  %v8133_v7 = vadd.f32 %v5766_v36, %v5765_v9 }
 0x2c8   : > { %v5830_v19 = vpop.f32.mrb[183].mxu1 }
 0x2c9   : > { %v8136_v14 = vadd.f32 %v5828_v10, %v3264_v15  ;;  %v5831_v23 = vadd.f32 %v5830_v19, %v5829_v6  ;;  %v3280_v15 = vadd.f32 %v8062_v39, %v2622_v52 }
 0x2cb   : > { %v8138_v12 = vadd.f32 %v5831_v23, %v3267_v11  ;;  %v5768_v28 = vpop.f32.mrb[184].mxu0  ;;  %v3283_v11 = vadd.f32 %v8066_v42, %v2627_v21 }
 0x2cc   : > { %v5769_v58 = vpop.f32.mrb[185].mxu0 }
 0x2cd   : > { %v5832_v25 = vpop.f32.mrb[184].mxu1  ;;  %v8140_v29 = vadd.f32 %v5769_v58, %v5768_v28  ;;  %v5771_v54 = vpop.f32.mrb[186].mxu0 }
 0x2ce   : > { %v5833_v43 = vpop.f32.mrb[185].mxu1  ;;  %v5772_v16 = vpop.f32.mrb[187].mxu0 }
 0x2cf   : > { %v5834_v8 = vadd.f32 %v5833_v43, %v5832_v25  ;;  %v5835_v63 = vpop.f32.mrb[186].mxu1  ;;  %v8143_v4 = vadd.f32 %v5772_v16, %v5771_v54  ;;  %v2637_v54 = vpop.permute.xlu1 %2636 }
 0x2d0   : > { %v5836_v57 = vpop.f32.mrb[187].mxu1  ;;  %v3291_v39 = vadd.f32 %v8080_v32, %v2637_v54 }
 0x2d1   : > { %v8146_v13 = vadd.f32 %v5834_v8, %v3272_v40  ;;  %v5837_v18 = vadd.f32 %v5836_v57, %v5835_v63  ;;  %v3288_v8 = vadd.f32 %v8077_v61, %v2632_v50 }
 0x2d3   : > { %v8148_v41 = vadd.f32 %v5837_v18, %v3275_v46  ;;  %v5774_v53 = vpop.f32.mrb[188].mxu0  ;;  %v2642_v46 = vpop.permute.xlu0 %2641 }
 0x2d4   : > { %v5775_v38 = vpop.f32.mrb[189].mxu0 }
 0x2d5   : > { %v5838_v20 = vpop.f32.mrb[188].mxu1  ;;  %v8150_v9 = vadd.f32 %v5775_v38, %v5774_v53  ;;  %v5777_v60 = vpop.f32.mrb[190].mxu0 }
 0x2d6   : > { %v5839_v36 = vpop.f32.mrb[189].mxu1  ;;  %v5778_v26 = vpop.f32.mrb[191].mxu0 }
 0x2d7   : > { %v5840_v10 = vadd.f32 %v5839_v36, %v5838_v20  ;;  %v5841_v6 = vpop.f32.mrb[190].mxu1  ;;  %v8153_v1 = vadd.f32 %v5778_v26, %v5777_v60  ;;  %v2647_v53 = vpop.permute.xlu1 %2646  ;;  %v3296_v20 = vadd.f32 %v8090_v47, %v2642_v46 }
 0x2d8   : > { %v5842_v19 = vpop.f32.mrb[191].mxu1  ;;  %v3299_v36 = vadd.f32 %v8093_v17, %v2647_v53 }
 0x2d9   : > { %v8156_v23 = vadd.f32 %v5840_v10, %v3280_v15  ;;  %v5843_v45 = vadd.f32 %v5842_v19, %v5841_v6  ;;  %v2652_v10 = vpop.permute.xlu0 %2651 }
 0x2da   : > { %v3304_v50 = vadd.f32 %v8100_v30, %v2652_v10 }
 0x2db   : > { %v8158_v28 = vadd.f32 %v5843_v45, %v3283_v11  ;;  %v2657_v19 = vpop.permute.xlu1 %2656 }
 0x2dd   : > { %v5844_v58 = vpop.f32.mrb[192].mxu1 }
 0x2de   : > { %v5845_v25 = vpop.f32.mrb[193].mxu1 }
 0x2df   : > { %v5846_v43 = vadd.f32 %v5845_v25, %v5844_v58  ;;  %v5847_v16 = vpop.f32.mrb[194].mxu1  ;;  %v3307_v25 = vadd.f32 %v8103_v35, %v2657_v19 }
 0x2e0   : > { %v5848_v63 = vpop.f32.mrb[195].mxu1 }
 0x2e1   : > { %v8162_v40 = vadd.f32 %v5846_v43, %v3288_v8  ;;  %v5849_v57 = vadd.f32 %v5848_v63, %v5847_v16  ;;  %v2662_v43 = vpop.permute.xlu0 %2661  ;;  %v2667_v63 = vpop.permute.xlu1 %2666 }
 0x2e2   : > { %v3312_v46 = vadd.f32 %v8110_v5, %v2662_v43 }
 0x2e3   : > { %v8164_v42 = vadd.f32 %v5849_v57, %v3291_v39 }
 0x2e5   : > { %v5850_v18 = vpop.f32.mrb[196].mxu1 }
 0x2e6   : > { %v5851_v21 = vpop.f32.mrb[197].mxu1 }
 0x2e7   : > { %v5852_v52 = vadd.f32 %v5851_v21, %v5850_v18  ;;  %v5853_v38 = vpop.f32.mrb[198].mxu1  ;;  %v3315_v21 = vadd.f32 %v8113_v2, %v2667_v63 }
 0x2e8   : > { %v5854_v60 = vpop.f32.mrb[199].mxu1 }
 0x2e9   : > { %v8168_v61 = vadd.f32 %v5852_v52, %v3296_v20  ;;  %v5855_v26 = vadd.f32 %v5854_v60, %v5853_v38  ;;  %v2672_v52 = vpop.permute.xlu0 %2671  ;;  %v2677_v60 = vpop.permute.xlu1 %2676 }
 0x2ea   : > { %v3320_v10 = vadd.f32 %v8120_v34, %v2672_v52 }
 0x2eb   : > { %v8170_v32 = vadd.f32 %v5855_v26, %v3299_v36 }
 0x2ed   : > { %v5856_v6 = vpop.f32.mrb[200].mxu1 }
 0x2ee   : > { %v5857_v15 = vpop.f32.mrb[201].mxu1 }
 0x2ef   : > { %v5858_v11 = vadd.f32 %v5857_v15, %v5856_v6  ;;  %v5859_v45 = vpop.f32.mrb[202].mxu1  ;;  %v3323_v15 = vadd.f32 %v8123_v3, %v2677_v60 }
 0x2f0   : > { %v5860_v58 = vpop.f32.mrb[203].mxu1 }
 0x2f1   : > { %v8174_v47 = vadd.f32 %v5858_v11, %v3304_v50  ;;  %v5861_v54 = vadd.f32 %v5860_v58, %v5859_v45  ;;  %v2682_v11 = vpop.permute.xlu0 %2681  ;;  %v3729_v45 = vadd.s32 1, %v8051_v0 }
 0x2f2   : > { %v3328_v34 = vadd.f32 %v8130_v49, %v2682_v11 }
 0x2f3   : > { %v8176_v17 = vadd.f32 %v5861_v54, %v3307_v25  ;;  %v2687_v25 = vpop.permute.xlu1 %2686  ;;  %vm3730_vm5 = vcmp.eq.s32.totalorder %v8053_v33, %v3729_v45 }
 0x2f4   : > { %v3331_v63 = vadd.f32 %v8133_v7, %v2687_v25 }
 0x2f5   : > { %v5862_v16 = vpop.f32.mrb[204].mxu1 }
 0x2f6   : > { %v5863_v8 = vpop.f32.mrb[205].mxu1 }
 0x2f7   : > { %v5864_v39 = vadd.f32 %v5863_v8, %v5862_v16  ;;  %v5865_v57 = vpop.f32.mrb[206].mxu1  ;;  %v5156_v16 = vsel %vm3730_vm5, 1.0, %v6727_v31 }
 0x2f8   : > { %v5866_v18 = vpop.f32.mrb[207].mxu1  ;;  %v3733_v8 = vpack.c.bf16 %v5156_v16, %v5156_v16 }
 0x2f9   : > { %v8180_v30 = vadd.f32 %v5864_v39, %v3312_v46  ;;  %v5867_v53 = vadd.f32 %v5866_v18, %v5865_v57 }
 0x2fa   : > { %v3967_v0 = vand.u32 %v8068_v51, %v3733_v8 }
 0x2fb   : > { %v8182_v35 = vadd.f32 %v5867_v53, %v3315_v21  ;;  %v2697_v21 = vpop.permute.xlu1 %2696  ;;  %v2692_v53 = vpop.permute.xlu0 %2691 }
 0x2fc   : > { %6384 = vmatprep.subr.bf16.mxu1 %v3967_v0 }
 0x2fd   : > { %v5868_v38 = vpop.f32.mrb[208].mxu1 }
 0x2fe   : > { %v5869_v20 = vpop.f32.mrb[209].mxu1 }
 0x2ff   : > { %v5870_v36 = vadd.f32 %v5869_v20, %v5868_v38  ;;  %v5871_v26 = vpop.f32.mrb[210].mxu1 }
 0x300   : > { %v5872_v6 = vpop.f32.mrb[211].mxu1 }
 0x301   : > { %v8186_v5 = vadd.f32 %v5870_v36, %v3320_v10  ;;  %v5873_v19 = vadd.f32 %v5872_v6, %v5871_v26  ;;  %v3336_v10 = vadd.f32 %v8140_v29, %v2692_v53 }
 0x303   : > { %v8188_v2 = vadd.f32 %v5873_v19, %v3323_v15  ;;  %v3339_v15 = vadd.f32 %v8143_v4, %v2697_v21 }
 0x305   : > { %v5874_v50 = vpop.f32.mrb[212].mxu1 }
 0x306   : > { %v5875_v58 = vpop.f32.mrb[213].mxu1 }
 0x307   : > { %v5876_v54 = vadd.f32 %v5875_v58, %v5874_v50  ;;  %v5877_v43 = vpop.f32.mrb[214].mxu1 }
 0x308   : > { %v5878_v3 = vpop.f32.mrb[215].mxu1 }
 0x309   : > { %v8195_v39 = vadd.f32 %v5876_v54, %v3328_v34  ;;  %v5879_v57 = vadd.f32 %v5878_v3, %v5877_v43  ;;  %v2707_v54 = vpop.permute.xlu1 %2706  ;;  %v2702_v43 = vpop.permute.xlu0 %2701 }
 0x30a   : > { %v3344_v21 = vadd.f32 %v8150_v9, %v2702_v43 }
 0x30b   : > { %v8198_v18 = vadd.f32 %v5879_v57, %v3331_v63 }
 0x30c   : > { %v5908_v46 = vpop.f32.mrb[192].mxu0 }
 0x30d   : > { %v5909_v33 = vpop.f32.mrb[193].mxu0  ;;  %v5880_v38 = vpop.f32.mrb[216].mxu1 }
 0x30e   : > { %v5910_v52 = vadd.f32 %v5909_v33, %v5908_v46  ;;  %v5911_v49 = vpop.f32.mrb[194].mxu0  ;;  %v5881_v20 = vpop.f32.mrb[217].mxu1 }
 0x30f   : > { %v5912_v31 = vpop.f32.mrb[195].mxu0  ;;  %v5882_v36 = vadd.f32 %v5881_v20, %v5880_v38  ;;  %v5883_v26 = vpop.f32.mrb[218].mxu1 }
 0x310   : > { %v3546_v60 = vadd.f32 %v5910_v52, %v8082_v44  ;;  %v5913_v7 = vadd.f32 %v5912_v31, %v5911_v49  ;;  %v5884_v51 = vpop.f32.mrb[219].mxu1  ;;  %v3347_v49 = vadd.f32 %v8153_v1, %v2707_v54 }
 0x311   : > { %v8204_v19 = vadd.f32 %v5882_v36, %v3336_v10  ;;  %v5885_v11 = vadd.f32 %v5884_v51, %v5883_v26 }
 0x312   : > { %v3549_v6 = vadd.f32 %v5913_v7, %v8085_v62  ;;  %v3672_v45 = vmax.f32 %v3546_v60, 0.0 }
 0x313   : > { %v8206_v25 = vadd.f32 %v5885_v11, %v3339_v15 }
 0x314   : > { %v3673_v50 = vmax.f32 %v3549_v6, 0.0  ;;  %v5914_v58 = vpop.f32.mrb[196].mxu0 }
 0x315   : > { %v5915_v44 = vpop.f32.mrb[197].mxu0  ;;  %v5886_v3 = vpop.f32.mrb[220].mxu1 }
 0x316   : > { %v8208_v34 = vpack.c.bf16 %v3673_v50, %v3672_v45  ;;  %v5916_v16 = vadd.f32 %v5915_v44, %v5914_v58  ;;  %v5917_v29 = vpop.f32.mrb[198].mxu0  ;;  %v5887_v62 = vpop.f32.mrb[221].mxu1 }
 0x317   : > { %v5918_v8 = vpop.f32.mrb[199].mxu0  ;;  %v5888_v57 = vadd.f32 %v5887_v62, %v5886_v3  ;;  %v5889_v46 = vpop.f32.mrb[222].mxu1 }
 0x318   : > { %v3554_v4 = vadd.f32 %v5916_v16, %v8095_v27  ;;  %v5919_v63 = vadd.f32 %v5918_v8, %v5917_v29  ;;  %6352 = vmatprep.mubr.msk.bf16.mxu1 %vm944_vm1, %v8208_v34  ;;  %v5890_v33 = vpop.f32.mrb[223].mxu1 }
 0x319   : > { %v5891_v52 = vadd.f32 %v5890_v33, %v5889_v46  ;;  %v3505_v38 = vadd.f32 %v5888_v57, %v3344_v21 }
 0x31a   : > { %v3557_v53 = vadd.f32 %v5919_v63, %v8098_v37  ;;  %v3674_v31 = vmax.f32 %v3554_v4, 0.0 }
 0x31b   : > { %v3508_v7 = vadd.f32 %v5891_v52, %v3347_v49 }
 0x31c   : > { %v3675_v20 = vmax.f32 %v3557_v53, 0.0  ;;  %v5920_v60 = vpop.f32.mrb[200].mxu0 }
 0x31d   : > { %v5921_v27 = vpop.f32.mrb[201].mxu0  ;;  %v5998_v51 = vpop.f32.mrb[224].mxu1 }
 0x31e   : > { %v8216_v36 = vpack.c.bf16 %v3675_v20, %v3674_v31  ;;  %v5922_v26 = vadd.f32 %v5921_v27, %v5920_v60  ;;  %v5923_v10 = vpop.f32.mrb[202].mxu0  ;;  %v5999_v15 = vpop.f32.mrb[225].mxu1 }
 0x31f   : > { %v5924_v6 = vpop.f32.mrb[203].mxu0  ;;  %v6000_v37 = vadd.f32 %v5999_v15, %v5998_v51  ;;  %v6001_v1 = vpop.f32.mrb[226].mxu1 }
 0x320   : > { %v3562_v9 = vadd.f32 %v5922_v26, %v8106_v55  ;;  %v5925_v11 = vadd.f32 %v5924_v6, %v5923_v10  ;;  %6353 = vmatmul.mubr.msk.bf16.vlgmr.msra.gmra.mrb[228].mxu1 %vm944_vm1, %v8216_v36  ;;  %v6002_v45 = vpop.f32.mrb[227].mxu1 }
 0x321   : > { %6385 = vmatpush3.bf16.msra.mxu1 %v3967_v0  ;;  %v3666_v58 = vadd.f32 %v6000_v37, %v3505_v38  ;;  %v6003_v54 = vadd.f32 %v6002_v45, %v6001_v1 }
 0x322   : > { %v3565_v50 = vadd.f32 %v5925_v11, %v8108_v24  ;;  %v3676_v44 = vmax.f32 %v3562_v9, 0.0 }
 0x323   : > { %v3669_v29 = vadd.f32 %v6003_v54, %v3508_v7  ;;  %v3702_v4 = vmax.f32 %v3666_v58, 0.0 }
 0x324   : > { %v3677_v43 = vmax.f32 %v3565_v50, 0.0  ;;  %v5926_v16 = vpop.f32.mrb[204].mxu0 }
 0x325   : > { %v5927_v3 = vpop.f32.mrb[205].mxu0  ;;  %v3703_v63 = vmax.f32 %v3669_v29, 0.0 }
 0x326   : > { %v8222_v8 = vpack.c.bf16 %v3677_v43, %v3676_v44  ;;  %v5928_v55 = vadd.f32 %v5927_v3, %v5926_v16  ;;  %v5929_v62 = vpop.f32.mrb[206].mxu0 }
 0x327   : > { %v5930_v57 = vpop.f32.mrb[207].mxu0  ;;  %v8227_v24 = vpack.c.bf16 %v3703_v63, %v3702_v4 }
 0x328   : > { %v3570_v46 = vadd.f32 %v5928_v55, %v8116_v48  ;;  %v5931_v21 = vadd.f32 %v5930_v57, %v5929_v62  ;;  %6356 = vmatprep.mubr.msk.bf16.mxu1 %vm944_vm1, %v8222_v8 }
 0x32a   : > { %v3573_v0 = vadd.f32 %v5931_v21, %v8118_v22  ;;  %v3678_v33 = vmax.f32 %v3570_v46, 0.0 }
 0x32c   : > { %v3679_v53 = vmax.f32 %v3573_v0, 0.0  ;;  %v5932_v52 = vpop.f32.mrb[208].mxu0 }
 0x32d   : > { %v5933_v49 = vpop.f32.mrb[209].mxu0 }
 0x32e   : > { %v8230_v38 = vpack.c.bf16 %v3679_v53, %v3678_v33  ;;  %v5934_v31 = vadd.f32 %v5933_v49, %v5932_v52  ;;  %v5935_v20 = vpop.f32.mrb[210].mxu0 }
 0x32f   : > { %v5936_v60 = vpop.f32.mrb[211].mxu0 }
 0x330   : > { %v3578_v7 = vadd.f32 %v5934_v31, %v8126_v59  ;;  %v5937_v48 = vadd.f32 %v5936_v60, %v5935_v20  ;;  %6357 = vmatmul.mubr.msk.bf16.gmra.mrb[232].mxu1 %vm944_vm1, %v8230_v38 }
 0x332   : > { %v3581_v27 = vadd.f32 %v5937_v48, %v8128_v56  ;;  %v3680_v26 = vmax.f32 %v3578_v7, 0.0 }
 0x334   : > { %v3681_v10 = vmax.f32 %v3581_v27, 0.0  ;;  %v5938_v22 = vpop.f32.mrb[212].mxu0 }
 0x335   : > { %v5939_v51 = vpop.f32.mrb[213].mxu0 }
 0x336   : > { %v8236_v6 = vpack.c.bf16 %v3681_v10, %v3680_v26  ;;  %v5940_v15 = vadd.f32 %v5939_v51, %v5938_v22  ;;  %v5941_v9 = vpop.f32.mrb[214].mxu0 }
 0x337   : > { %v5942_v11 = vpop.f32.mrb[215].mxu0 }
 0x338   : > { %v3586_v37 = vadd.f32 %v5940_v15, %v8136_v14  ;;  %v5943_v1 = vadd.f32 %v5942_v11, %v5941_v9  ;;  %6360 = vmatprep.mubr.msk.bf16.mxu1 %vm944_vm1, %v8236_v6 }
 0x33a   : > { %v3589_v59 = vadd.f32 %v5943_v1, %v8138_v12  ;;  %v3682_v45 = vmax.f32 %v3586_v37, 0.0 }
 0x33c   : > { %v3683_v50 = vmax.f32 %v3589_v59, 0.0  ;;  %v5944_v56 = vpop.f32.mrb[216].mxu0 }
 0x33d   : > { %v5945_v58 = vpop.f32.mrb[217].mxu0 }
 0x33e   : > { %v8242_v54 = vpack.c.bf16 %v3683_v50, %v3682_v45  ;;  %v5946_v44 = vadd.f32 %v5945_v58, %v5944_v56  ;;  %v5947_v43 = vpop.f32.mrb[218].mxu0 }
 0x33f   : > { %v5948_v16 = vpop.f32.mrb[219].mxu0 }
 0x340   : > { %v3594_v29 = vadd.f32 %v5946_v44, %v8146_v13  ;;  %v5949_v3 = vadd.f32 %v5948_v16, %v5947_v43  ;;  %6361 = vmatmul.mubr.msk.bf16.gmra.mrb[236].mxu1 %vm944_vm1, %v8242_v54 }
 0x342   : > { %v3597_v14 = vadd.f32 %v5949_v3, %v8148_v41  ;;  %v3684_v55 = vmax.f32 %v3594_v29, 0.0 }
 0x344   : > { %v3685_v62 = vmax.f32 %v3597_v14, 0.0  ;;  %v5950_v12 = vpop.f32.mrb[220].mxu0 }
 0x345   : > { %v5951_v4 = vpop.f32.mrb[221].mxu0 }
 0x346   : > { %v8248_v63 = vpack.c.bf16 %v3685_v62, %v3684_v55  ;;  %v5952_v57 = vadd.f32 %v5951_v4, %v5950_v12  ;;  %v5953_v46 = vpop.f32.mrb[222].mxu0 }
 0x347   : > { %v5954_v21 = vpop.f32.mrb[223].mxu0 }
 0x348   : > { %v3602_v0 = vadd.f32 %v5952_v57, %v8156_v23  ;;  %v5955_v33 = vadd.f32 %v5954_v21, %v5953_v46  ;;  %6364 = vmatprep.mubr.msk.bf16.mxu1 %vm944_vm1, %v8248_v63 }
 0x34a   : > { %v3605_v13 = vadd.f32 %v5955_v33, %v8158_v28  ;;  %v3686_v53 = vmax.f32 %v3602_v0, 0.0 }
 0x34c   : > { %v3687_v52 = vmax.f32 %v3605_v13, 0.0  ;;  %v5956_v41 = vpop.f32.mrb[224].mxu0 }
 0x34d   : > { %v5957_v49 = vpop.f32.mrb[225].mxu0 }
 0x34e   : > { %v8254_v31 = vpack.c.bf16 %v3687_v52, %v3686_v53  ;;  %v5958_v20 = vadd.f32 %v5957_v49, %v5956_v41  ;;  %v5959_v60 = vpop.f32.mrb[226].mxu0 }
 0x34f   : > { %v5960_v7 = vpop.f32.mrb[227].mxu0 }
 0x350   : > { %v3610_v48 = vadd.f32 %v5958_v20, %v8162_v40  ;;  %v5961_v27 = vadd.f32 %v5960_v7, %v5959_v60  ;;  %6365 = vmatmul.mubr.msk.bf16.gmra.mrb[240].mxu1 %vm944_vm1, %v8254_v31 }
 0x352   : > { %v3613_v23 = vadd.f32 %v5961_v27, %v8164_v42  ;;  %v3688_v26 = vmax.f32 %v3610_v48, 0.0 }
 0x354   : > { %v3689_v10 = vmax.f32 %v3613_v23, 0.0  ;;  %v5962_v28 = vpop.f32.mrb[228].mxu0 }
 0x355   : > { %v5963_v22 = vpop.f32.mrb[229].mxu0 }
 0x356   : > { %v8260_v51 = vpack.c.bf16 %v3689_v10, %v3688_v26  ;;  %v5964_v15 = vadd.f32 %v5963_v22, %v5962_v28  ;;  %v5965_v9 = vpop.f32.mrb[230].mxu0 }
 0x357   : > { %v5966_v11 = vpop.f32.mrb[231].mxu0 }
 0x358   : > { %v3618_v37 = vadd.f32 %v5964_v15, %v8168_v61  ;;  %v5967_v1 = vadd.f32 %v5966_v11, %v5965_v9  ;;  %6368 = vmatprep.mubr.msk.bf16.mxu1 %vm944_vm1, %v8260_v51  ;;  %6038 = vmatprep.subr.bf16.mxu0 %v8260_v51 }
 0x359   : > { %6039 = vmatpush3.bf16.msra.mxu0 %v8208_v34 }
 0x35a   : > { %v3621_v40 = vadd.f32 %v5967_v1, %v8170_v32  ;;  %v3690_v42 = vmax.f32 %v3618_v37, 0.0 }
 0x35c   : > { %v3691_v59 = vmax.f32 %v3621_v40, 0.0  ;;  %v5968_v45 = vpop.f32.mrb[232].mxu0 }
 0x35d   : > { %v5969_v50 = vpop.f32.mrb[233].mxu0 }
 0x35e   : > { %v8268_v56 = vpack.c.bf16 %v3691_v59, %v3690_v42  ;;  %v5970_v58 = vadd.f32 %v5969_v50, %v5968_v45  ;;  %v5971_v44 = vpop.f32.mrb[234].mxu0 }
 0x35f   : > { %v5972_v43 = vpop.f32.mrb[235].mxu0 }
 0x360   : > { %v3626_v61 = vadd.f32 %v5970_v58, %v8174_v47  ;;  %v5973_v16 = vadd.f32 %v5972_v43, %v5971_v44  ;;  %6369 = vmatmul.mubr.msk.bf16.gmra.mrb[244].mxu1 %vm944_vm1, %v8268_v56  ;;  %6040 = vmatprep.subr.bf16.mxu0 %v8268_v56  ;;  %v6657_v43 = vld [vmem:[%s8609_s4 + $0xb4] ss:$8 sps:$4 sm:$0xff]  }
 0x361   : > { %6041 = vmatpush3.bf16.msra.mxu0 %v8216_v36 }
 0x362   : > { %v3629_v32 = vadd.f32 %v5973_v16, %v8176_v17  ;;  %v3692_v29 = vmax.f32 %v3626_v61, 0.0  ;;  %v6655_v61 = vld [vmem:[%s8609_s4 + $0xb0] ss:$8 sps:$4 sm:$0xff]  }
 0x364   : > { %v3693_v3 = vmax.f32 %v3629_v32, 0.0  ;;  %v5974_v14 = vpop.f32.mrb[236].mxu0 }
 0x365   : > { %v5975_v55 = vpop.f32.mrb[237].mxu0 }
 0x366   : > { %v8276_v62 = vpack.c.bf16 %v3693_v3, %v3692_v29  ;;  %v5976_v12 = vadd.f32 %v5975_v55, %v5974_v14  ;;  %v5977_v4 = vpop.f32.mrb[238].mxu0  ;;  %v6660_v29 = vld [vmem:[%s8609_s4 + $0xc4] ss:$8 sps:$4 sm:$0xff]   ;;  %v6658_v14 = vld [vmem:[%s8609_s4 + $0xc0] ss:$8 sps:$4 sm:$0xff]  }
 0x367   : > { %v5978_v57 = vpop.f32.mrb[239].mxu0 }
 0x368   : > { %v3634_v47 = vadd.f32 %v5976_v12, %v8180_v30  ;;  %v5979_v46 = vadd.f32 %v5978_v57, %v5977_v4  ;;  %6372 = vmatprep.mubr.msk.bf16.mxu1 %vm944_vm1, %v8276_v62  ;;  %6042 = vmatprep.subr.bf16.mxu0 %v8276_v62  ;;  %v6663_v4 = vld [vmem:[%s8609_s4 + $0xd4] ss:$8 sps:$4 sm:$0xff]   ;;  %v6661_v57 = vld [vmem:[%s8609_s4 + $0xd0] ss:$8 sps:$4 sm:$0xff]  }
 0x369   : > { %6043 = vmatpush3.bf16.msra.mxu0 %v8222_v8 }
 0x36a   : > { %v3637_v17 = vadd.f32 %v5979_v46, %v8182_v35  ;;  %v3694_v21 = vmax.f32 %v3634_v47, 0.0 }
 0x36c   : > { %v3695_v0 = vmax.f32 %v3637_v17, 0.0  ;;  %v5980_v33 = vpop.f32.mrb[240].mxu0  ;;  %v6666_v17 = vld [vmem:[%s8609_s4 + $0xe4] ss:$8 sps:$4 sm:$0xff]  }
 0x36d   : > { %v5981_v13 = vpop.f32.mrb[241].mxu0 }
 0x36e   : > { %v3715_v53 = vpack.c.bf16 %v3695_v0, %v3694_v21  ;;  %v5982_v52 = vadd.f32 %v5981_v13, %v5980_v33  ;;  %v5983_v41 = vpop.f32.mrb[242].mxu0  ;;  %v6664_v0 = vld [vmem:[%s8609_s4 + $0xe0] ss:$8 sps:$4 sm:$0xff]  }
 0x36f   : > { %v5984_v49 = vpop.f32.mrb[243].mxu0 }
 0x370   : > { %v3642_v30 = vadd.f32 %v5982_v52, %v8186_v5  ;;  %v5985_v20 = vadd.f32 %v5984_v49, %v5983_v41  ;;  %6373 = vmatmul.mubr.msk.bf16.gmra.mrb[248].mxu1 %vm944_vm1, %v3715_v53  ;;  %6044 = vmatprep.subr.bf16.mxu0 %v3715_v53  ;;  %v6669_v52 = vld [vmem:[%s8609_s4 + $0xf4] ss:$8 sps:$4 sm:$0xff]   ;;  %v6667_v41 = vld [vmem:[%s8609_s4 + $0xf0] ss:$8 sps:$4 sm:$0xff]  }
 0x371   : > { %6045 = vmatpush3.bf16.msra.mxu0 %v8230_v38 }
 0x372   : > { %v3645_v60 = vadd.f32 %v5985_v20, %v8188_v2  ;;  %v3696_v7 = vmax.f32 %v3642_v30, 0.0 }
 0x374   : > { %v3697_v35 = vmax.f32 %v3645_v60, 0.0  ;;  %v5986_v48 = vpop.f32.mrb[244].mxu0 }
 0x375   : > { %v5987_v27 = vpop.f32.mrb[245].mxu0 }
 0x376   : > { %v3716_v23 = vpack.c.bf16 %v3697_v35, %v3696_v7  ;;  %v5988_v26 = vadd.f32 %v5987_v27, %v5986_v48  ;;  %v5989_v10 = vpop.f32.mrb[246].mxu0  ;;  %v6675_v48 = vld [vmem:[%s8609_s4 + $0x104] ss:$8 sps:$4 sm:$0xff]  }
 0x377   : > { %v5990_v28 = vpop.f32.mrb[247].mxu0 }
 0x378   : > { %v3650_v22 = vadd.f32 %v5988_v26, %v8195_v39  ;;  %v5991_v15 = vadd.f32 %v5990_v28, %v5989_v10  ;;  %6376 = vmatprep.mubr.msk.bf16.mxu1 %vm944_vm1, %v3716_v23  ;;  %6046 = vmatprep.subr.bf16.mxu0 %v3716_v23 }
 0x379   : > { %6047 = vmatpush3.bf16.msra.mxu0 %v8236_v6 }
 0x37a   : > { %v3653_v5 = vadd.f32 %v5991_v15, %v8198_v18  ;;  %v3698_v9 = vmax.f32 %v3650_v22, 0.0 }
 0x37c   : > { %v3699_v2 = vmax.f32 %v3653_v5, 0.0  ;;  %v5992_v11 = vpop.f32.mrb[248].mxu0 }
 0x37d   : > { %v5993_v37 = vpop.f32.mrb[249].mxu0 }
 0x37e   : > { %v3717_v1 = vpack.c.bf16 %v3699_v2, %v3698_v9  ;;  %v5994_v40 = vadd.f32 %v5993_v37, %v5992_v11  ;;  %v5995_v42 = vpop.f32.mrb[250].mxu0 }
 0x37f   : > { %v5996_v59 = vpop.f32.mrb[251].mxu0 }
 0x380   : > { %v3658_v45 = vadd.f32 %v5994_v40, %v8204_v19  ;;  %v5997_v50 = vadd.f32 %v5996_v59, %v5995_v42  ;;  %6377 = vmatmul.mubr.msk.bf16.gmra.mrb[252].mxu1 %vm944_vm1, %v3717_v1  ;;  %6048 = vmatprep.subr.bf16.mxu0 %v3717_v1  ;;  %v6648_v19 = vld [vmem:[%s8609_s4 + $0x84] ss:$8 sps:$4 sm:$0xff]  }
 0x381   : > { %6049 = vmatpush3.bf16.msra.mxu0 %v8242_v54  ;;  %4291 = vmatprep.mubr.bf16.mxu0 %v6648_v19 }
 0x382   : > { %v3661_v39 = vadd.f32 %v5997_v50, %v8206_v25  ;;  %v3700_v58 = vmax.f32 %v3658_v45, 0.0  ;;  %v6646_v25 = vld [vmem:[%s8609_s4 + $0x80] ss:$8 sps:$4 sm:$0xff]  }
 0x384   : > { %v3701_v18 = vmax.f32 %v3661_v39, 0.0 }
 0x386   : > { %v3718_v44 = vpack.c.bf16 %v3701_v18, %v3700_v58 }
 0x388   : > { %6380 = vmatprep.mubr.msk.bf16.mxu1 %vm944_vm1, %v3718_v44  ;;  %6050 = vmatprep.subr.bf16.mxu0 %v3718_v44 }
 0x389   : > { %6381 = vmatmul.mubr.msk.bf16.gmra.mrb[0].mxu1 %vm944_vm1, %v8227_v24  ;;  %6051 = vmatpush3.bf16.msra.mxu0 %v8248_v63 }
 0x38a   : > { %6386 = vmatprep.mubr.msk.bf16.mxu1 %vm944_vm1, %v8208_v34  ;;  %6052 = vmatprep.subr.bf16.mxu0 %v8227_v24  ;;  %v6672_v34 = vld [vmem:[%s8609_s4 + $0x4] ss:$8 sps:$4 sm:$0xff]  }
 0x38d   : > { %6053 = vmatpush3.bf16.msra.mxu0 %v8254_v31 }
 0x390   : > { %4292 = vmatmul.mubr.bf16.vlgmr.msra.gmra.mrb[252].mxu0 %v6646_v25 }
 0x391   : > { %6387 = vmatmul.mubr.msk.bf16.vlgmr.msra.gmra.mrb[4].mxu1 %vm944_vm1, %v8216_v36  ;;  %v6651_v36 = vld [vmem:[%s8609_s4 + $0x94] ss:$8 sps:$4 sm:$0xff]  }
 0x392   : > { %6390 = vmatprep.mubr.msk.bf16.mxu1 %vm944_vm1, %v8222_v8  ;;  %v6649_v8 = vld [vmem:[%s8609_s4 + $0x90] ss:$8 sps:$4 sm:$0xff]   ;;  %4299 = vmatprep.mubr.bf16.mxu0 %v6651_v36 }
 0x398   : > { %4300 = vmatmul.mubr.bf16.gmra.mrb[0].mxu0 %v6649_v8 }
 0x399   : > { %6391 = vmatmul.mubr.msk.bf16.gmra.mrb[8].mxu1 %vm944_vm1, %v8230_v38 }
 0x39a   : > { %6394 = vmatprep.mubr.msk.bf16.mxu1 %vm944_vm1, %v8236_v6  ;;  %v6654_v6 = vld [vmem:[%s8609_s4 + $0xa4] ss:$8 sps:$4 sm:$0xff]  }
 0x39b   : > { %4307 = vmatprep.mubr.bf16.mxu0 %v6654_v6 }
 0x3a1   : > { %6395 = vmatmul.mubr.msk.bf16.gmra.mrb[12].mxu1 %vm944_vm1, %v8242_v54 }
 0x3a2   : > { %6398 = vmatprep.mubr.msk.bf16.mxu1 %vm944_vm1, %v8248_v63  ;;  %v6652_v63 = vld [vmem:[%s8609_s4 + $0xa0] ss:$8 sps:$4 sm:$0xff]  }
 0x3a3   : > { %4308 = vmatmul.mubr.bf16.gmra.mrb[4].mxu0 %v6652_v63 }
 0x3a4   : > { %4315 = vmatprep.mubr.bf16.mxu0 %v6657_v43  ;;  %v6676_v43 = vld [vmem:[%s8609_s4 + $0x10] ss:$8 sps:$4 sm:$0xff]  }
 0x3a9   : > { %6399 = vmatmul.mubr.msk.bf16.gmra.mrb[16].mxu1 %vm944_vm1, %v8254_v31 }
 0x3aa   : > { %6402 = vmatprep.mubr.msk.bf16.mxu1 %vm944_vm1, %v8260_v51 }
 0x3ab   : > { %4316 = vmatmul.mubr.bf16.gmra.mrb[8].mxu0 %v6655_v61 }
 0x3ac   : > { %4323 = vmatprep.mubr.bf16.mxu0 %v6660_v29 }
 0x3b1   : > { %6403 = vmatmul.mubr.msk.bf16.gmra.mrb[20].mxu1 %vm944_vm1, %v8268_v56 }
 0x3b2   : > { %6406 = vmatprep.mubr.msk.bf16.mxu1 %vm944_vm1, %v8276_v62 }
 0x3b3   : > { %4324 = vmatmul.mubr.bf16.gmra.mrb[12].mxu0 %v6658_v14 }
 0x3b4   : > { %4331 = vmatprep.mubr.bf16.mxu0 %v6663_v4 }
 0x3b9   : > { %6407 = vmatmul.mubr.msk.bf16.gmra.mrb[24].mxu1 %vm944_vm1, %v3715_v53 }
 0x3ba   : > { %6410 = vmatprep.mubr.msk.bf16.mxu1 %vm944_vm1, %v3716_v23 }
 0x3bb   : > { %4332 = vmatmul.mubr.bf16.gmra.mrb[16].mxu0 %v6661_v57  ;;  %v6690_v57 = vld [vmem:[%s8609_s4 + $0x34] ss:$8 sps:$4 sm:$0xff]  }
 0x3bc   : > { %4339 = vmatprep.mubr.bf16.mxu0 %v6666_v17 }
 0x3c1   : > { %6411 = vmatmul.mubr.msk.bf16.gmra.mrb[28].mxu1 %vm944_vm1, %v3717_v1 }
 0x3c2   : > { %6414 = vmatprep.mubr.msk.bf16.mxu1 %vm944_vm1, %v3718_v44 }
 0x3c3   : > { %4340 = vmatmul.mubr.bf16.gmra.mrb[20].mxu0 %v6664_v0  ;;  %v6688_v0 = vld [vmem:[%s8609_s4 + $0x30] ss:$8 sps:$4 sm:$0xff]  }
 0x3c4   : > { %4347 = vmatprep.mubr.bf16.mxu0 %v6669_v52 }
 0x3c9   : > { %6415 = vmatmul.mubr.msk.bf16.gmra.mrb[32].mxu1 %vm944_vm1, %v8227_v24 }
 0x3ca   : > { %4468 = vmatprep.mubr.bf16.mxu1 %v6672_v34 }
 0x3cb   : > { %4348 = vmatmul.mubr.bf16.gmra.mrb[24].mxu0 %v6667_v41 }
 0x3cc   : > { %4662 = vmatprep.mubr.bf16.mxu0 %v6675_v48 }
 0x3f3   : > { %v6354_v24 = vpop.f32.mrb[228].mxu1 }
 0x3f4   : > { %v3823_v38 = vpop.f32.mrb[229].mxu1 }
 0x3f5   : > { %v6355_v54 = vpop.f32.mrb[230].mxu1 }
 0x3f6   : > { %v3951_v31 = vpack.c.bf16 %v6355_v54, %v6354_v24  ;;  %v3826_v51 = vpop.f32.mrb[231].mxu1  ;;  %v6670_v24 = vld [vmem:[%s8609_s4] ss:$8 sps:$4 sm:$0xff]   ;;  %v6678_v54 = vld [vmem:[%s8609_s4 + $0x14] ss:$8 sps:$4 sm:$0xff]  }
 0x3f7   : > { %v3950_v56 = vpack.c.bf16 %v3826_v51, %v3823_v38 }
 0x403   : > { %v6358_v16 = vpop.f32.mrb[232].mxu1 }
 0x404   : > { %v3839_v32 = vpop.f32.mrb[233].mxu1 }
 0x405   : > { %v6359_v3 = vpop.f32.mrb[234].mxu1 }
 0x406   : > { %v3953_v55 = vpack.c.bf16 %v6359_v3, %v6358_v16  ;;  %v3842_v62 = vpop.f32.mrb[235].mxu1 }
 0x407   : > { %v3952_v12 = vpack.c.bf16 %v3842_v62, %v3839_v32  ;;  %v6684_v32 = vld [vmem:[%s8609_s4 + $0x24] ss:$8 sps:$4 sm:$0xff]   ;;  %v6682_v62 = vld [vmem:[%s8609_s4 + $0x20] ss:$8 sps:$4 sm:$0xff]  }
 0x413   : > { %v6362_v47 = vpop.f32.mrb[236].mxu1 }
 0x414   : > { %v3855_v46 = vpop.f32.mrb[237].mxu1 }
 0x415   : > { %v6363_v21 = vpop.f32.mrb[238].mxu1 }
 0x416   : > { %v3955_v33 = vpack.c.bf16 %v6363_v21, %v6362_v47  ;;  %v3858_v13 = vpop.f32.mrb[239].mxu1 }
 0x417   : > { %v3954_v53 = vpack.c.bf16 %v3858_v13, %v3855_v46 }
 0x423   : > { %v6366_v49 = vpop.f32.mrb[240].mxu1 }
 0x424   : > { %v3871_v30 = vpop.f32.mrb[241].mxu1 }
 0x425   : > { %v6367_v20 = vpop.f32.mrb[242].mxu1 }
 0x426   : > { %v3957_v60 = vpack.c.bf16 %v6367_v20, %v6366_v49  ;;  %v3874_v7 = vpop.f32.mrb[243].mxu1  ;;  %v6694_v20 = vld [vmem:[%s8609_s4 + $0x40] ss:$8 sps:$4 sm:$0xff]  }
 0x427   : > { %v3956_v35 = vpack.c.bf16 %v3874_v7, %v3871_v30 }
 0x433   : > { %v6370_v27 = vpop.f32.mrb[244].mxu1 }
 0x434   : > { %v3887_v23 = vpop.f32.mrb[245].mxu1 }
 0x435   : > { %v6371_v26 = vpop.f32.mrb[246].mxu1 }
 0x436   : > { %v3959_v10 = vpack.c.bf16 %v6371_v26, %v6370_v27  ;;  %v3890_v28 = vpop.f32.mrb[247].mxu1 }
 0x437   : > { %v3958_v22 = vpack.c.bf16 %v3890_v28, %v3887_v23 }
 0x439   : > { %6102 = vmatprep.subr.bf16.mxu1 %v3958_v22 }
 0x43a   : > { %6103 = vmatpush3.bf16.msra.mxu1 %v3950_v56 }
 0x43b   : > { %6104 = vmatprep.subr.bf16.mxu1 %v3959_v10  ;;  %v6700_v10 = vld [vmem:[%s8609_s4 + $0x50] ss:$8 sps:$4 sm:$0xff]  }
 0x43e   : > { %6105 = vmatpush3.bf16.msra.mxu1 %v3951_v31 }
 0x443   : > { %v6374_v15 = vpop.f32.mrb[248].mxu1 }
 0x444   : > { %v3903_v5 = vpop.f32.mrb[249].mxu1 }
 0x445   : > { %v6375_v9 = vpop.f32.mrb[250].mxu1 }
 0x446   : > { %v3961_v2 = vpack.c.bf16 %v6375_v9, %v6374_v15  ;;  %v3906_v11 = vpop.f32.mrb[251].mxu1  ;;  %v6708_v15 = vld [vmem:[%s8609_s4 + $0x64] ss:$8 sps:$4 sm:$0xff]  }
 0x447   : > { %v3960_v37 = vpack.c.bf16 %v3906_v11, %v3903_v5 }
 0x449   : > { %6106 = vmatprep.subr.bf16.mxu1 %v3960_v37  ;;  %v6706_v37 = vld [vmem:[%s8609_s4 + $0x60] ss:$8 sps:$4 sm:$0xff]  }
 0x44a   : > { %6107 = vmatpush3.bf16.msra.mxu1 %v3952_v12 }
 0x44b   : > { %6108 = vmatprep.subr.bf16.mxu1 %v3961_v2 }
 0x44e   : > { %6109 = vmatpush3.bf16.msra.mxu1 %v3953_v55 }
 0x453   : > { %v6378_v1 = vpop.f32.mrb[252].mxu1 }
 0x454   : > { %v3919_v40 = vpop.f32.mrb[253].mxu1 }
 0x455   : > { %v6379_v42 = vpop.f32.mrb[254].mxu1 }
 0x456   : > { %v3963_v59 = vpack.c.bf16 %v6379_v42, %v6378_v1  ;;  %v3922_v45 = vpop.f32.mrb[255].mxu1  ;;  %v6714_v42 = vld [vmem:[%s8609_s4 + $0x74] ss:$8 sps:$4 sm:$0xff]  }
 0x457   : > { %v3962_v50 = vpack.c.bf16 %v3922_v45, %v3919_v40 }
 0x459   : > { %6110 = vmatprep.subr.bf16.mxu1 %v3962_v50 }
 0x45a   : > { %6111 = vmatpush3.bf16.msra.mxu1 %v3954_v53  ;;  %v6696_v53 = vld [vmem:[%s8609_s4 + $0x44] ss:$8 sps:$4 sm:$0xff]  }
 0x45b   : > { %6112 = vmatprep.subr.bf16.mxu1 %v3963_v59 }
 0x45c   : > { %v6382_v39 = vpop.f32.mrb[0].mxu1 }
 0x45d   : > { %v3935_v58 = vpop.f32.mrb[1].mxu1 }
 0x45e   : > { %v6383_v18 = vpop.f32.mrb[2].mxu1  ;;  %6113 = vmatpush3.bf16.msra.mxu1 %v3955_v33 }
 0x45f   : > { %v3965_v44 = vpack.c.bf16 %v6383_v18, %v6382_v39  ;;  %v3938_v19 = vpop.f32.mrb[3].mxu1 }
 0x460   : > { %v3964_v25 = vpack.c.bf16 %v3938_v19, %v3935_v58  ;;  %v6712_v58 = vld [vmem:[%s8609_s4 + $0x70] ss:$8 sps:$4 sm:$0xff]  }
 0x462   : > { %6114 = vmatprep.subr.bf16.mxu1 %v3964_v25  ;;  %v6673_v25 = vld [vmem:[%s8609_s4 + $0x100] ss:$8 sps:$4 sm:$0xff]  }
 0x463   : > { %6115 = vmatpush3.bf16.msra.mxu1 %v3956_v35  ;;  %v6702_v35 = vld [vmem:[%s8609_s4 + $0x54] ss:$8 sps:$4 sm:$0xff]  }
 0x464   : > { %v6388_v34 = vpop.f32.mrb[4].mxu1  ;;  %6116 = vmatprep.subr.bf16.mxu1 %v3965_v44 }
 0x465   : > { %v4003_v36 = vpop.f32.mrb[5].mxu1 }
 0x466   : > { %v6389_v8 = vpop.f32.mrb[6].mxu1 }
 0x467   : > { %v4131_v38 = vpack.c.bf16 %v6389_v8, %v6388_v34  ;;  %v4006_v6 = vpop.f32.mrb[7].mxu1  ;;  %6117 = vmatpush3.bf16.msra.mxu1 %v3957_v60  ;;  %v6681_v34 = vld [vmem:[%s8609_s4 + $0x114] ss:$8 sps:$4 sm:$0xff]   ;;  %v6687_v8 = vld [vmem:[%s8609_s4 + $0x124] ss:$8 sps:$4 sm:$0xff]  }
 0x468   : > { %v4130_v63 = vpack.c.bf16 %v4006_v6, %v4003_v36  ;;  %v6679_v36 = vld [vmem:[%s8609_s4 + $0x110] ss:$8 sps:$4 sm:$0xff]   ;;  %v6054_v6 = vpop.f32.mrb[252].mxu0 }
 0x46a   : > { %4469 = vmatmul.mubr.bf16.vlgmr.msra.gmra.mrb[36].mxu1 %v6670_v24  ;;  %v6685_v24 = vld [vmem:[%s8609_s4 + $0x120] ss:$8 sps:$4 sm:$0xff]  }
 0x46b   : > { %4476 = vmatprep.mubr.bf16.mxu1 %v6678_v54  ;;  %v6055_v54 = vpop.f32.mrb[253].mxu0 }
 0x46c   : > { %v8390_v31 = vpop.f32.mrb[8].mxu1 }
 0x46d   : > { %v4019_v51 = vpop.f32.mrb[9].mxu1 }
 0x46e   : > { %v6393_v56 = vpop.f32.mrb[10].mxu1 }
 0x46f   : > { %v4133_v61 = vpack.c.bf16 %v6393_v56, %v8390_v31  ;;  %v4022_v16 = vpop.f32.mrb[11].mxu1  ;;  %v6057_v31 = vpop.f32.mrb[254].mxu0  ;;  %v6691_v56 = vld [vmem:[%s8609_s4 + $0x130] ss:$8 sps:$4 sm:$0xff]  }
 0x470   : > { %v4132_v29 = vpack.c.bf16 %v4022_v16, %v4019_v51  ;;  %v6058_v51 = vpop.f32.mrb[255].mxu0 }
 0x471   : > { %v6060_v16 = vpop.f32.mrb[0].mxu0 }
 0x472   : > { %4477 = vmatmul.mubr.bf16.gmra.mrb[40].mxu1 %v6676_v43  ;;  %v8464_v43 = vadd.f32 %v6058_v51, %v6057_v31 }
 0x473   : > { %4484 = vmatprep.mubr.bf16.mxu1 %v6684_v32  ;;  %v6061_v32 = vpop.f32.mrb[1].mxu0 }
 0x474   : > { %v8399_v3 = vpop.f32.mrb[12].mxu1 }
 0x475   : > { %v4035_v14 = vpop.f32.mrb[13].mxu1 }
 0x476   : > { %v8401_v55 = vpop.f32.mrb[14].mxu1 }
 0x477   : > { %v4135_v12 = vpack.c.bf16 %v8401_v55, %v8399_v3  ;;  %v4038_v4 = vpop.f32.mrb[15].mxu1  ;;  %v6063_v3 = vpop.f32.mrb[2].mxu0  ;;  %v6697_v55 = vld [vmem:[%s8609_s4 + $0x140] ss:$8 sps:$4 sm:$0xff]  }
 0x478   : > { %v4134_v47 = vpack.c.bf16 %v4038_v4, %v4035_v14  ;;  %v6064_v14 = vpop.f32.mrb[3].mxu0 }
 0x479   : > { %v6066_v4 = vpop.f32.mrb[4].mxu0 }
 0x47a   : > { %4485 = vmatmul.mubr.bf16.gmra.mrb[44].mxu1 %v6682_v62  ;;  %v8474_v62 = vadd.f32 %v6064_v14, %v6063_v3 }
 0x47b   : > { %4492 = vmatprep.mubr.bf16.mxu1 %v6690_v57  ;;  %v6067_v57 = vpop.f32.mrb[5].mxu0 }
 0x47c   : > { %v8411_v46 = vpop.f32.mrb[16].mxu1 }
 0x47d   : > { %v4051_v17 = vpop.f32.mrb[17].mxu1 }
 0x47e   : > { %v6401_v21 = vpop.f32.mrb[18].mxu1 }
 0x47f   : > { %v4137_v33 = vpack.c.bf16 %v6401_v21, %v8411_v46  ;;  %v4054_v13 = vpop.f32.mrb[19].mxu1  ;;  %v6069_v46 = vpop.f32.mrb[6].mxu0  ;;  %v6703_v21 = vld [vmem:[%s8609_s4 + $0x150] ss:$8 sps:$4 sm:$0xff]  }
 0x480   : > { %v4136_v52 = vpack.c.bf16 %v4054_v13, %v4051_v17  ;;  %v6070_v17 = vpop.f32.mrb[7].mxu0 }
 0x481   : > { %v6072_v13 = vpop.f32.mrb[8].mxu0 }
 0x482   : > { %4493 = vmatmul.mubr.bf16.gmra.mrb[48].mxu1 %v6688_v0  ;;  %v8484_v0 = vadd.f32 %v6070_v17, %v6069_v46 }
 0x483   : > { %4500 = vmatprep.mubr.bf16.mxu1 %v6696_v53  ;;  %v6073_v53 = vpop.f32.mrb[9].mxu0 }
 0x484   : > { %v6404_v41 = vpop.f32.mrb[20].mxu1 }
 0x485   : > { %v4067_v49 = vpop.f32.mrb[21].mxu1 }
 0x486   : > { %v6405_v30 = vpop.f32.mrb[22].mxu1 }
 0x487   : > { %v4139_v60 = vpack.c.bf16 %v6405_v30, %v6404_v41  ;;  %v4070_v7 = vpop.f32.mrb[23].mxu1  ;;  %v6075_v41 = vpop.f32.mrb[10].mxu0  ;;  %v6709_v30 = vld [vmem:[%s8609_s4 + $0x160] ss:$8 sps:$4 sm:$0xff]  }
 0x488   : > { %v4138_v48 = vpack.c.bf16 %v4070_v7, %v4067_v49  ;;  %v6076_v49 = vpop.f32.mrb[11].mxu0 }
 0x489   : > { %v6078_v7 = vpop.f32.mrb[12].mxu0 }
 0x48a   : > { %6166 = vmatprep.subr.bf16.mxu0 %v4138_v48  ;;  %4501 = vmatmul.mubr.bf16.gmra.mrb[52].mxu1 %v6694_v20  ;;  %v6077_v20 = vadd.f32 %v6076_v49, %v6075_v41 }
 0x48b   : > { %6167 = vmatpush3.bf16.msra.mxu0 %v4130_v63  ;;  %4508 = vmatprep.mubr.bf16.mxu1 %v6702_v35  ;;  %v8459_v63 = vadd.f32 %v6055_v54, %v6054_v6  ;;  %v6079_v35 = vpop.f32.mrb[13].mxu0 }
 0x48c   : > { %v6408_v27 = vpop.f32.mrb[24].mxu1  ;;  %6168 = vmatprep.subr.bf16.mxu0 %v4139_v60  ;;  %v6717_v60 = vld [vmem:[%s8609_s4 + $0x174] ss:$8 sps:$4 sm:$0xff]   ;;  %v6080_v48 = vadd.f32 %v6079_v35, %v6078_v7 }
 0x48d   : > { %v4083_v23 = vpop.f32.mrb[25].mxu1 }
 0x48e   : > { %v6409_v26 = vpop.f32.mrb[26].mxu1 }
 0x48f   : > { %v4141_v28 = vpack.c.bf16 %v6409_v26, %v6408_v27  ;;  %v4086_v22 = vpop.f32.mrb[27].mxu1  ;;  %6169 = vmatpush3.bf16.msra.mxu0 %v4131_v38  ;;  %v6693_v38 = vld [vmem:[%s8609_s4 + $0x134] ss:$8 sps:$4 sm:$0xff]   ;;  %v6081_v27 = vpop.f32.mrb[14].mxu0  ;;  %v6715_v26 = vld [vmem:[%s8609_s4 + $0x170] ss:$8 sps:$4 sm:$0xff]  }
 0x490   : > { %v4140_v5 = vpack.c.bf16 %v4086_v22, %v4083_v23  ;;  %v6082_v23 = vpop.f32.mrb[15].mxu0 }
 0x492   : > { %6170 = vmatprep.subr.bf16.mxu0 %v4140_v5  ;;  %4509 = vmatmul.mubr.bf16.gmra.mrb[56].mxu1 %v6700_v10  ;;  %v6083_v10 = vadd.f32 %v6082_v23, %v6081_v27 }
 0x493   : > { %6171 = vmatpush3.bf16.msra.mxu0 %v4132_v29  ;;  %4516 = vmatprep.mubr.bf16.mxu1 %v6708_v15  ;;  %v8469_v29 = vadd.f32 %v6061_v32, %v6060_v16 }
 0x494   : > { %v6412_v9 = vpop.f32.mrb[28].mxu1  ;;  %6172 = vmatprep.subr.bf16.mxu0 %v4141_v28  ;;  %v6084_v28 = vpop.f32.mrb[16].mxu0 }
 0x495   : > { %v4099_v2 = vpop.f32.mrb[29].mxu1  ;;  %v6085_v22 = vpop.f32.mrb[17].mxu0 }
 0x496   : > { %v6413_v11 = vpop.f32.mrb[30].mxu1  ;;  %v6086_v15 = vadd.f32 %v6085_v22, %v6084_v28  ;;  %v6087_v5 = vpop.f32.mrb[18].mxu0 }
 0x497   : > { %v4143_v1 = vpack.c.bf16 %v6413_v11, %v6412_v9  ;;  %v4102_v40 = vpop.f32.mrb[31].mxu1  ;;  %6173 = vmatpush3.bf16.msra.mxu0 %v4133_v61  ;;  %v6699_v61 = vld [vmem:[%s8609_s4 + $0x144] ss:$8 sps:$4 sm:$0xff]   ;;  %v6088_v9 = vpop.f32.mrb[19].mxu0 }
 0x498   : > { %v4142_v59 = vpack.c.bf16 %v4102_v40, %v4099_v2  ;;  %v6089_v2 = vadd.f32 %v6088_v9, %v6087_v5  ;;  %v6090_v11 = vpop.f32.mrb[20].mxu0 }
 0x49a   : > { %6174 = vmatprep.subr.bf16.mxu0 %v4142_v59  ;;  %4517 = vmatmul.mubr.bf16.gmra.mrb[60].mxu1 %v6706_v37  ;;  %v6091_v37 = vpop.f32.mrb[21].mxu0 }
 0x49b   : > { %6175 = vmatpush3.bf16.msra.mxu0 %v4134_v47  ;;  %4524 = vmatprep.mubr.bf16.mxu1 %v6714_v42  ;;  %v8479_v47 = vadd.f32 %v6067_v57, %v6066_v4  ;;  %v6093_v40 = vpop.f32.mrb[22].mxu0 }
 0x49c   : > { %v6416_v45 = vpop.f32.mrb[32].mxu1  ;;  %6176 = vmatprep.subr.bf16.mxu0 %v4143_v1  ;;  %v8500_v1 = vadd.f32 %v6091_v37, %v6090_v11  ;;  %v6094_v42 = vpop.f32.mrb[23].mxu0 }
 0x49d   : > { %v4115_v50 = vpop.f32.mrb[33].mxu1  ;;  %v6095_v59 = vadd.f32 %v6094_v42, %v6093_v40 }
 0x49e   : > { %v6417_v39 = vpop.f32.mrb[34].mxu1 }
 0x49f   : > { %v4145_v18 = vpack.c.bf16 %v6417_v39, %v6416_v45  ;;  %v4118_v44 = vpop.f32.mrb[35].mxu1  ;;  %6177 = vmatpush3.bf16.msra.mxu0 %v4135_v12  ;;  %v6705_v12 = vld [vmem:[%s8609_s4 + $0x154] ss:$8 sps:$4 sm:$0xff]   ;;  %v6096_v45 = vpop.f32.mrb[24].mxu0 }
 0x4a0   : > { %v4144_v19 = vpack.c.bf16 %v4118_v44, %v4115_v50  ;;  %v6097_v50 = vpop.f32.mrb[25].mxu0 }
 0x4a1   : > { %v8502_v39 = vadd.f32 %v6097_v50, %v6096_v45 }
 0x4a2   : > { %6178 = vmatprep.subr.bf16.mxu0 %v4144_v19  ;;  %4525 = vmatmul.mubr.bf16.gmra.mrb[64].mxu1 %v6712_v58  ;;  %v6099_v58 = vpop.f32.mrb[26].mxu0 }
 0x4a3   : > { %6179 = vmatpush3.bf16.msra.mxu0 %v4136_v52  ;;  %v8489_v52 = vadd.f32 %v6073_v53, %v6072_v13 }
 0x4a4   : > { %6180 = vmatprep.subr.bf16.mxu0 %v4145_v18  ;;  %v6100_v18 = vpop.f32.mrb[27].mxu0 }
 0x4a5   : > { %v8504_v44 = vadd.f32 %v6100_v18, %v6099_v58 }
 0x4a7   : > { %6181 = vmatpush3.bf16.msra.mxu0 %v4137_v33  ;;  %v6711_v33 = vld [vmem:[%s8609_s4 + $0x164] ss:$8 sps:$4 sm:$0xff]  }
 0x4aa   : > { %4663 = vmatmul.mubr.bf16.vlgmr.msra.gmra.mrb[28].mxu0 %v6673_v25 }
 0x4ab   : > { %4670 = vmatprep.mubr.bf16.mxu0 %v6681_v34 }
 0x4b2   : > { %4671 = vmatmul.mubr.bf16.gmra.mrb[32].mxu0 %v6679_v36 }
 0x4b3   : > { %4678 = vmatprep.mubr.bf16.mxu0 %v6687_v8 }
 0x4ba   : > { %4679 = vmatmul.mubr.bf16.gmra.mrb[36].mxu0 %v6685_v24 }
 0x4bb   : > { %4686 = vmatprep.mubr.bf16.mxu0 %v6693_v38 }
 0x4c2   : > { %4687 = vmatmul.mubr.bf16.gmra.mrb[40].mxu0 %v6691_v56 }
 0x4c3   : > { %4694 = vmatprep.mubr.bf16.mxu0 %v6699_v61 }
 0x4ca   : > { %4695 = vmatmul.mubr.bf16.gmra.mrb[44].mxu0 %v6697_v55 }
 0x4cb   : > { %4702 = vmatprep.mubr.bf16.mxu0 %v6705_v12 }
 0x4d2   : > { %4703 = vmatmul.mubr.bf16.gmra.mrb[48].mxu0 %v6703_v21 }
 0x4d3   : > { %4710 = vmatprep.mubr.bf16.mxu0 %v6711_v33 }
 0x4da   : > { %4711 = vmatmul.mubr.bf16.gmra.mrb[52].mxu0 %v6709_v30 }
 0x4db   : > { %4718 = vmatprep.mubr.bf16.mxu0 %v6717_v60 }
 0x4e2   : > { %4719 = vmatmul.mubr.bf16.gmra.mrb[56].mxu0 %v6715_v26 }
 0x53d   : > { %v6118_v19 = vpop.f32.mrb[36].mxu1 }
 0x53e   : > { %v6119_v25 = vpop.f32.mrb[37].mxu1 }
 0x53f   : > { %v6120_v34 = vadd.f32 %v6119_v25, %v6118_v19  ;;  %v6121_v36 = vpop.f32.mrb[38].mxu1 }
 0x540   : > { %v6122_v8 = vpop.f32.mrb[39].mxu1 }
 0x541   : > { %v8507_v24 = vadd.f32 %v6120_v34, %v8459_v63  ;;  %v6123_v38 = vadd.f32 %v6122_v8, %v6121_v36 }
 0x543   : > { %v8510_v6 = vadd.f32 %v6123_v38, %v8464_v43 }
 0x545   : > { %v6124_v54 = vpop.f32.mrb[40].mxu1 }
 0x546   : > { %v6125_v31 = vpop.f32.mrb[41].mxu1 }
 0x547   : > { %v6126_v51 = vadd.f32 %v6125_v31, %v6124_v54  ;;  %v6127_v56 = vpop.f32.mrb[42].mxu1 }
 0x548   : > { %v6128_v61 = vpop.f32.mrb[43].mxu1 }
 0x549   : > { %v8513_v16 = vadd.f32 %v6126_v51, %v8469_v29  ;;  %v6129_v32 = vadd.f32 %v6128_v61, %v6127_v56  ;;  %v4762_v56 = vpop.permute.xlu0 %4761 }
 0x54b   : > { %v8516_v3 = vadd.f32 %v6129_v32, %v8474_v62 }
 0x54d   : > { %v6130_v14 = vpop.f32.mrb[44].mxu1 }
 0x54e   : > { %v6131_v55 = vpop.f32.mrb[45].mxu1 }
 0x54f   : > { %v6132_v63 = vadd.f32 %v6131_v55, %v6130_v14  ;;  %v6133_v12 = vpop.f32.mrb[46].mxu1  ;;  %v4767_v14 = vpop.permute.xlu1 %4766 }
 0x550   : > { %v6134_v4 = vpop.f32.mrb[47].mxu1 }
 0x551   : > { %v8519_v43 = vadd.f32 %v6132_v63, %v8479_v47  ;;  %v6135_v57 = vadd.f32 %v6134_v4, %v6133_v12 }
 0x553   : > { %v8522_v46 = vadd.f32 %v6135_v57, %v8484_v0 }
 0x555   : > { %v6136_v17 = vpop.f32.mrb[48].mxu1 }
 0x556   : > { %v6137_v21 = vpop.f32.mrb[49].mxu1 }
 0x557   : > { %v6138_v29 = vadd.f32 %v6137_v21, %v6136_v17  ;;  %v6139_v33 = vpop.f32.mrb[50].mxu1  ;;  %v4772_v21 = vpop.permute.xlu0 %4771 }
 0x558   : > { %v6140_v13 = vpop.f32.mrb[51].mxu1 }
 0x559   : > { %v8525_v62 = vadd.f32 %v6138_v29, %v8489_v52  ;;  %v6141_v53 = vadd.f32 %v6140_v13, %v6139_v33  ;;  %v4777_v13 = vpop.permute.xlu1 %4776 }
 0x55b   : > { %v8527_v41 = vadd.f32 %v6141_v53, %v6077_v20 }
 0x55d   : > { %v6142_v49 = vpop.f32.mrb[52].mxu1 }
 0x55e   : > { %v6143_v30 = vpop.f32.mrb[53].mxu1 }
 0x55f   : > { %v6144_v60 = vadd.f32 %v6143_v30, %v6142_v49  ;;  %v6145_v47 = vpop.f32.mrb[54].mxu1 }
 0x560   : > { %v6146_v7 = vpop.f32.mrb[55].mxu1 }
 0x561   : > { %v8529_v35 = vadd.f32 %v6144_v60, %v6080_v48  ;;  %v6147_v0 = vadd.f32 %v6146_v7, %v6145_v47 }
 0x563   : > { %v8531_v27 = vadd.f32 %v6147_v0, %v6083_v10 }
 0x565   : > { %v6148_v23 = vpop.f32.mrb[56].mxu1 }
 0x566   : > { %v6149_v26 = vpop.f32.mrb[57].mxu1 }
 0x567   : > { %v6150_v28 = vadd.f32 %v6149_v26, %v6148_v23  ;;  %v6151_v22 = vpop.f32.mrb[58].mxu1 }
 0x568   : > { %v6152_v5 = vpop.f32.mrb[59].mxu1 }
 0x569   : > { %v8533_v52 = vadd.f32 %v6150_v28, %v6086_v15  ;;  %v6153_v9 = vadd.f32 %v6152_v5, %v6151_v22  ;;  %v4782_v28 = vpop.permute.xlu0 %4781  ;;  %v4787_v5 = vpop.permute.xlu1 %4786 }
 0x56b   : > { %v8535_v20 = vadd.f32 %v6153_v9, %v6089_v2 }
 0x56d   : > { %v6154_v11 = vpop.f32.mrb[60].mxu1 }
 0x56e   : > { %v6155_v37 = vpop.f32.mrb[61].mxu1 }
 0x56f   : > { %v6156_v40 = vadd.f32 %v6155_v37, %v6154_v11  ;;  %v6157_v42 = vpop.f32.mrb[62].mxu1 }
 0x570   : > { %v6158_v45 = vpop.f32.mrb[63].mxu1 }
 0x571   : > { %v8538_v48 = vadd.f32 %v6156_v40, %v8500_v1  ;;  %v6159_v10 = vadd.f32 %v6158_v45, %v6157_v42 }
 0x573   : > { %v8540_v50 = vadd.f32 %v6159_v10, %v6095_v59 }
 0x575   : > { %v6160_v58 = vpop.f32.mrb[64].mxu1 }
 0x576   : > { %v6161_v18 = vpop.f32.mrb[65].mxu1 }
 0x577   : > { %v6162_v19 = vadd.f32 %v6161_v18, %v6160_v58  ;;  %v6163_v15 = vpop.f32.mrb[66].mxu1 }
 0x578   : > { %v6164_v25 = vpop.f32.mrb[67].mxu1 }
 0x579   : > { %v8543_v2 = vadd.f32 %v6162_v19, %v8502_v39  ;;  %v6165_v34 = vadd.f32 %v6164_v25, %v6163_v15  ;;  %v4792_v19 = vpop.permute.xlu0 %4791  ;;  %v4797_v25 = vpop.permute.xlu1 %4796 }
 0x57b   : > { %v8546_v36 = vadd.f32 %v6165_v34, %v8504_v44 }
 0x57d   : > { %v6182_v8 = vpop.f32.mrb[28].mxu0 }
 0x57e   : > { %v6183_v38 = vpop.f32.mrb[29].mxu0 }
 0x57f   : > { %v6184_v1 = vadd.f32 %v6183_v38, %v6182_v8  ;;  %v6185_v54 = vpop.f32.mrb[30].mxu0 }
 0x580   : > { %v6186_v31 = vpop.f32.mrb[31].mxu0 }
 0x581   : > { %v4727_v59 = vadd.f32 %v6184_v1, %v8507_v24  ;;  %v6187_v51 = vadd.f32 %v6186_v31, %v6185_v54 }
 0x583   : > { %v4839_v61 = vadd.f32 %v4762_v56, %v4727_v59  ;;  %v4728_v32 = vadd.f32 %v6187_v51, %v8510_v6 }
 0x585   : > { %v4855_v39 = vmax.f32 %v4839_v61, 0.0  ;;  %v4840_v44 = vadd.f32 %v4767_v14, %v4728_v32  ;;  %v6188_v55 = vpop.f32.mrb[32].mxu0  ;;  %v4802_v61 = vpop.permute.xlu0 %4801 }
 0x586   : > { %v6189_v63 = vpop.f32.mrb[33].mxu0  ;;  %v4807_v14 = vpop.permute.xlu1 %4806 }
 0x587   : > { %4871 = vst.msk [vmem:[%s8554_s20] sm:$0xff] %vm944_vm1, %v4855_v39  ;;  %v4856_v24 = vmax.f32 %v4840_v44, 0.0  ;;  %v6190_v12 = vadd.f32 %v6189_v63, %v6188_v55  ;;  %v6191_v4 = vpop.f32.mrb[34].mxu0 }
 0x588   : > { %v6192_v57 = vpop.f32.mrb[35].mxu0 }
 0x589   : > { %4872 = vst.msk [vmem:[%s8554_s20 + $0x8] sm:$0xff] %vm944_vm1, %v4856_v24  ;;  %v4729_v6 = vadd.f32 %v6190_v12, %v8513_v16  ;;  %v6193_v17 = vadd.f32 %v6192_v57, %v6191_v4 }
 0x58b   : > { %v4841_v29 = vadd.f32 %v4772_v21, %v4729_v6  ;;  %v4730_v33 = vadd.f32 %v6193_v17, %v8516_v3  ;;  %v4812_v17 = vpop.permute.xlu0 %4811 }
 0x58d   : > { %v4857_v53 = vmax.f32 %v4841_v29, 0.0  ;;  %v4842_v49 = vadd.f32 %v4777_v13, %v4730_v33  ;;  %v6194_v30 = vpop.f32.mrb[36].mxu0  ;;  %v4817_v29 = vpop.permute.xlu1 %4816 }
 0x58e   : > { %v6195_v60 = vpop.f32.mrb[37].mxu0 }
 0x58f   : > { %4873 = vst.msk [vmem:[%s8554_s20 + $0x10] sm:$0xff] %vm944_vm1, %v4857_v53  ;;  %v4858_v47 = vmax.f32 %v4842_v49, 0.0  ;;  %v6196_v7 = vadd.f32 %v6195_v60, %v6194_v30  ;;  %v6197_v0 = vpop.f32.mrb[38].mxu0 }
 0x590   : > { %v6198_v23 = vpop.f32.mrb[39].mxu0 }
 0x591   : > { %4874 = vst.msk [vmem:[%s8554_s20 + $0x18] sm:$0xff] %vm944_vm1, %v4858_v47  ;;  %v4731_v16 = vadd.f32 %v6196_v7, %v8519_v43  ;;  %v6199_v26 = vadd.f32 %v6198_v23, %v6197_v0  ;;  %v4822_v23 = vpop.permute.xlu0 %4821 }
 0x593   : > { %v4843_v3 = vadd.f32 %v4782_v28, %v4731_v16  ;;  %v4732_v22 = vadd.f32 %v6199_v26, %v8522_v46  ;;  %v4827_v26 = vpop.permute.xlu1 %4826 }
 0x595   : > { %v4859_v9 = vmax.f32 %v4843_v3, 0.0  ;;  %v4844_v11 = vadd.f32 %v4787_v5, %v4732_v22  ;;  %v6200_v37 = vpop.f32.mrb[40].mxu0 }
 0x596   : > { %v6201_v40 = vpop.f32.mrb[41].mxu0 }
 0x597   : > { %4875 = vst.msk [vmem:[%s8554_s20 + $0x20] sm:$0xff] %vm944_vm1, %v4859_v9  ;;  %v4860_v42 = vmax.f32 %v4844_v11, 0.0  ;;  %v6202_v45 = vadd.f32 %v6201_v40, %v6200_v37  ;;  %v6203_v10 = vpop.f32.mrb[42].mxu0 }
 0x598   : > { %v6204_v58 = vpop.f32.mrb[43].mxu0 }
 0x599   : > { %4876 = vst.msk [vmem:[%s8554_s20 + $0x28] sm:$0xff] %vm944_vm1, %v4860_v42  ;;  %v4733_v43 = vadd.f32 %v6202_v45, %v8525_v62  ;;  %v6205_v18 = vadd.f32 %v6204_v58, %v6203_v10  ;;  %v4832_v45 = vpop.permute.xlu0 %4831  ;;  %v4837_v58 = vpop.permute.xlu1 %4836 }
 0x59b   : > { %v4845_v46 = vadd.f32 %v4792_v19, %v4733_v43  ;;  %v4734_v15 = vadd.f32 %v6205_v18, %v8527_v41 }
 0x59d   : > { %v4861_v34 = vmax.f32 %v4845_v46, 0.0  ;;  %v4846_v8 = vadd.f32 %v4797_v25, %v4734_v15  ;;  %v6206_v38 = vpop.f32.mrb[44].mxu0 }
 0x59e   : > { %v6207_v1 = vpop.f32.mrb[45].mxu0 }
 0x59f   : > { %4877 = vst.msk [vmem:[%s8554_s20 + $0x30] sm:$0xff] %vm944_vm1, %v4861_v34  ;;  %v4862_v54 = vmax.f32 %v4846_v8, 0.0  ;;  %v6208_v31 = vadd.f32 %v6207_v1, %v6206_v38  ;;  %v6209_v59 = vpop.f32.mrb[46].mxu0 }
 0x5a0   : > { %v6210_v51 = vpop.f32.mrb[47].mxu0 }
 0x5a1   : > { %4878 = vst.msk [vmem:[%s8554_s20 + $0x38] sm:$0xff] %vm944_vm1, %v4862_v54  ;;  %v4735_v62 = vadd.f32 %v6208_v31, %v8529_v35  ;;  %v6211_v56 = vadd.f32 %v6210_v51, %v6209_v59 }
 0x5a3   : > { %v4847_v41 = vadd.f32 %v4802_v61, %v4735_v62  ;;  %v4736_v32 = vadd.f32 %v6211_v56, %v8531_v27 }
 0x5a5   : > { %v4863_v39 = vmax.f32 %v4847_v41, 0.0  ;;  %v4848_v44 = vadd.f32 %v4807_v14, %v4736_v32  ;;  %v6212_v55 = vpop.f32.mrb[48].mxu0 }
 0x5a6   : > { %v6213_v63 = vpop.f32.mrb[49].mxu0 }
 0x5a7   : > { %4879 = vst.msk [vmem:[%s8554_s20 + $0x40] sm:$0xff] %vm944_vm1, %v4863_v39  ;;  %v4864_v24 = vmax.f32 %v4848_v44, 0.0  ;;  %v6214_v12 = vadd.f32 %v6213_v63, %v6212_v55  ;;  %v6215_v4 = vpop.f32.mrb[50].mxu0 }
 0x5a8   : > { %v6216_v57 = vpop.f32.mrb[51].mxu0 }
 0x5a9   : > { %4880 = vst.msk [vmem:[%s8554_s20 + $0x48] sm:$0xff] %vm944_vm1, %v4864_v24  ;;  %v4737_v35 = vadd.f32 %v6214_v12, %v8533_v52  ;;  %v6217_v6 = vadd.f32 %v6216_v57, %v6215_v4 }
 0x5ab   : > { %v4849_v27 = vadd.f32 %v4812_v17, %v4737_v35  ;;  %v4738_v21 = vadd.f32 %v6217_v6, %v8535_v20 }
 0x5ad   : > { %v4865_v33 = vmax.f32 %v4849_v27, 0.0  ;;  %v4850_v13 = vadd.f32 %v4817_v29, %v4738_v21  ;;  %v6218_v53 = vpop.f32.mrb[52].mxu0 }
 0x5ae   : > { %v6219_v49 = vpop.f32.mrb[53].mxu0 }
 0x5af   : > { %4881 = vst.msk [vmem:[%s8554_s20 + $0x50] sm:$0xff] %vm944_vm1, %v4865_v33  ;;  %v4866_v30 = vmax.f32 %v4850_v13, 0.0  ;;  %v6220_v60 = vadd.f32 %v6219_v49, %v6218_v53  ;;  %v6221_v47 = vpop.f32.mrb[54].mxu0 }
 0x5b0   : > { %v6222_v7 = vpop.f32.mrb[55].mxu0 }
 0x5b1   : > { %4882 = vst.msk [vmem:[%s8554_s20 + $0x58] sm:$0xff] %vm944_vm1, %v4866_v30  ;;  %v4739_v52 = vadd.f32 %v6220_v60, %v8538_v48  ;;  %v6223_v0 = vadd.f32 %v6222_v7, %v6221_v47 }
 0x5b3   : > { %v4851_v20 = vadd.f32 %v4822_v23, %v4739_v52  ;;  %v4740_v16 = vadd.f32 %v6223_v0, %v8540_v50 }
 0x5b5   : > { %v4867_v28 = vmax.f32 %v4851_v20, 0.0  ;;  %v4852_v3 = vadd.f32 %v4827_v26, %v4740_v16  ;;  %v6224_v22 = vpop.f32.mrb[56].mxu0 }
 0x5b6   : > { %v6225_v5 = vpop.f32.mrb[57].mxu0 }
 0x5b7   : > { %4883 = vst.msk [vmem:[%s8554_s20 + $0x60] sm:$0xff] %vm944_vm1, %v4867_v28  ;;  %v4868_v9 = vmax.f32 %v4852_v3, 0.0  ;;  %v6226_v11 = vadd.f32 %v6225_v5, %v6224_v22  ;;  %v6227_v37 = vpop.f32.mrb[58].mxu0 }
 0x5b8   : > { %v6228_v40 = vpop.f32.mrb[59].mxu0 }
 0x5b9   : > { %4884 = vst.msk [vmem:[%s8554_s20 + $0x68] sm:$0xff] %vm944_vm1, %v4868_v9  ;;  %v4741_v48 = vadd.f32 %v6226_v11, %v8543_v2  ;;  %v6229_v42 = vadd.f32 %v6228_v40, %v6227_v37 }
 0x5bb   : > { %v4853_v50 = vadd.f32 %v4832_v45, %v4741_v48  ;;  %v4742_v10 = vadd.f32 %v6229_v42, %v8546_v36 }
 0x5bd   : > { %v4869_v43 = vmax.f32 %v4853_v50, 0.0  ;;  %v4854_v18 = vadd.f32 %v4837_v58, %v4742_v10 }
 0x5bf   : > { %4885 = vst.msk [vmem:[%s8554_s20 + $0x70] sm:$0xff] %vm944_vm1, %v4869_v43  ;;  %v4870_v19 = vmax.f32 %v4854_v18, 0.0 }
 0x5c1   : > { %4886 = vst.msk [vmem:[%s8554_s20 + $0x78] sm:$0xff] %vm944_vm1, %v4870_v19 }
 0x5c2 PF: > { %s16_s21 = sadd.s32 1, %s6724_s21  }
 0x5c3   : > { %p13_p4 = scmp.ge.s32.totalorder %s16_s21, 4  }
 0x5c5   :  { %15 = sbr.rel (!%p13_p4) target bundleno = 1 (0x1), region = 76 }

</bundles_post_ra>
